<compile_context>
chip_gen: v5e
topology: v5e:2x2
jax: 0.10.0
libtpu: 0.0.40
codegen_flags: <defaults>
</compile_context>

<pallas_src>
import functools

import jax
import jax.numpy as jnp
from jax.experimental import pallas as pl
from jax.experimental.pallas import tpu as pltpu


def _four_dir_lstm_kernel(x_joint_ref, x_tail_ref,
                          wih_j_ref, whh_j_ref, b_j_ref,
                          wih_t_ref, whh_t_ref, b_t_ref,
                          h0_ref, c0_ref,
                          out_ref,
                          gx_j_ref, gx_t_ref,
                          *, hidden_size, batch_pad, t_joint, t_tail):
    H = hidden_size
    Bp = batch_pad

    # --- Hoisted input projections (one MXU pass each), both BEFORE the recurrence
    # starts so neither sits program-order between recurrence steps.
    # Joint: (T_lr*Bp, 2F+2S) @ (2F+2S, 16H); tail: (T_tail*Bp, 2S) @ (2S, 8H).
    gx_j_ref[...] = (jnp.dot(x_joint_ref[...], wih_j_ref[...],
                             preferred_element_type=jnp.float32) + b_j_ref[...])
    gx_t_ref[...] = (jnp.dot(x_tail_ref[...], wih_t_ref[...],
                             preferred_element_type=jnp.float32) + b_t_ref[...])

    h = h0_ref[...]            # (Bp, 4H) = [lr_fw | lr_bw | ud_fw | ud_bw]
    c = c0_ref[...]

    def lstm_step(h, c, whh_ref, gx_row, width):
        # One fused LSTM step over `width` hidden lanes (4H joint / 2H tail).
        # Gate columns: [i | f | o | g], each `width` wide; sigmoid on the first
        # 3*width lanes only, tanh on the last `width` lanes only.
        # TODO(synk): hold whh resident in the MXU across steps via
        # pltpu.matmul_push_rhs / matmul_acc_lhs instead of re-pushing it each step.
        w = whh_ref[...]                                    # read ref inside loop
        gates = jnp.dot(h.astype(w.dtype), w,
                        preferred_element_type=jnp.float32) + gx_row
        sig = jax.nn.sigmoid(gates[:, :3 * width])
        i = sig[:, 0 * width:1 * width]
        f = sig[:, 1 * width:2 * width]
        o = sig[:, 2 * width:3 * width]
        g = jnp.tanh(gates[:, 3 * width:])
        c = f * c + i * g
        h = o * jnp.tanh(c)
        return h, c

    # --- Phase 1: both BiLSTMs advance lock-step: (Bp,4H)@(4H,16H) per step.
    # Fully unrolled (static, small trip count) so LLO interleaves MXU/EUP/VPU.
    # TODO(synk): if bundle dumps show vreg spills, switch to
    # lax.fori_loop(..., unroll=2..4) to cap live ranges.
    for t in range(t_joint):
        h, c = lstm_step(h, c, whh_j_ref,
                         gx_j_ref[t * Bp:(t + 1) * Bp, :], 4 * H)

    # The rightleft BiLSTM is finished after t_joint steps: freeze its half.
    h_lr = h[:, :2 * H]
    h_ud = h[:, 2 * H:]
    c_ud = c[:, 2 * H:]

    # --- Phase 2: remaining downup-only steps: (Bp,2H)@(2H,8H) per step.
    for t in range(t_tail):
        h_ud, c_ud = lstm_step(h_ud, c_ud, whh_t_ref,
                               gx_t_ref[t * Bp:(t + 1) * Bp, :], 2 * H)

    # Single lane-dense (Bp, 4H = 128) store: [hlr_fw, hlr_bw, hud_fw, hud_bw].
    out_ref[...] = jnp.concatenate([h_lr, h_ud], axis=-1)


# ----------------------------------------------------------------------------
# Host-side parameter init / packing (one-time preprocessing, analogous to init).
# ----------------------------------------------------------------------------

_GATE_ORDER = (0, 1, 3, 2)   # PyTorch [i, f, g, o] -> kernel [i, f, o, g] (tanh last)


def init_lstm_params(key, input_size, hidden_size):
    """PyTorch-layout params for one bidirectional nn.LSTM layer.
    Deterministic PyTorch-style init: U(-1/sqrt(H), 1/sqrt(H))."""
    k = 1.0 / jnp.sqrt(jnp.float32(hidden_size))
    keys = jax.random.split(key, 8)

    def u(kk, shape):
        return jax.random.uniform(kk, shape, jnp.float32, minval=-k, maxval=k)

    H4 = 4 * hidden_size
    return dict(
        w_ih_f=u(keys[0], (H4, input_size)), w_hh_f=u(keys[1], (H4, hidden_size)),
        b_ih_f=u(keys[2], (H4,)),            b_hh_f=u(keys[3], (H4,)),
        w_ih_b=u(keys[4], (H4, input_size)), w_hh_b=u(keys[5], (H4, hidden_size)),
        b_ih_b=u(keys[6], (H4,)),            b_hh_b=u(keys[7], (H4,)),
    )


def _per_gate(w, H):
    """PyTorch stacked (4H, X) -> (X, 4, H) with gates reordered to [i, f, o, g]."""
    X = w.shape[1]
    wt = jnp.transpose(w).reshape(X, 4, H)
    return wt[:, jnp.array(_GATE_ORDER), :]


def _place(wg, slot, n_slots, H):
    """(X, 4, H) per-gate weights -> (X, 4*n_slots*H) with columns only in `slot`."""
    X = wg.shape[0]
    out = jnp.zeros((X, 4, n_slots, H), wg.dtype)
    return out.at[:, :, slot, :].set(wg).reshape(X, 4 * n_slots * H)


def _bias(b_ih, b_hh, H):
    return (b_ih + b_hh).reshape(4, H)[jnp.array(_GATE_ORDER), :]


def pack_four_dir_params(p_lr, p_ud, hidden_size, recurrent_dtype=jnp.bfloat16):
    """Pack both BiLSTMs into the fused-kernel layouts.

    Joint-phase gate axis (width 16H): [i(4H) | f(4H) | o(4H) | g(4H)],
    each 4H block laid out slot-wise as [lr_fw, lr_bw, ud_fw, ud_bw] (H each).
    Tail-phase gate axis (width 8H): same but slots [ud_fw, ud_bw].
    whh matrices are block-diagonal: each direction's hidden rows feed only its
    own slot columns; wih rows are [x_lr_fw | x_lr_bw | x_ud_fw | x_ud_bw] blocks.
    """
    H = hidden_size

    wih_lrf, wih_lrb = _per_gate(p_lr["w_ih_f"], H), _per_gate(p_lr["w_ih_b"], H)
    whh_lrf, whh_lrb = _per_gate(p_lr["w_hh_f"], H), _per_gate(p_lr["w_hh_b"], H)
    wih_udf, wih_udb = _per_gate(p_ud["w_ih_f"], H), _per_gate(p_ud["w_ih_b"], H)
    whh_udf, whh_udb = _per_gate(p_ud["w_hh_f"], H), _per_gate(p_ud["w_hh_b"], H)

    wih_joint = jnp.concatenate([
        _place(wih_lrf, 0, 4, H), _place(wih_lrb, 1, 4, H),
        _place(wih_udf, 2, 4, H), _place(wih_udb, 3, 4, H)], axis=0)   # (2F+2S, 16H)
    whh_joint = jnp.concatenate([
        _place(whh_lrf, 0, 4, H), _place(whh_lrb, 1, 4, H),
        _place(whh_udf, 2, 4, H), _place(whh_udb, 3, 4, H)], axis=0)   # (4H, 16H)
    b_joint = jnp.stack([
        _bias(p_lr["b_ih_f"], p_lr["b_hh_f"], H),
        _bias(p_lr["b_ih_b"], p_lr["b_hh_b"], H),
        _bias(p_ud["b_ih_f"], p_ud["b_hh_f"], H),
        _bias(p_ud["b_ih_b"], p_ud["b_hh_b"], H)], axis=1).reshape(1, 16 * H)

    wih_tail = jnp.concatenate([_place(wih_udf, 0, 2, H),
                                _place(wih_udb, 1, 2, H)], axis=0)     # (2S, 8H)
    whh_tail = jnp.concatenate([_place(whh_udf, 0, 2, H),
                                _place(whh_udb, 1, 2, H)], axis=0)     # (2H, 8H)
    b_tail = jnp.stack([
        _bias(p_ud["b_ih_f"], p_ud["b_hh_f"], H),
        _bias(p_ud["b_ih_b"], p_ud["b_hh_b"], H)], axis=1).reshape(1, 8 * H)

    return dict(
        wih_joint=wih_joint, whh_joint=whh_joint.astype(recurrent_dtype), b_joint=b_joint,
        wih_tail=wih_tail, whh_tail=whh_tail.astype(recurrent_dtype), b_tail=b_tail)


# ----------------------------------------------------------------------------
# Wrapper
# ----------------------------------------------------------------------------

def four_directional_lstm(x, seq_size, hidden_size, packed, hidden_lr, hidden_ud):
    """JAX/Pallas equivalent of FourDirectionalLSTM.forward (hidden states given)."""
    batch = x.shape[0]
    feat_size = x.shape[1] // seq_size
    H = hidden_size
    S, F = seq_size, feat_size
    T_lr, T_ud = seq_size, feat_size
    # TODO(synk): joint/tail split assumes the downup sequence is the longer one
    # (feat_size > seq_size), which holds for the AtLoc configuration.
    assert T_ud > T_lr, "expected feat_size > seq_size"
    T_tail = T_ud - T_lr

    Bp = max(8, ((batch + 7) // 8) * 8)   # pad batch to f32 sublane height

    def pad_b(a):
        return jnp.pad(a, [(0, Bp - batch)] + [(0, 0)] * (a.ndim - 1))

    x_rl = x.reshape(batch, T_lr, F)                  # (B, T_lr, F)
    x_du = jnp.transpose(x_rl, (0, 2, 1))             # (B, T_ud, S)

    # Time-major, batch-padded inputs; the backward-direction time reversal is
    # folded in HERE (one-time) instead of per-step selects in the kernel.
    x_lr_fw = jnp.transpose(pad_b(x_rl), (1, 0, 2))   # (T_lr, Bp, F)
    x_ud_fw = jnp.transpose(pad_b(x_du), (1, 0, 2))   # (T_ud, Bp, S)
    x_lr_bw = x_lr_fw[::-1]
    x_ud_bw = x_ud_fw[::-1]

    # Joint-phase row t: [x_lr[t] | x_lr[T_lr-1-t] | x_ud[t] | x_ud[T_ud-1-t]]
    x_joint = jnp.concatenate(
        [x_lr_fw, x_lr_bw, x_ud_fw[:T_lr], x_ud_bw[:T_lr]], axis=-1
    ).reshape(T_lr * Bp, 2 * F + 2 * S)
    # Tail-phase row t: [x_ud[T_lr+t] | x_ud[T_ud-1-(T_lr+t)]]
    x_tail = jnp.concatenate(
        [x_ud_fw[T_lr:], x_ud_bw[T_lr:]], axis=-1
    ).reshape(T_tail * Bp, 2 * S)

    def pack_state(s_lr, s_ud):     # (2,B,H)x2 -> (Bp, 4H) = [lr_fw|lr_bw|ud_fw|ud_bw]
        return pad_b(jnp.concatenate([s_lr[0], s_lr[1], s_ud[0], s_ud[1]], axis=-1))

    h0 = pack_state(hidden_lr[0], hidden_ud[0])
    c0 = pack_state(hidden_lr[1], hidden_ud[1])

    vmem = pl.BlockSpec(memory_space=pltpu.MemorySpace.VMEM)
    kernel = functools.partial(_four_dir_lstm_kernel, hidden_size=H, batch_pad=Bp,
                               t_joint=T_lr, t_tail=T_tail)

    # VMEM footprint is tiny (<1 MiB) at these sizes; no grid/tiling needed.
    # TODO(synk): if batch scales up, add a grid over Bp-row batch tiles with
    # dimension_semantics=("parallel",) and raise vmem_limit_bytes.
    out = pl.pallas_call(
        kernel,
        out_shape=jax.ShapeDtypeStruct((Bp, 4 * H), jnp.float32),
        in_specs=[vmem] * 10,
        out_specs=vmem,
        scratch_shapes=[pltpu.VMEM((T_lr * Bp, 16 * H), jnp.float32),
                        pltpu.VMEM((T_tail * Bp, 8 * H), jnp.float32)],
    )(x_joint, x_tail,
      packed["wih_joint"], packed["whh_joint"], packed["b_joint"],
      packed["wih_tail"], packed["whh_tail"], packed["b_tail"],
      h0, c0)

    return out[:batch]                                  # (B, 4H)


# ----------------------------------------------------------------------------
# Pure-JAX reference (raw PyTorch-layout params -> also validates the packing).
# ----------------------------------------------------------------------------

def _reference_bilstm(x_btd, p, h0, c0, H):
    def cell(x_t, h, c, w_ih, w_hh, b_ih, b_hh):
        g = x_t @ w_ih.T + h @ w_hh.T + b_ih + b_hh
        i = jax.nn.sigmoid(g[:, 0 * H:1 * H])
        f = jax.nn.sigmoid(g[:, 1 * H:2 * H])
        gg = jnp.tanh(g[:, 2 * H:3 * H])
        o = jax.nn.sigmoid(g[:, 3 * H:4 * H])
        c = f * c + i * gg
        return o * jnp.tanh(c), c

    def run(xs, w_ih, w_hh, b_ih, b_hh, h, c):
        for t in range(xs.shape[1]):
            h, c = cell(xs[:, t, :], h, c, w_ih, w_hh, b_ih, b_hh)
        return h

    hf = run(x_btd, p["w_ih_f"], p["w_hh_f"], p["b_ih_f"], p["b_hh_f"], h0[0], c0[0])
    hb = run(x_btd[:, ::-1, :], p["w_ih_b"], p["w_hh_b"], p["b_ih_b"], p["b_hh_b"],
             h0[1], c0[1])
    return jnp.concatenate([hf, hb], axis=1)


if __name__ == "__main__":
    batch = 2
    seq_size = 8
    hidden_size = 32
    origin_feat_size = 128          # -> feat_size = 16
    feat_size = origin_feat_size // seq_size

    key = jax.random.PRNGKey(0)
    kx, kp_lr, kp_ud, kh1, kc1, kh2, kc2 = jax.random.split(key, 7)

    x = jax.random.normal(kx, (batch, origin_feat_size), jnp.float32)

    raw_lr = init_lstm_params(kp_lr, feat_size, hidden_size)
    raw_ud = init_lstm_params(kp_ud, seq_size, hidden_size)

    # init_hidden_: torch.randn(2, batch, hidden) for (h0, c0), per LSTM —
    # supplied here as explicit inputs generated with jax.random.
    hidden_lr = (jax.random.normal(kh1, (2, batch, hidden_size), jnp.float32),
                 jax.random.normal(kc1, (2, batch, hidden_size), jnp.float32))
    hidden_ud = (jax.random.normal(kh2, (2, batch, hidden_size), jnp.float32),
                 jax.random.normal(kc2, (2, batch, hidden_size), jnp.float32))

    fwd = jax.jit(four_directional_lstm, static_argnums=(1, 2))

    # Pure-JAX f32 reference of the original module's math.
    x_rl = x.reshape(batch, seq_size, feat_size)
    x_du = jnp.transpose(x_rl, (0, 2, 1))
    ref = jnp.concatenate([
        _reference_bilstm(x_rl, raw_lr, hidden_lr[0], hidden_lr[1], hidden_size),
        _reference_bilstm(x_du, raw_ud, hidden_ud[0], hidden_ud[1], hidden_size),
    ], axis=1)

    # 1) f32 recurrent weights: validates fused packing + kernel math exactly.
    packed_f32 = pack_four_dir_params(raw_lr, raw_ud, hidden_size,
                                      recurrent_dtype=jnp.float32)
    out_f32 = jax.block_until_ready(
        fwd(x, seq_size, hidden_size, packed_f32, hidden_lr, hidden_ud))
    assert out_f32.shape == (batch, 4 * hidden_size)
    assert jnp.allclose(out_f32, ref, atol=1e-4, rtol=1e-4), \
        float(jnp.max(jnp.abs(out_f32 - ref)))

    # 2) bf16 recurrent weights (native MXU rate on v6e/v7x); f32 accumulation and
    #    f32 gate math.  Looser tolerance per the review (~1e-2 scale).
    packed_bf16 = pack_four_dir_params(raw_lr, raw_ud, hidden_size,
                                       recurrent_dtype=jnp.bfloat16)
    out_bf16 = jax.block_until_ready(
        fwd(x, seq_size, hidden_size, packed_bf16, hidden_lr, hidden_ud))
    assert out_bf16.shape == (batch, 4 * hidden_size)
    assert jnp.allclose(out_bf16, ref, atol=3e-2, rtol=3e-2), \
        float(jnp.max(jnp.abs(out_bf16 - ref)))

    print("KERNEL_OK")
</pallas_src>

<mosaic_0001>
module attributes {stable_mosaic.version = 11 : i64} {
  func.func @_four_dir_lstm_kernel(%arg0: memref<64x48xf32, #tpu.memory_space<vmem>>, %arg1: memref<64x16xf32, #tpu.memory_space<vmem>>, %arg2: memref<48x512xf32, #tpu.memory_space<vmem>>, %arg3: memref<128x512xf32, #tpu.memory_space<vmem>>, %arg4: memref<1x512xf32, #tpu.memory_space<vmem>>, %arg5: memref<16x256xf32, #tpu.memory_space<vmem>>, %arg6: memref<64x256xf32, #tpu.memory_space<vmem>>, %arg7: memref<1x256xf32, #tpu.memory_space<vmem>>, %arg8: memref<8x128xf32, #tpu.memory_space<vmem>>, %arg9: memref<8x128xf32, #tpu.memory_space<vmem>>, %arg10: memref<8x128xf32, #tpu.memory_space<vmem>>, %arg11: memref<64x512xf32, #tpu.memory_space<vmem>>, %arg12: memref<64x256xf32, #tpu.memory_space<vmem>>) attributes {dimension_semantics = [], scalar_prefetch = 0 : i64, scratch_operands = 2 : i64, tpu.core_type = #tpu.core_type<tc>} {
    %c0 = arith.constant 0 : index
    %c0_0 = arith.constant 0 : index
    %0 = vector.load %arg0[%c0, %c0_0] : memref<64x48xf32, #tpu.memory_space<vmem>>, vector<64x48xf32>
    %c0_1 = arith.constant 0 : index
    %c0_2 = arith.constant 0 : index
    %1 = vector.load %arg2[%c0_1, %c0_2] : memref<48x512xf32, #tpu.memory_space<vmem>>, vector<48x512xf32>
    %cst = arith.constant dense<0.000000e+00> : vector<64x512xf32>
    %2 = tpu.matmul %0, %1, %cst {dimension_numbers = #tpu.dot_dimension_numbers<[1], [0], [0], [1], [0, 0, 1, 1], [], []>} : vector<64x48xf32>, vector<48x512xf32>, vector<64x512xf32> -> vector<64x512xf32>
    %c0_3 = arith.constant 0 : index
    %c0_4 = arith.constant 0 : index
    %3 = vector.load %arg4[%c0_3, %c0_4] : memref<1x512xf32, #tpu.memory_space<vmem>>, vector<1x512xf32>
    %4 = vector.broadcast %3 : vector<1x512xf32> to vector<64x512xf32>
    %5 = arith.addf %2, %4 : vector<64x512xf32>
    %c0_5 = arith.constant 0 : index
    %c0_6 = arith.constant 0 : index
    %6 = vector.load %arg11[%c0_5, %c0_6] : memref<64x512xf32, #tpu.memory_space<vmem>>, vector<64x512xf32>
    tpu.vector_store %arg11[%c0_5, %c0_6], %5 {strides = array<i32>} : memref<64x512xf32, #tpu.memory_space<vmem>>, vector<64x512xf32>,
    %c0_7 = arith.constant 0 : index
    %c0_8 = arith.constant 0 : index
    %7 = vector.load %arg1[%c0_7, %c0_8] : memref<64x16xf32, #tpu.memory_space<vmem>>, vector<64x16xf32>
    %c0_9 = arith.constant 0 : index
    %c0_10 = arith.constant 0 : index
    %8 = vector.load %arg5[%c0_9, %c0_10] : memref<16x256xf32, #tpu.memory_space<vmem>>, vector<16x256xf32>
    %cst_11 = arith.constant dense<0.000000e+00> : vector<64x256xf32>
    %9 = tpu.matmul %7, %8, %cst_11 {dimension_numbers = #tpu.dot_dimension_numbers<[1], [0], [0], [1], [0, 0, 1, 1], [], []>} : vector<64x16xf32>, vector<16x256xf32>, vector<64x256xf32> -> vector<64x256xf32>
    %c0_12 = arith.constant 0 : index
    %c0_13 = arith.constant 0 : index
    %10 = vector.load %arg7[%c0_12, %c0_13] : memref<1x256xf32, #tpu.memory_space<vmem>>, vector<1x256xf32>
    %11 = vector.broadcast %10 : vector<1x256xf32> to vector<64x256xf32>
    %12 = arith.addf %9, %11 : vector<64x256xf32>
    %c0_14 = arith.constant 0 : index
    %c0_15 = arith.constant 0 : index
    %13 = vector.load %arg12[%c0_14, %c0_15] : memref<64x256xf32, #tpu.memory_space<vmem>>, vector<64x256xf32>
    tpu.vector_store %arg12[%c0_14, %c0_15], %12 {strides = array<i32>} : memref<64x256xf32, #tpu.memory_space<vmem>>, vector<64x256xf32>,
    %c0_16 = arith.constant 0 : index
    %c0_17 = arith.constant 0 : index
    %14 = vector.load %arg8[%c0_16, %c0_17] : memref<8x128xf32, #tpu.memory_space<vmem>>, vector<8x128xf32>
    %c0_18 = arith.constant 0 : index
    %c0_19 = arith.constant 0 : index
    %15 = vector.load %arg9[%c0_18, %c0_19] : memref<8x128xf32, #tpu.memory_space<vmem>>, vector<8x128xf32>
    %c0_20 = arith.constant 0 : index
    %c0_21 = arith.constant 0 : index
    %16 = vector.load %arg11[%c0_20, %c0_21] : memref<64x512xf32, #tpu.memory_space<vmem>>, vector<8x512xf32>
    %c0_22 = arith.constant 0 : index
    %c0_23 = arith.constant 0 : index
    %17 = vector.load %arg3[%c0_22, %c0_23] : memref<128x512xf32, #tpu.memory_space<vmem>>, vector<128x512xf32>
    %cst_24 = arith.constant dense<0.000000e+00> : vector<8x512xf32>
    %18 = tpu.matmul %14, %17, %cst_24 {dimension_numbers = #tpu.dot_dimension_numbers<[1], [0], [0], [1], [0, 0, 1, 1], [], []>} : vector<8x128xf32>, vector<128x512xf32>, vector<8x512xf32> -> vector<8x512xf32>
    %19 = arith.addf %18, %16 : vector<8x512xf32>
    %20 = vector.extract_strided_slice %19 {offsets = [0, 0], sizes = [8, 384], strides = [1, 1]} : vector<8x512xf32> to vector<8x384xf32>
    %21 = arith.negf %20 : vector<8x384xf32>
    %22 = math.exp %21 : vector<8x384xf32>
    %cst_25 = arith.constant 1.000000e+00 : f32
    %23 = vector.broadcast %cst_25 : f32 to vector<8x384xf32>
    %24 = arith.addf %23, %22 : vector<8x384xf32>
    %25 = arith.divf %23, %24 : vector<8x384xf32>
    %26 = vector.extract_strided_slice %25 {offsets = [0, 0], sizes = [8, 128], strides = [1, 1]} : vector<8x384xf32> to vector<8x128xf32>
    %27 = vector.extract_strided_slice %25 {offsets = [0, 128], sizes = [8, 128], strides = [1, 1]} : vector<8x384xf32> to vector<8x128xf32>
    %28 = vector.extract_strided_slice %25 {offsets = [0, 256], sizes = [8, 128], strides = [1, 1]} : vector<8x384xf32> to vector<8x128xf32>
    %29 = vector.extract_strided_slice %19 {offsets = [0, 384], sizes = [8, 128], strides = [1, 1]} : vector<8x512xf32> to vector<8x128xf32>
    %30 = math.tanh %29 : vector<8x128xf32>
    %31 = arith.mulf %27, %15 : vector<8x128xf32>
    %32 = arith.mulf %26, %30 : vector<8x128xf32>
    %33 = arith.addf %31, %32 : vector<8x128xf32>
    %34 = math.tanh %33 : vector<8x128xf32>
    %35 = arith.mulf %28, %34 : vector<8x128xf32>
    %c8 = arith.constant 8 : index
    %c0_26 = arith.constant 0 : index
    %36 = vector.load %arg11[%c8, %c0_26] : memref<64x512xf32, #tpu.memory_space<vmem>>, vector<8x512xf32>
    %c0_27 = arith.constant 0 : index
    %c0_28 = arith.constant 0 : index
    %37 = vector.load %arg3[%c0_27, %c0_28] : memref<128x512xf32, #tpu.memory_space<vmem>>, vector<128x512xf32>
    %cst_29 = arith.constant dense<0.000000e+00> : vector<8x512xf32>
    %38 = tpu.matmul %35, %37, %cst_29 {dimension_numbers = #tpu.dot_dimension_numbers<[1], [0], [0], [1], [0, 0, 1, 1], [], []>} : vector<8x128xf32>, vector<128x512xf32>, vector<8x512xf32> -> vector<8x512xf32>
    %39 = arith.addf %38, %36 : vector<8x512xf32>
    %40 = vector.extract_strided_slice %39 {offsets = [0, 0], sizes = [8, 384], strides = [1, 1]} : vector<8x512xf32> to vector<8x384xf32>
    %41 = arith.negf %40 : vector<8x384xf32>
    %42 = math.exp %41 : vector<8x384xf32>
    %cst_30 = arith.constant 1.000000e+00 : f32
    %43 = vector.broadcast %cst_30 : f32 to vector<8x384xf32>
    %44 = arith.addf %43, %42 : vector<8x384xf32>
    %45 = arith.divf %43, %44 : vector<8x384xf32>
    %46 = vector.extract_strided_slice %45 {offsets = [0, 0], sizes = [8, 128], strides = [1, 1]} : vector<8x384xf32> to vector<8x128xf32>
    %47 = vector.extract_strided_slice %45 {offsets = [0, 128], sizes = [8, 128], strides = [1, 1]} : vector<8x384xf32> to vector<8x128xf32>
    %48 = vector.extract_strided_slice %45 {offsets = [0, 256], sizes = [8, 128], strides = [1, 1]} : vector<8x384xf32> to vector<8x128xf32>
    %49 = vector.extract_strided_slice %39 {offsets = [0, 384], sizes = [8, 128], strides = [1, 1]} : vector<8x512xf32> to vector<8x128xf32>
    %50 = math.tanh %49 : vector<8x128xf32>
    %51 = arith.mulf %47, %33 : vector<8x128xf32>
    %52 = arith.mulf %46, %50 : vector<8x128xf32>
    %53 = arith.addf %51, %52 : vector<8x128xf32>
    %54 = math.tanh %53 : vector<8x128xf32>
    %55 = arith.mulf %48, %54 : vector<8x128xf32>
    %c16 = arith.constant 16 : index
    %c0_31 = arith.constant 0 : index
    %56 = vector.load %arg11[%c16, %c0_31] : memref<64x512xf32, #tpu.memory_space<vmem>>, vector<8x512xf32>
    %c0_32 = arith.constant 0 : index
    %c0_33 = arith.constant 0 : index
    %57 = vector.load %arg3[%c0_32, %c0_33] : memref<128x512xf32, #tpu.memory_space<vmem>>, vector<128x512xf32>
    %cst_34 = arith.constant dense<0.000000e+00> : vector<8x512xf32>
    %58 = tpu.matmul %55, %57, %cst_34 {dimension_numbers = #tpu.dot_dimension_numbers<[1], [0], [0], [1], [0, 0, 1, 1], [], []>} : vector<8x128xf32>, vector<128x512xf32>, vector<8x512xf32> -> vector<8x512xf32>
    %59 = arith.addf %58, %56 : vector<8x512xf32>
    %60 = vector.extract_strided_slice %59 {offsets = [0, 0], sizes = [8, 384], strides = [1, 1]} : vector<8x512xf32> to vector<8x384xf32>
    %61 = arith.negf %60 : vector<8x384xf32>
    %62 = math.exp %61 : vector<8x384xf32>
    %cst_35 = arith.constant 1.000000e+00 : f32
    %63 = vector.broadcast %cst_35 : f32 to vector<8x384xf32>
    %64 = arith.addf %63, %62 : vector<8x384xf32>
    %65 = arith.divf %63, %64 : vector<8x384xf32>
    %66 = vector.extract_strided_slice %65 {offsets = [0, 0], sizes = [8, 128], strides = [1, 1]} : vector<8x384xf32> to vector<8x128xf32>
    %67 = vector.extract_strided_slice %65 {offsets = [0, 128], sizes = [8, 128], strides = [1, 1]} : vector<8x384xf32> to vector<8x128xf32>
    %68 = vector.extract_strided_slice %65 {offsets = [0, 256], sizes = [8, 128], strides = [1, 1]} : vector<8x384xf32> to vector<8x128xf32>
    %69 = vector.extract_strided_slice %59 {offsets = [0, 384], sizes = [8, 128], strides = [1, 1]} : vector<8x512xf32> to vector<8x128xf32>
    %70 = math.tanh %69 : vector<8x128xf32>
    %71 = arith.mulf %67, %53 : vector<8x128xf32>
    %72 = arith.mulf %66, %70 : vector<8x128xf32>
    %73 = arith.addf %71, %72 : vector<8x128xf32>
    %74 = math.tanh %73 : vector<8x128xf32>
    %75 = arith.mulf %68, %74 : vector<8x128xf32>
    %c24 = arith.constant 24 : index
    %c0_36 = arith.constant 0 : index
    %76 = vector.load %arg11[%c24, %c0_36] : memref<64x512xf32, #tpu.memory_space<vmem>>, vector<8x512xf32>
    %c0_37 = arith.constant 0 : index
    %c0_38 = arith.constant 0 : index
    %77 = vector.load %arg3[%c0_37, %c0_38] : memref<128x512xf32, #tpu.memory_space<vmem>>, vector<128x512xf32>
    %cst_39 = arith.constant dense<0.000000e+00> : vector<8x512xf32>
    %78 = tpu.matmul %75, %77, %cst_39 {dimension_numbers = #tpu.dot_dimension_numbers<[1], [0], [0], [1], [0, 0, 1, 1], [], []>} : vector<8x128xf32>, vector<128x512xf32>, vector<8x512xf32> -> vector<8x512xf32>
    %79 = arith.addf %78, %76 : vector<8x512xf32>
    %80 = vector.extract_strided_slice %79 {offsets = [0, 0], sizes = [8, 384], strides = [1, 1]} : vector<8x512xf32> to vector<8x384xf32>
    %81 = arith.negf %80 : vector<8x384xf32>
    %82 = math.exp %81 : vector<8x384xf32>
    %cst_40 = arith.constant 1.000000e+00 : f32
    %83 = vector.broadcast %cst_40 : f32 to vector<8x384xf32>
    %84 = arith.addf %83, %82 : vector<8x384xf32>
    %85 = arith.divf %83, %84 : vector<8x384xf32>
    %86 = vector.extract_strided_slice %85 {offsets = [0, 0], sizes = [8, 128], strides = [1, 1]} : vector<8x384xf32> to vector<8x128xf32>
    %87 = vector.extract_strided_slice %85 {offsets = [0, 128], sizes = [8, 128], strides = [1, 1]} : vector<8x384xf32> to vector<8x128xf32>
    %88 = vector.extract_strided_slice %85 {offsets = [0, 256], sizes = [8, 128], strides = [1, 1]} : vector<8x384xf32> to vector<8x128xf32>
    %89 = vector.extract_strided_slice %79 {offsets = [0, 384], sizes = [8, 128], strides = [1, 1]} : vector<8x512xf32> to vector<8x128xf32>
    %90 = math.tanh %89 : vector<8x128xf32>
    %91 = arith.mulf %87, %73 : vector<8x128xf32>
    %92 = arith.mulf %86, %90 : vector<8x128xf32>
    %93 = arith.addf %91, %92 : vector<8x128xf32>
    %94 = math.tanh %93 : vector<8x128xf32>
    %95 = arith.mulf %88, %94 : vector<8x128xf32>
    %c32 = arith.constant 32 : index
    %c0_41 = arith.constant 0 : index
    %96 = vector.load %arg11[%c32, %c0_41] : memref<64x512xf32, #tpu.memory_space<vmem>>, vector<8x512xf32>
    %c0_42 = arith.constant 0 : index
    %c0_43 = arith.constant 0 : index
    %97 = vector.load %arg3[%c0_42, %c0_43] : memref<128x512xf32, #tpu.memory_space<vmem>>, vector<128x512xf32>
    %cst_44 = arith.constant dense<0.000000e+00> : vector<8x512xf32>
    %98 = tpu.matmul %95, %97, %cst_44 {dimension_numbers = #tpu.dot_dimension_numbers<[1], [0], [0], [1], [0, 0, 1, 1], [], []>} : vector<8x128xf32>, vector<128x512xf32>, vector<8x512xf32> -> vector<8x512xf32>
    %99 = arith.addf %98, %96 : vector<8x512xf32>
    %100 = vector.extract_strided_slice %99 {offsets = [0, 0], sizes = [8, 384], strides = [1, 1]} : vector<8x512xf32> to vector<8x384xf32>
    %101 = arith.negf %100 : vector<8x384xf32>
    %102 = math.exp %101 : vector<8x384xf32>
    %cst_45 = arith.constant 1.000000e+00 : f32
    %103 = vector.broadcast %cst_45 : f32 to vector<8x384xf32>
    %104 = arith.addf %103, %102 : vector<8x384xf32>
    %105 = arith.divf %103, %104 : vector<8x384xf32>
    %106 = vector.extract_strided_slice %105 {offsets = [0, 0], sizes = [8, 128], strides = [1, 1]} : vector<8x384xf32> to vector<8x128xf32>
    %107 = vector.extract_strided_slice %105 {offsets = [0, 128], sizes = [8, 128], strides = [1, 1]} : vector<8x384xf32> to vector<8x128xf32>
    %108 = vector.extract_strided_slice %105 {offsets = [0, 256], sizes = [8, 128], strides = [1, 1]} : vector<8x384xf32> to vector<8x128xf32>
    %109 = vector.extract_strided_slice %99 {offsets = [0, 384], sizes = [8, 128], strides = [1, 1]} : vector<8x512xf32> to vector<8x128xf32>
    %110 = math.tanh %109 : vector<8x128xf32>
    %111 = arith.mulf %107, %93 : vector<8x128xf32>
    %112 = arith.mulf %106, %110 : vector<8x128xf32>
    %113 = arith.addf %111, %112 : vector<8x128xf32>
    %114 = math.tanh %113 : vector<8x128xf32>
    %115 = arith.mulf %108, %114 : vector<8x128xf32>
    %c40 = arith.constant 40 : index
    %c0_46 = arith.constant 0 : index
    %116 = vector.load %arg11[%c40, %c0_46] : memref<64x512xf32, #tpu.memory_space<vmem>>, vector<8x512xf32>
    %c0_47 = arith.constant 0 : index
    %c0_48 = arith.constant 0 : index
    %117 = vector.load %arg3[%c0_47, %c0_48] : memref<128x512xf32, #tpu.memory_space<vmem>>, vector<128x512xf32>
    %cst_49 = arith.constant dense<0.000000e+00> : vector<8x512xf32>
    %118 = tpu.matmul %115, %117, %cst_49 {dimension_numbers = #tpu.dot_dimension_numbers<[1], [0], [0], [1], [0, 0, 1, 1], [], []>} : vector<8x128xf32>, vector<128x512xf32>, vector<8x512xf32> -> vector<8x512xf32>
    %119 = arith.addf %118, %116 : vector<8x512xf32>
    %120 = vector.extract_strided_slice %119 {offsets = [0, 0], sizes = [8, 384], strides = [1, 1]} : vector<8x512xf32> to vector<8x384xf32>
    %121 = arith.negf %120 : vector<8x384xf32>
    %122 = math.exp %121 : vector<8x384xf32>
    %cst_50 = arith.constant 1.000000e+00 : f32
    %123 = vector.broadcast %cst_50 : f32 to vector<8x384xf32>
    %124 = arith.addf %123, %122 : vector<8x384xf32>
    %125 = arith.divf %123, %124 : vector<8x384xf32>
    %126 = vector.extract_strided_slice %125 {offsets = [0, 0], sizes = [8, 128], strides = [1, 1]} : vector<8x384xf32> to vector<8x128xf32>
    %127 = vector.extract_strided_slice %125 {offsets = [0, 128], sizes = [8, 128], strides = [1, 1]} : vector<8x384xf32> to vector<8x128xf32>
    %128 = vector.extract_strided_slice %125 {offsets = [0, 256], sizes = [8, 128], strides = [1, 1]} : vector<8x384xf32> to vector<8x128xf32>
    %129 = vector.extract_strided_slice %119 {offsets = [0, 384], sizes = [8, 128], strides = [1, 1]} : vector<8x512xf32> to vector<8x128xf32>
    %130 = math.tanh %129 : vector<8x128xf32>
    %131 = arith.mulf %127, %113 : vector<8x128xf32>
    %132 = arith.mulf %126, %130 : vector<8x128xf32>
    %133 = arith.addf %131, %132 : vector<8x128xf32>
    %134 = math.tanh %133 : vector<8x128xf32>
    %135 = arith.mulf %128, %134 : vector<8x128xf32>
    %c48 = arith.constant 48 : index
    %c0_51 = arith.constant 0 : index
    %136 = vector.load %arg11[%c48, %c0_51] : memref<64x512xf32, #tpu.memory_space<vmem>>, vector<8x512xf32>
    %c0_52 = arith.constant 0 : index
    %c0_53 = arith.constant 0 : index
    %137 = vector.load %arg3[%c0_52, %c0_53] : memref<128x512xf32, #tpu.memory_space<vmem>>, vector<128x512xf32>
    %cst_54 = arith.constant dense<0.000000e+00> : vector<8x512xf32>
    %138 = tpu.matmul %135, %137, %cst_54 {dimension_numbers = #tpu.dot_dimension_numbers<[1], [0], [0], [1], [0, 0, 1, 1], [], []>} : vector<8x128xf32>, vector<128x512xf32>, vector<8x512xf32> -> vector<8x512xf32>
    %139 = arith.addf %138, %136 : vector<8x512xf32>
    %140 = vector.extract_strided_slice %139 {offsets = [0, 0], sizes = [8, 384], strides = [1, 1]} : vector<8x512xf32> to vector<8x384xf32>
    %141 = arith.negf %140 : vector<8x384xf32>
    %142 = math.exp %141 : vector<8x384xf32>
    %cst_55 = arith.constant 1.000000e+00 : f32
    %143 = vector.broadcast %cst_55 : f32 to vector<8x384xf32>
    %144 = arith.addf %143, %142 : vector<8x384xf32>
    %145 = arith.divf %143, %144 : vector<8x384xf32>
    %146 = vector.extract_strided_slice %145 {offsets = [0, 0], sizes = [8, 128], strides = [1, 1]} : vector<8x384xf32> to vector<8x128xf32>
    %147 = vector.extract_strided_slice %145 {offsets = [0, 128], sizes = [8, 128], strides = [1, 1]} : vector<8x384xf32> to vector<8x128xf32>
    %148 = vector.extract_strided_slice %145 {offsets = [0, 256], sizes = [8, 128], strides = [1, 1]} : vector<8x384xf32> to vector<8x128xf32>
    %149 = vector.extract_strided_slice %139 {offsets = [0, 384], sizes = [8, 128], strides = [1, 1]} : vector<8x512xf32> to vector<8x128xf32>
    %150 = math.tanh %149 : vector<8x128xf32>
    %151 = arith.mulf %147, %133 : vector<8x128xf32>
    %152 = arith.mulf %146, %150 : vector<8x128xf32>
    %153 = arith.addf %151, %152 : vector<8x128xf32>
    %154 = math.tanh %153 : vector<8x128xf32>
    %155 = arith.mulf %148, %154 : vector<8x128xf32>
    %c56 = arith.constant 56 : index
    %c0_56 = arith.constant 0 : index
    %156 = vector.load %arg11[%c56, %c0_56] : memref<64x512xf32, #tpu.memory_space<vmem>>, vector<8x512xf32>
    %c0_57 = arith.constant 0 : index
    %c0_58 = arith.constant 0 : index
    %157 = vector.load %arg3[%c0_57, %c0_58] : memref<128x512xf32, #tpu.memory_space<vmem>>, vector<128x512xf32>
    %cst_59 = arith.constant dense<0.000000e+00> : vector<8x512xf32>
    %158 = tpu.matmul %155, %157, %cst_59 {dimension_numbers = #tpu.dot_dimension_numbers<[1], [0], [0], [1], [0, 0, 1, 1], [], []>} : vector<8x128xf32>, vector<128x512xf32>, vector<8x512xf32> -> vector<8x512xf32>
    %159 = arith.addf %158, %156 : vector<8x512xf32>
    %160 = vector.extract_strided_slice %159 {offsets = [0, 0], sizes = [8, 384], strides = [1, 1]} : vector<8x512xf32> to vector<8x384xf32>
    %161 = arith.negf %160 : vector<8x384xf32>
    %162 = math.exp %161 : vector<8x384xf32>
    %cst_60 = arith.constant 1.000000e+00 : f32
    %163 = vector.broadcast %cst_60 : f32 to vector<8x384xf32>
    %164 = arith.addf %163, %162 : vector<8x384xf32>
    %165 = arith.divf %163, %164 : vector<8x384xf32>
    %166 = vector.extract_strided_slice %165 {offsets = [0, 0], sizes = [8, 128], strides = [1, 1]} : vector<8x384xf32> to vector<8x128xf32>
    %167 = vector.extract_strided_slice %165 {offsets = [0, 128], sizes = [8, 128], strides = [1, 1]} : vector<8x384xf32> to vector<8x128xf32>
    %168 = vector.extract_strided_slice %165 {offsets = [0, 256], sizes = [8, 128], strides = [1, 1]} : vector<8x384xf32> to vector<8x128xf32>
    %169 = vector.extract_strided_slice %159 {offsets = [0, 384], sizes = [8, 128], strides = [1, 1]} : vector<8x512xf32> to vector<8x128xf32>
    %170 = math.tanh %169 : vector<8x128xf32>
    %171 = arith.mulf %167, %153 : vector<8x128xf32>
    %172 = arith.mulf %166, %170 : vector<8x128xf32>
    %173 = arith.addf %171, %172 : vector<8x128xf32>
    %174 = math.tanh %173 : vector<8x128xf32>
    %175 = arith.mulf %168, %174 : vector<8x128xf32>
    %176 = vector.extract_strided_slice %175 {offsets = [0, 0], sizes = [8, 64], strides = [1, 1]} : vector<8x128xf32> to vector<8x64xf32>
    %177 = vector.extract_strided_slice %175 {offsets = [0, 64], sizes = [8, 64], strides = [1, 1]} : vector<8x128xf32> to vector<8x64xf32>
    %178 = vector.extract_strided_slice %173 {offsets = [0, 64], sizes = [8, 64], strides = [1, 1]} : vector<8x128xf32> to vector<8x64xf32>
    %c0_61 = arith.constant 0 : index
    %c0_62 = arith.constant 0 : index
    %179 = vector.load %arg12[%c0_61, %c0_62] : memref<64x256xf32, #tpu.memory_space<vmem>>, vector<8x256xf32>
    %c0_63 = arith.constant 0 : index
    %c0_64 = arith.constant 0 : index
    %180 = vector.load %arg6[%c0_63, %c0_64] : memref<64x256xf32, #tpu.memory_space<vmem>>, vector<64x256xf32>
    %cst_65 = arith.constant dense<0.000000e+00> : vector<8x256xf32>
    %181 = tpu.matmul %177, %180, %cst_65 {dimension_numbers = #tpu.dot_dimension_numbers<[1], [0], [0], [1], [0, 0, 1, 1], [], []>} : vector<8x64xf32>, vector<64x256xf32>, vector<8x256xf32> -> vector<8x256xf32>
    %182 = arith.addf %181, %179 : vector<8x256xf32>
    %183 = vector.extract_strided_slice %182 {offsets = [0, 0], sizes = [8, 192], strides = [1, 1]} : vector<8x256xf32> to vector<8x192xf32>
    %184 = arith.negf %183 : vector<8x192xf32>
    %185 = math.exp %184 : vector<8x192xf32>
    %cst_66 = arith.constant 1.000000e+00 : f32
    %186 = vector.broadcast %cst_66 : f32 to vector<8x192xf32>
    %187 = arith.addf %186, %185 : vector<8x192xf32>
    %188 = arith.divf %186, %187 : vector<8x192xf32>
    %189 = vector.extract_strided_slice %188 {offsets = [0, 0], sizes = [8, 64], strides = [1, 1]} : vector<8x192xf32> to vector<8x64xf32>
    %190 = vector.extract_strided_slice %188 {offsets = [0, 64], sizes = [8, 64], strides = [1, 1]} : vector<8x192xf32> to vector<8x64xf32>
    %191 = vector.extract_strided_slice %188 {offsets = [0, 128], sizes = [8, 64], strides = [1, 1]} : vector<8x192xf32> to vector<8x64xf32>
    %192 = vector.extract_strided_slice %182 {offsets = [0, 192], sizes = [8, 64], strides = [1, 1]} : vector<8x256xf32> to vector<8x64xf32>
    %193 = math.tanh %192 : vector<8x64xf32>
    %194 = arith.mulf %190, %178 : vector<8x64xf32>
    %195 = arith.mulf %189, %193 : vector<8x64xf32>
    %196 = arith.addf %194, %195 : vector<8x64xf32>
    %197 = math.tanh %196 : vector<8x64xf32>
    %198 = arith.mulf %191, %197 : vector<8x64xf32>
    %c8_67 = arith.constant 8 : index
    %c0_68 = arith.constant 0 : index
    %199 = vector.load %arg12[%c8_67, %c0_68] : memref<64x256xf32, #tpu.memory_space<vmem>>, vector<8x256xf32>
    %c0_69 = arith.constant 0 : index
    %c0_70 = arith.constant 0 : index
    %200 = vector.load %arg6[%c0_69, %c0_70] : memref<64x256xf32, #tpu.memory_space<vmem>>, vector<64x256xf32>
    %cst_71 = arith.constant dense<0.000000e+00> : vector<8x256xf32>
    %201 = tpu.matmul %198, %200, %cst_71 {dimension_numbers = #tpu.dot_dimension_numbers<[1], [0], [0], [1], [0, 0, 1, 1], [], []>} : vector<8x64xf32>, vector<64x256xf32>, vector<8x256xf32> -> vector<8x256xf32>
    %202 = arith.addf %201, %199 : vector<8x256xf32>
    %203 = vector.extract_strided_slice %202 {offsets = [0, 0], sizes = [8, 192], strides = [1, 1]} : vector<8x256xf32> to vector<8x192xf32>
    %204 = arith.negf %203 : vector<8x192xf32>
    %205 = math.exp %204 : vector<8x192xf32>
    %cst_72 = arith.constant 1.000000e+00 : f32
    %206 = vector.broadcast %cst_72 : f32 to vector<8x192xf32>
    %207 = arith.addf %206, %205 : vector<8x192xf32>
    %208 = arith.divf %206, %207 : vector<8x192xf32>
    %209 = vector.extract_strided_slice %208 {offsets = [0, 0], sizes = [8, 64], strides = [1, 1]} : vector<8x192xf32> to vector<8x64xf32>
    %210 = vector.extract_strided_slice %208 {offsets = [0, 64], sizes = [8, 64], strides = [1, 1]} : vector<8x192xf32> to vector<8x64xf32>
    %211 = vector.extract_strided_slice %208 {offsets = [0, 128], sizes = [8, 64], strides = [1, 1]} : vector<8x192xf32> to vector<8x64xf32>
    %212 = vector.extract_strided_slice %202 {offsets = [0, 192], sizes = [8, 64], strides = [1, 1]} : vector<8x256xf32> to vector<8x64xf32>
    %213 = math.tanh %212 : vector<8x64xf32>
    %214 = arith.mulf %210, %196 : vector<8x64xf32>
    %215 = arith.mulf %209, %213 : vector<8x64xf32>
    %216 = arith.addf %214, %215 : vector<8x64xf32>
    %217 = math.tanh %216 : vector<8x64xf32>
    %218 = arith.mulf %211, %217 : vector<8x64xf32>
    %c16_73 = arith.constant 16 : index
    %c0_74 = arith.constant 0 : index
    %219 = vector.load %arg12[%c16_73, %c0_74] : memref<64x256xf32, #tpu.memory_space<vmem>>, vector<8x256xf32>
    %c0_75 = arith.constant 0 : index
    %c0_76 = arith.constant 0 : index
    %220 = vector.load %arg6[%c0_75, %c0_76] : memref<64x256xf32, #tpu.memory_space<vmem>>, vector<64x256xf32>
    %cst_77 = arith.constant dense<0.000000e+00> : vector<8x256xf32>
    %221 = tpu.matmul %218, %220, %cst_77 {dimension_numbers = #tpu.dot_dimension_numbers<[1], [0], [0], [1], [0, 0, 1, 1], [], []>} : vector<8x64xf32>, vector<64x256xf32>, vector<8x256xf32> -> vector<8x256xf32>
    %222 = arith.addf %221, %219 : vector<8x256xf32>
    %223 = vector.extract_strided_slice %222 {offsets = [0, 0], sizes = [8, 192], strides = [1, 1]} : vector<8x256xf32> to vector<8x192xf32>
    %224 = arith.negf %223 : vector<8x192xf32>
    %225 = math.exp %224 : vector<8x192xf32>
    %cst_78 = arith.constant 1.000000e+00 : f32
    %226 = vector.broadcast %cst_78 : f32 to vector<8x192xf32>
    %227 = arith.addf %226, %225 : vector<8x192xf32>
    %228 = arith.divf %226, %227 : vector<8x192xf32>
    %229 = vector.extract_strided_slice %228 {offsets = [0, 0], sizes = [8, 64], strides = [1, 1]} : vector<8x192xf32> to vector<8x64xf32>
    %230 = vector.extract_strided_slice %228 {offsets = [0, 64], sizes = [8, 64], strides = [1, 1]} : vector<8x192xf32> to vector<8x64xf32>
    %231 = vector.extract_strided_slice %228 {offsets = [0, 128], sizes = [8, 64], strides = [1, 1]} : vector<8x192xf32> to vector<8x64xf32>
    %232 = vector.extract_strided_slice %222 {offsets = [0, 192], sizes = [8, 64], strides = [1, 1]} : vector<8x256xf32> to vector<8x64xf32>
    %233 = math.tanh %232 : vector<8x64xf32>
    %234 = arith.mulf %230, %216 : vector<8x64xf32>
    %235 = arith.mulf %229, %233 : vector<8x64xf32>
    %236 = arith.addf %234, %235 : vector<8x64xf32>
    %237 = math.tanh %236 : vector<8x64xf32>
    %238 = arith.mulf %231, %237 : vector<8x64xf32>
    %c24_79 = arith.constant 24 : index
    %c0_80 = arith.constant 0 : index
    %239 = vector.load %arg12[%c24_79, %c0_80] : memref<64x256xf32, #tpu.memory_space<vmem>>, vector<8x256xf32>
    %c0_81 = arith.constant 0 : index
    %c0_82 = arith.constant 0 : index
    %240 = vector.load %arg6[%c0_81, %c0_82] : memref<64x256xf32, #tpu.memory_space<vmem>>, vector<64x256xf32>
    %cst_83 = arith.constant dense<0.000000e+00> : vector<8x256xf32>
    %241 = tpu.matmul %238, %240, %cst_83 {dimension_numbers = #tpu.dot_dimension_numbers<[1], [0], [0], [1], [0, 0, 1, 1], [], []>} : vector<8x64xf32>, vector<64x256xf32>, vector<8x256xf32> -> vector<8x256xf32>
    %242 = arith.addf %241, %239 : vector<8x256xf32>
    %243 = vector.extract_strided_slice %242 {offsets = [0, 0], sizes = [8, 192], strides = [1, 1]} : vector<8x256xf32> to vector<8x192xf32>
    %244 = arith.negf %243 : vector<8x192xf32>
    %245 = math.exp %244 : vector<8x192xf32>
    %cst_84 = arith.constant 1.000000e+00 : f32
    %246 = vector.broadcast %cst_84 : f32 to vector<8x192xf32>
    %247 = arith.addf %246, %245 : vector<8x192xf32>
    %248 = arith.divf %246, %247 : vector<8x192xf32>
    %249 = vector.extract_strided_slice %248 {offsets = [0, 0], sizes = [8, 64], strides = [1, 1]} : vector<8x192xf32> to vector<8x64xf32>
    %250 = vector.extract_strided_slice %248 {offsets = [0, 64], sizes = [8, 64], strides = [1, 1]} : vector<8x192xf32> to vector<8x64xf32>
    %251 = vector.extract_strided_slice %248 {offsets = [0, 128], sizes = [8, 64], strides = [1, 1]} : vector<8x192xf32> to vector<8x64xf32>
    %252 = vector.extract_strided_slice %242 {offsets = [0, 192], sizes = [8, 64], strides = [1, 1]} : vector<8x256xf32> to vector<8x64xf32>
    %253 = math.tanh %252 : vector<8x64xf32>
    %254 = arith.mulf %250, %236 : vector<8x64xf32>
    %255 = arith.mulf %249, %253 : vector<8x64xf32>
    %256 = arith.addf %254, %255 : vector<8x64xf32>
    %257 = math.tanh %256 : vector<8x64xf32>
    %258 = arith.mulf %251, %257 : vector<8x64xf32>
    %c32_85 = arith.constant 32 : index
    %c0_86 = arith.constant 0 : index
    %259 = vector.load %arg12[%c32_85, %c0_86] : memref<64x256xf32, #tpu.memory_space<vmem>>, vector<8x256xf32>
    %c0_87 = arith.constant 0 : index
    %c0_88 = arith.constant 0 : index
    %260 = vector.load %arg6[%c0_87, %c0_88] : memref<64x256xf32, #tpu.memory_space<vmem>>, vector<64x256xf32>
    %cst_89 = arith.constant dense<0.000000e+00> : vector<8x256xf32>
    %261 = tpu.matmul %258, %260, %cst_89 {dimension_numbers = #tpu.dot_dimension_numbers<[1], [0], [0], [1], [0, 0, 1, 1], [], []>} : vector<8x64xf32>, vector<64x256xf32>, vector<8x256xf32> -> vector<8x256xf32>
    %262 = arith.addf %261, %259 : vector<8x256xf32>
    %263 = vector.extract_strided_slice %262 {offsets = [0, 0], sizes = [8, 192], strides = [1, 1]} : vector<8x256xf32> to vector<8x192xf32>
    %264 = arith.negf %263 : vector<8x192xf32>
    %265 = math.exp %264 : vector<8x192xf32>
    %cst_90 = arith.constant 1.000000e+00 : f32
    %266 = vector.broadcast %cst_90 : f32 to vector<8x192xf32>
    %267 = arith.addf %266, %265 : vector<8x192xf32>
    %268 = arith.divf %266, %267 : vector<8x192xf32>
    %269 = vector.extract_strided_slice %268 {offsets = [0, 0], sizes = [8, 64], strides = [1, 1]} : vector<8x192xf32> to vector<8x64xf32>
    %270 = vector.extract_strided_slice %268 {offsets = [0, 64], sizes = [8, 64], strides = [1, 1]} : vector<8x192xf32> to vector<8x64xf32>
    %271 = vector.extract_strided_slice %268 {offsets = [0, 128], sizes = [8, 64], strides = [1, 1]} : vector<8x192xf32> to vector<8x64xf32>
    %272 = vector.extract_strided_slice %262 {offsets = [0, 192], sizes = [8, 64], strides = [1, 1]} : vector<8x256xf32> to vector<8x64xf32>
    %273 = math.tanh %272 : vector<8x64xf32>
    %274 = arith.mulf %270, %256 : vector<8x64xf32>
    %275 = arith.mulf %269, %273 : vector<8x64xf32>
    %276 = arith.addf %274, %275 : vector<8x64xf32>
    %277 = math.tanh %276 : vector<8x64xf32>
    %278 = arith.mulf %271, %277 : vector<8x64xf32>
    %c40_91 = arith.constant 40 : index
    %c0_92 = arith.constant 0 : index
    %279 = vector.load %arg12[%c40_91, %c0_92] : memref<64x256xf32, #tpu.memory_space<vmem>>, vector<8x256xf32>
    %c0_93 = arith.constant 0 : index
    %c0_94 = arith.constant 0 : index
    %280 = vector.load %arg6[%c0_93, %c0_94] : memref<64x256xf32, #tpu.memory_space<vmem>>, vector<64x256xf32>
    %cst_95 = arith.constant dense<0.000000e+00> : vector<8x256xf32>
    %281 = tpu.matmul %278, %280, %cst_95 {dimension_numbers = #tpu.dot_dimension_numbers<[1], [0], [0], [1], [0, 0, 1, 1], [], []>} : vector<8x64xf32>, vector<64x256xf32>, vector<8x256xf32> -> vector<8x256xf32>
    %282 = arith.addf %281, %279 : vector<8x256xf32>
    %283 = vector.extract_strided_slice %282 {offsets = [0, 0], sizes = [8, 192], strides = [1, 1]} : vector<8x256xf32> to vector<8x192xf32>
    %284 = arith.negf %283 : vector<8x192xf32>
    %285 = math.exp %284 : vector<8x192xf32>
    %cst_96 = arith.constant 1.000000e+00 : f32
    %286 = vector.broadcast %cst_96 : f32 to vector<8x192xf32>
    %287 = arith.addf %286, %285 : vector<8x192xf32>
    %288 = arith.divf %286, %287 : vector<8x192xf32>
    %289 = vector.extract_strided_slice %288 {offsets = [0, 0], sizes = [8, 64], strides = [1, 1]} : vector<8x192xf32> to vector<8x64xf32>
    %290 = vector.extract_strided_slice %288 {offsets = [0, 64], sizes = [8, 64], strides = [1, 1]} : vector<8x192xf32> to vector<8x64xf32>
    %291 = vector.extract_strided_slice %288 {offsets = [0, 128], sizes = [8, 64], strides = [1, 1]} : vector<8x192xf32> to vector<8x64xf32>
    %292 = vector.extract_strided_slice %282 {offsets = [0, 192], sizes = [8, 64], strides = [1, 1]} : vector<8x256xf32> to vector<8x64xf32>
    %293 = math.tanh %292 : vector<8x64xf32>
    %294 = arith.mulf %290, %276 : vector<8x64xf32>
    %295 = arith.mulf %289, %293 : vector<8x64xf32>
    %296 = arith.addf %294, %295 : vector<8x64xf32>
    %297 = math.tanh %296 : vector<8x64xf32>
    %298 = arith.mulf %291, %297 : vector<8x64xf32>
    %c48_97 = arith.constant 48 : index
    %c0_98 = arith.constant 0 : index
    %299 = vector.load %arg12[%c48_97, %c0_98] : memref<64x256xf32, #tpu.memory_space<vmem>>, vector<8x256xf32>
    %c0_99 = arith.constant 0 : index
    %c0_100 = arith.constant 0 : index
    %300 = vector.load %arg6[%c0_99, %c0_100] : memref<64x256xf32, #tpu.memory_space<vmem>>, vector<64x256xf32>
    %cst_101 = arith.constant dense<0.000000e+00> : vector<8x256xf32>
    %301 = tpu.matmul %298, %300, %cst_101 {dimension_numbers = #tpu.dot_dimension_numbers<[1], [0], [0], [1], [0, 0, 1, 1], [], []>} : vector<8x64xf32>, vector<64x256xf32>, vector<8x256xf32> -> vector<8x256xf32>
    %302 = arith.addf %301, %299 : vector<8x256xf32>
    %303 = vector.extract_strided_slice %302 {offsets = [0, 0], sizes = [8, 192], strides = [1, 1]} : vector<8x256xf32> to vector<8x192xf32>
    %304 = arith.negf %303 : vector<8x192xf32>
    %305 = math.exp %304 : vector<8x192xf32>
    %cst_102 = arith.constant 1.000000e+00 : f32
    %306 = vector.broadcast %cst_102 : f32 to vector<8x192xf32>
    %307 = arith.addf %306, %305 : vector<8x192xf32>
    %308 = arith.divf %306, %307 : vector<8x192xf32>
    %309 = vector.extract_strided_slice %308 {offsets = [0, 0], sizes = [8, 64], strides = [1, 1]} : vector<8x192xf32> to vector<8x64xf32>
    %310 = vector.extract_strided_slice %308 {offsets = [0, 64], sizes = [8, 64], strides = [1, 1]} : vector<8x192xf32> to vector<8x64xf32>
    %311 = vector.extract_strided_slice %308 {offsets = [0, 128], sizes = [8, 64], strides = [1, 1]} : vector<8x192xf32> to vector<8x64xf32>
    %312 = vector.extract_strided_slice %302 {offsets = [0, 192], sizes = [8, 64], strides = [1, 1]} : vector<8x256xf32> to vector<8x64xf32>
    %313 = math.tanh %312 : vector<8x64xf32>
    %314 = arith.mulf %310, %296 : vector<8x64xf32>
    %315 = arith.mulf %309, %313 : vector<8x64xf32>
    %316 = arith.addf %314, %315 : vector<8x64xf32>
    %317 = math.tanh %316 : vector<8x64xf32>
    %318 = arith.mulf %311, %317 : vector<8x64xf32>
    %c56_103 = arith.constant 56 : index
    %c0_104 = arith.constant 0 : index
    %319 = vector.load %arg12[%c56_103, %c0_104] : memref<64x256xf32, #tpu.memory_space<vmem>>, vector<8x256xf32>
    %c0_105 = arith.constant 0 : index
    %c0_106 = arith.constant 0 : index
    %320 = vector.load %arg6[%c0_105, %c0_106] : memref<64x256xf32, #tpu.memory_space<vmem>>, vector<64x256xf32>
    %cst_107 = arith.constant dense<0.000000e+00> : vector<8x256xf32>
    %321 = tpu.matmul %318, %320, %cst_107 {dimension_numbers = #tpu.dot_dimension_numbers<[1], [0], [0], [1], [0, 0, 1, 1], [], []>} : vector<8x64xf32>, vector<64x256xf32>, vector<8x256xf32> -> vector<8x256xf32>
    %322 = arith.addf %321, %319 : vector<8x256xf32>
    %323 = vector.extract_strided_slice %322 {offsets = [0, 0], sizes = [8, 192], strides = [1, 1]} : vector<8x256xf32> to vector<8x192xf32>
    %324 = arith.negf %323 : vector<8x192xf32>
    %325 = math.exp %324 : vector<8x192xf32>
    %cst_108 = arith.constant 1.000000e+00 : f32
    %326 = vector.broadcast %cst_108 : f32 to vector<8x192xf32>
    %327 = arith.addf %326, %325 : vector<8x192xf32>
    %328 = arith.divf %326, %327 : vector<8x192xf32>
    %329 = vector.extract_strided_slice %328 {offsets = [0, 0], sizes = [8, 64], strides = [1, 1]} : vector<8x192xf32> to vector<8x64xf32>
    %330 = vector.extract_strided_slice %328 {offsets = [0, 64], sizes = [8, 64], strides = [1, 1]} : vector<8x192xf32> to vector<8x64xf32>
    %331 = vector.extract_strided_slice %328 {offsets = [0, 128], sizes = [8, 64], strides = [1, 1]} : vector<8x192xf32> to vector<8x64xf32>
    %332 = vector.extract_strided_slice %322 {offsets = [0, 192], sizes = [8, 64], strides = [1, 1]} : vector<8x256xf32> to vector<8x64xf32>
    %333 = math.tanh %332 : vector<8x64xf32>
    %334 = arith.mulf %330, %316 : vector<8x64xf32>
    %335 = arith.mulf %329, %333 : vector<8x64xf32>
    %336 = arith.addf %334, %335 : vector<8x64xf32>
    %337 = math.tanh %336 : vector<8x64xf32>
    %338 = arith.mulf %331, %337 : vector<8x64xf32>
    %339 = tpu.concatenate %176, %338 in 1 : vector<8x64xf32>, vector<8x64xf32> -> vector<8x128xf32>
    %c0_109 = arith.constant 0 : index
    %c0_110 = arith.constant 0 : index
    %340 = vector.load %arg10[%c0_109, %c0_110] : memref<8x128xf32, #tpu.memory_space<vmem>>, vector<8x128xf32>
    tpu.vector_store %arg10[%c0_109, %c0_110], %339 {strides = array<i32>} : memref<8x128xf32, #tpu.memory_space<vmem>>, vector<8x128xf32>,
    return
  }
}

</mosaic_0001>

<bundles_post_ra>
// kernel: reverse
= control target key start
LH: loop header
LB: loop body
LE: loop exit
PB: predicated region body
PF: predicated region fallthrough
CT: control target
= control target key end

     0   :  { %s104_s0 = inlined_call_operand.vmem [shape: f32[8,8,8], index: 0, kind: input, shape index: {}]   ;;  %s105_s1 = inlined_call_operand.vmem [shape: f32[8,8,8], index: 1, kind: output, shape index: {}]  }
   0x1   :  { %v32_v0 = vld [vmem:[%s104_s0 + $0x38] sm:$0xff]  ;;  %v33_v1 = vld [vmem:[%s104_s0 + $0x30] sm:$0xff]  ;;  %v35_v2 = vld [vmem:[%s104_s0 + $0x28] sm:$0xff] }
   0x2   :  { %4 = vst [vmem:[%s105_s1] sm:$0xff] %v32_v0  ;;  %v37_v3 = vld [vmem:[%s104_s0 + $0x20] sm:$0xff]  ;;  %v39_v4 = vld [vmem:[%s104_s0 + $0x18] sm:$0xff]  ;;  %v41_v5 = vld [vmem:[%s104_s0 + $0x10] sm:$0xff] }
   0x3   :  { %34 = vst [vmem:[%s105_s1 + $0x8] sm:$0xff] %v33_v1  ;;  %v43_v6 = vld [vmem:[%s104_s0 + $0x8] sm:$0xff]  ;;  %v29_v7 = vld [vmem:[%s104_s0] sm:$0xff] }
   0x4   :  { %36 = vst [vmem:[%s105_s1 + $0x10] sm:$0xff] %v35_v2 }
   0x5   :  { %38 = vst [vmem:[%s105_s1 + $0x18] sm:$0xff] %v37_v3 }
   0x6   :  { %40 = vst [vmem:[%s105_s1 + $0x20] sm:$0xff] %v39_v4 }
   0x7   :  { %42 = vst [vmem:[%s105_s1 + $0x28] sm:$0xff] %v41_v5 }
   0x8   :  { %44 = vst [vmem:[%s105_s1 + $0x30] sm:$0xff] %v43_v6 }
   0x9   :  { %45 = vst [vmem:[%s105_s1 + $0x38] sm:$0xff] %v29_v7 }

// kernel: four_directional_lstm.1
= control target key start
LH: loop header
LB: loop body
LE: loop exit
PB: predicated region body
PF: predicated region fallthrough
CT: control target
= control target key end

     0   :  { %vm77_vm0 = vcmask 392192   ;;  %vm316_vm1 = vcmask 130048   ;;  %s4885_s2 = inlined_call_operand.vmem [shape: f32[48,512], index: 2, kind: input, shape index: {}]   ;;  %s4886_s0 = inlined_call_operand.vmem [shape: f32[64,48], index: 0, kind: input, shape index: {}]   ;;  %s4887_s3 = inlined_call_operand.vmem [shape: f32[128,512], index: 3, kind: input, shape index: {}]   ;;  %s4888_s5 = inlined_call_operand.vmem [shape: f32[16,256], index: 5, kind: input, shape index: {}]   ;;  %s4889_s8 = inlined_call_operand.vmem [shape: f32[8,128], index: 8, kind: input, shape index: {}]   ;;  %s4890_s4 = inlined_call_operand.vmem [shape: f32[1,512], index: 4, kind: input, shape index: {}]   ;;  %s4891_s1 = inlined_call_operand.vmem [shape: f32[64,16], index: 1, kind: input, shape index: {}]   ;;  %s4892_s9 = inlined_call_operand.vmem [shape: f32[8,128], index: 9, kind: input, shape index: {}]   ;;  %s4893_s7 = inlined_call_operand.vmem [shape: f32[1,256], index: 7, kind: input, shape index: {}]   ;;  %s4894_s6 = inlined_call_operand.vmem [shape: f32[64,256], index: 6, kind: input, shape index: {}]   ;;  %s4895_s10 = inlined_call_operand.vmem [shape: f32[8,128], index: 10, kind: output, shape index: {}]  }
   0x1   :  { %v65_v0 = vld [vmem:[%s4885_s2 + $0xb0] sm:$0xff]  ;;  %v66_v1 = vld [vmem:[%s4885_s2 + $0xb8] sm:$0xff]  ;;  %v3006_v12 = vld [vmem:[%s4886_s0] sm:$0xff] }
   0x2   :  { %v61_v2 = vld [vmem:[%s4885_s2 + $0x90] sm:$0xff]  ;;  %194 = vmatpush.msra.mxu2 %v65_v0  ;;  %235 = vmatpush.msra.mxu3 %v66_v1  ;;  %v62_v3 = vld [vmem:[%s4885_s2 + $0x98] sm:$0xff]  ;;  %v3011_v13 = vld [vmem:[%s4887_s3 + $0x1e0] sm:$0xff] }
   0x3   :  { %v57_v4 = vld [vmem:[%s4885_s2 + $0x70] sm:$0xff]  ;;  %v58_v5 = vld [vmem:[%s4885_s2 + $0x78] sm:$0xff]  ;;  %v3016_v14 = vld [vmem:[%s4887_s3 + $0x1e8] sm:$0xff] }
   0x4   :  { %195 = vmatpush.msra.mxu2 %v61_v2  ;;  %236 = vmatpush.msra.mxu3 %v62_v3  ;;  %v53_v6 = vld [vmem:[%s4885_s2 + $0x50] sm:$0xff]  ;;  %v54_v7 = vld [vmem:[%s4885_s2 + $0x58] sm:$0xff]  ;;  %v3025_v15 = vld [vmem:[%s4887_s3 + $0x1c0] sm:$0xff] }
   0x5   :  { %v49_v8 = vld [vmem:[%s4885_s2 + $0x30] sm:$0xff]  ;;  %v50_v9 = vld [vmem:[%s4885_s2 + $0x38] sm:$0xff]  ;;  %v3030_v16 = vld [vmem:[%s4887_s3 + $0x1c8] sm:$0xff] }
   0x6   :  { %196 = vmatpush.msra.mxu2 %v57_v4  ;;  %237 = vmatpush.msra.mxu3 %v58_v5  ;;  %v45_v10 = vld [vmem:[%s4885_s2 + $0x10] sm:$0xff]  ;;  %v46_v11 = vld [vmem:[%s4885_s2 + $0x18] sm:$0xff]  ;;  %v3037_v17 = vld [vmem:[%s4887_s3 + $0x1a0] sm:$0xff] }
   0x7   :  { %v3042_v18 = vld [vmem:[%s4887_s3 + $0x1a8] sm:$0xff]  ;;  %v3049_v19 = vld [vmem:[%s4887_s3 + $0x180] sm:$0xff]  ;;  %v3116_v30 = vld [vmem:[%s4886_s0 + $0x10] sm:$0xff] }
   0x8   :  { %197 = vmatpush.msra.mxu2 %v53_v6  ;;  %238 = vmatpush.msra.mxu3 %v54_v7  ;;  %v3054_v20 = vld [vmem:[%s4887_s3 + $0x188] sm:$0xff]  ;;  %v3066_v22 = vld [vmem:[%s4887_s3 + $0x160] sm:$0xff]  ;;  %v3173_v39 = vld [vmem:[%s4886_s0 + $0x18] sm:$0xff] }
   0x9   :  { %v3059_v21 = vld [vmem:[%s4886_s0 + $0x8] sm:$0xff]  ;;  %v3082_v24 = vld [vmem:[%s4887_s3 + $0x140] sm:$0xff]  ;;  %v3255_v55 = vld [vmem:[%s4887_s3 + $0x1f0] sm:$0xff] }
   0xa   :  { %198 = vmatpush.msra.mxu2 %v49_v8  ;;  %239 = vmatpush.msra.mxu3 %v50_v9  ;;  %v3071_v23 = vld [vmem:[%s4887_s3 + $0x168] sm:$0xff]  ;;  %v3094_v26 = vld [vmem:[%s4887_s3 + $0x120] sm:$0xff]  ;;  %v3260_v56 = vld [vmem:[%s4887_s3 + $0x1f8] sm:$0xff] }
   0xb   :  { %v3087_v25 = vld [vmem:[%s4887_s3 + $0x148] sm:$0xff]  ;;  %v3106_v28 = vld [vmem:[%s4887_s3 + $0x100] sm:$0xff]  ;;  %v3277_v59 = vld [vmem:[%s4887_s3 + $0x1d0] sm:$0xff] }
   0xc   :  { %199 = vmatpush.msra.mxu2 %v45_v10  ;;  %240 = vmatpush.msra.mxu3 %v46_v11  ;;  %v3099_v27 = vld [vmem:[%s4887_s3 + $0x128] sm:$0xff]  ;;  %v3123_v31 = vld [vmem:[%s4887_s3 + $0xe0] sm:$0xff]  ;;  %v3282_v60 = vld [vmem:[%s4887_s3 + $0x1d8] sm:$0xff] }
   0xd   :  { %2534 = vmatmul.msk.f32.vlgmr.msra.gmra.mxu2 %vm77_vm0, %v3006_v12  ;;  %2542 = vmatmul.msk.f32.vlgmr.msra.gmra.mxu3 %vm77_vm0, %v3006_v12  ;;  %v3111_v29 = vld [vmem:[%s4887_s3 + $0x108] sm:$0xff]  ;;  %v3139_v33 = vld [vmem:[%s4887_s3 + $0xc0] sm:$0xff]  ;;  %v3295_v63 = vld [vmem:[%s4887_s3 + $0x1b0] sm:$0xff] }
   0xe   :  { %509 = vmatpush.msrb.mxu2 %v3011_v13  ;;  %529 = vmatpush.msrb.mxu3 %v3016_v14  ;;  %v3128_v32 = vld [vmem:[%s4887_s3 + $0xe8] sm:$0xff]  ;;  %v3151_v35 = vld [vmem:[%s4887_s3 + $0xa0] sm:$0xff]  ;;  %v3300_v0 = vld [vmem:[%s4887_s3 + $0x1b8] sm:$0xff] }
   0xf   :  { %v3144_v34 = vld [vmem:[%s4887_s3 + $0xc8] sm:$0xff]  ;;  %4994 = vst [vmem:[#allocation4_spill] sm:$0xff] %v3151_v35  ;;  %v3163_v37 = vld [vmem:[%s4887_s3 + $0x80] sm:$0xff]  ;;  %v3313_v3 = vld [vmem:[%s4887_s3 + $0x190] sm:$0xff] }
  0x10   :  { %510 = vmatpush.msrb.mxu2 %v3025_v15  ;;  %530 = vmatpush.msrb.mxu3 %v3030_v16  ;;  %v3156_v36 = vld [vmem:[%s4887_s3 + $0xa8] sm:$0xff]  ;;  %4996 = vst [vmem:[#allocation6_spill] sm:$0xff] %v3163_v37  ;;  %v3180_v40 = vld [vmem:[%s4887_s3 + $0x60] sm:$0xff]  ;;  %v3318_v4 = vld [vmem:[%s4887_s3 + $0x198] sm:$0xff] }
  0x11   :  { %4995 = vst [vmem:[#allocation5_spill] sm:$0xff] %v3156_v36  ;;  %v3168_v38 = vld [vmem:[%s4887_s3 + $0x88] sm:$0xff]  ;;  %v3192_v42 = vld [vmem:[%s4887_s3 + $0x40] sm:$0xff]  ;;  %v3330_v6 = vld [vmem:[%s4887_s3 + $0x170] sm:$0xff] }
  0x12   :  { %511 = vmatpush.msrb.mxu2 %v3037_v17  ;;  %531 = vmatpush.msrb.mxu3 %v3042_v18  ;;  %4997 = vst [vmem:[#allocation7_spill] sm:$0xff] %v3168_v38  ;;  %v3185_v41 = vld [vmem:[%s4887_s3 + $0x68] sm:$0xff]  ;;  %v63_v44 = vld [vmem:[%s4885_s2 + $0xa0] sm:$0xff]  ;;  %v3335_v7 = vld [vmem:[%s4887_s3 + $0x178] sm:$0xff] }
  0x13   :  { %4998 = vst [vmem:[#allocation8_spill] sm:$0xff] %v3180_v40  ;;  %v3201_v43 = vld [vmem:[%s4887_s3 + $0x48] sm:$0xff]  ;;  %v59_v46 = vld [vmem:[%s4885_s2 + $0x80] sm:$0xff]  ;;  %112 = vmatpush.msra.mxu0 %v63_v44  ;;  %v3346_v8 = vld [vmem:[%s4887_s3 + $0x150] sm:$0xff] }
  0x14   :  { %512 = vmatpush.msrb.mxu2 %v3049_v19  ;;  %532 = vmatpush.msrb.mxu3 %v3054_v20  ;;  %4999 = vst [vmem:[#allocation9_spill] sm:$0xff] %v3185_v41  ;;  %v64_v45 = vld [vmem:[%s4885_s2 + $0xa8] sm:$0xff]  ;;  %v3220_v48 = vld [vmem:[%s4887_s3 + $0x20] sm:$0xff]  ;;  %v3351_v9 = vld [vmem:[%s4887_s3 + $0x158] sm:$0xff] }
  0x15   :  { %2535 = vmatmul.msk.f32.gmra.mxu2 %vm77_vm0, %v3059_v21  ;;  %2543 = vmatmul.msk.f32.gmra.mxu3 %vm77_vm0, %v3059_v21  ;;  %5000 = vst [vmem:[#allocation10_spill] sm:$0xff] %v3192_v42  ;;  %v60_v47 = vld [vmem:[%s4885_s2 + $0x88] sm:$0xff]  ;;  %v55_v50 = vld [vmem:[%s4885_s2 + $0x60] sm:$0xff]  ;;  %v308_v10 = vld [vmem:[%s4888_s5 + $0x10] sm:$0xff] }
  0x16   :  { %513 = vmatpush.msrb.mxu2 %v3066_v22  ;;  %533 = vmatpush.msrb.mxu3 %v3071_v23  ;;  %5001 = vst [vmem:[#allocation11_spill] sm:$0xff] %v3201_v43  ;;  %v3225_v49 = vld [vmem:[%s4887_s3 + $0x28] sm:$0xff]  ;;  %v3238_v52 = vld [vmem:[%s4887_s3] sm:$0xff]  ;;  %v309_v11 = vld [vmem:[%s4888_s5 + $0x18] sm:$0xff] }
  0x17   :  { %5002 = vst [vmem:[#allocation12_spill] sm:$0xff] %v3220_v48  ;;  %153 = vmatpush.msra.mxu1 %v64_v45  ;;  %v56_v51 = vld [vmem:[%s4885_s2 + $0x68] sm:$0xff]  ;;  %113 = vmatpush.msra.mxu0 %v59_v46  ;;  %v3248_v54 = vld [vmem:[%s4886_s0 + $0x20] sm:$0xff]  ;;  %v3364_v44 = vld [vmem:[%s4887_s3 + $0x130] sm:$0xff] }
  0x18   :  { %514 = vmatpush.msrb.mxu2 %v3082_v24  ;;  %534 = vmatpush.msrb.mxu3 %v3087_v25  ;;  %5003 = vst [vmem:[#allocation13_spill] sm:$0xff] %v3225_v49  ;;  %v3243_v53 = vld [vmem:[%s4887_s3 + $0x8] sm:$0xff]  ;;  %v51_v57 = vld [vmem:[%s4885_s2 + $0x40] sm:$0xff]  ;;  %v3369_v45 = vld [vmem:[%s4887_s3 + $0x138] sm:$0xff] }
  0x19   :  { %5004 = vst [vmem:[#allocation14_spill] sm:$0xff] %v3238_v52  ;;  %154 = vmatpush.msra.mxu1 %v60_v47  ;;  %114 = vmatpush.msra.mxu0 %v55_v50  ;;  %v52_v58 = vld [vmem:[%s4885_s2 + $0x48] sm:$0xff]  ;;  %v47_v61 = vld [vmem:[%s4885_s2 + $0x20] sm:$0xff]  ;;  %v3380_v46 = vld [vmem:[%s4887_s3 + $0x110] sm:$0xff] }
  0x1a   :  { %515 = vmatpush.msrb.mxu2 %v3094_v26  ;;  %535 = vmatpush.msrb.mxu3 %v3099_v27  ;;  %5005 = vst [vmem:[#allocation15_spill] sm:$0xff] %v3243_v53  ;;  %v48_v62 = vld [vmem:[%s4885_s2 + $0x28] sm:$0xff]  ;;  %v43_v1 = vld [vmem:[%s4885_s2] sm:$0xff]  ;;  %v3385_v47 = vld [vmem:[%s4887_s3 + $0x118] sm:$0xff] }
  0x1b   :  { %155 = vmatpush.msra.mxu1 %v56_v51  ;;  %115 = vmatpush.msra.mxu0 %v51_v57  ;;  %v44_v2 = vld [vmem:[%s4885_s2 + $0x8] sm:$0xff]  ;;  %v3397_v50 = vld [vmem:[%s4887_s3 + $0xf0] sm:$0xff]  ;;  %v3402_v51 = vld [vmem:[%s4887_s3 + $0xf8] sm:$0xff] }
  0x1c   :  { %516 = vmatpush.msrb.mxu2 %v3106_v28  ;;  %536 = vmatpush.msrb.mxu3 %v3111_v29  ;;  %v3323_v5 = vld [vmem:[%s4886_s0 + $0x28] sm:$0xff]  ;;  %v3413_v57 = vld [vmem:[%s4887_s3 + $0xd0] sm:$0xff] }
  0x1d   :  { %2536 = vmatmul.msk.f32.gmra.mxu2 %vm77_vm0, %v3116_v30  ;;  %2544 = vmatmul.msk.f32.gmra.mxu3 %vm77_vm0, %v3116_v30 }
  0x1e   :  { %517 = vmatpush.msrb.mxu2 %v3123_v31  ;;  %537 = vmatpush.msrb.mxu3 %v3128_v32 }
  0x1f   :  { %156 = vmatpush.msra.mxu1 %v52_v58  ;;  %116 = vmatpush.msra.mxu0 %v47_v61  ;;  %v3418_v58 = vld [vmem:[%s4887_s3 + $0xd8] sm:$0xff]  ;;  %v3425_v61 = vld [vmem:[%s4887_s3 + $0xb0] sm:$0xff] }
  0x20   :  { %518 = vmatpush.msrb.mxu2 %v3139_v33  ;;  %538 = vmatpush.msrb.mxu3 %v3144_v34  ;;  %5006 = vst [vmem:[#allocation16_spill] sm:$0xff] %v3418_v58 }
  0x21   :  { %157 = vmatpush.msra.mxu1 %v48_v62  ;;  %117 = vmatpush.msra.mxu0 %v43_v1  ;;  %5007 = vst [vmem:[#allocation17_spill] sm:$0xff] %v3425_v61  ;;  %v3430_v62 = vld [vmem:[%s4887_s3 + $0xb8] sm:$0xff]  ;;  %v3441_v1 = vld [vmem:[%s4887_s3 + $0x90] sm:$0xff] }
  0x22   :  { %519 = vmatpush.msrb.mxu2 %v3151_v35  ;;  %539 = vmatpush.msrb.mxu3 %v3156_v36  ;;  %5008 = vst [vmem:[#allocation18_spill] sm:$0xff] %v3430_v62 }
  0x23   :  { %158 = vmatpush.msra.mxu1 %v44_v2  ;;  %2518 = vmatmul.msk.f32.vlgmr.msra.gmra.mxu0 %vm77_vm0, %v3006_v12  ;;  %5009 = vst [vmem:[#allocation19_spill] sm:$0xff] %v3441_v1  ;;  %v3446_v2 = vld [vmem:[%s4887_s3 + $0x98] sm:$0xff] }
  0x24   :  { %520 = vmatpush.msrb.mxu2 %v3163_v37  ;;  %540 = vmatpush.msrb.mxu3 %v3168_v38  ;;  %5010 = vst [vmem:[#allocation20_spill] sm:$0xff] %v3446_v2 }
  0x25   :  { %2537 = vmatmul.msk.f32.gmra.mxu2 %vm77_vm0, %v3173_v39  ;;  %2545 = vmatmul.msk.f32.gmra.mxu3 %vm77_vm0, %v3173_v39 }
  0x26   :  { %521 = vmatpush.msrb.mxu2 %v3180_v40  ;;  %541 = vmatpush.msrb.mxu3 %v3185_v41  ;;  %v439_v41 = vld [vmem:[%s4889_s8] sm:$0xff] }
  0x27   :  { %2526 = vmatmul.msk.f32.vlgmr.msra.gmra.mxu1 %vm77_vm0, %v3006_v12  ;;  %355 = vmatpush.msrb.mxu0 %v308_v10  ;;  %v3390_v12 = vld [vmem:[%s4886_s0 + $0x30] sm:$0xff]  ;;  %v3451_v10 = vld [vmem:[%s4886_s0 + $0x38] sm:$0xff] }
  0x28   :  { %522 = vmatpush.msrb.mxu2 %v3192_v42  ;;  %542 = vmatpush.msrb.mxu3 %v3201_v43  ;;  %v3502_v43 = vld [vmem:[%s4887_s3 + $0x10] sm:$0xff]  ;;  %v3507_v42 = vld [vmem:[%s4887_s3 + $0x18] sm:$0xff] }
  0x29   :  { %396 = vmatpush.msrb.mxu1 %v309_v11  ;;  %v3463_v11 = vld [vmem:[%s4887_s3 + $0x78] sm:$0xff]  ;;  %5017 = vst [vmem:[#allocation27_spill] sm:$0xff] %v3502_v43 }
  0x2a   :  { %523 = vmatpush.msrb.mxu2 %v3220_v48  ;;  %543 = vmatpush.msrb.mxu3 %v3225_v49  ;;  %5012 = vst [vmem:[#allocation22_spill] sm:$0xff] %v3463_v11  ;;  %v3486_v49 = vld [vmem:[%s4887_s3 + $0x30] sm:$0xff]  ;;  %v3491_v48 = vld [vmem:[%s4887_s3 + $0x38] sm:$0xff] }
  0x2b   :  { %2519 = vmatmul.msk.f32.gmra.mxu0 %vm77_vm0, %v3059_v21  ;;  %5015 = vst [vmem:[#allocation25_spill] sm:$0xff] %v3486_v49 }
  0x2c   :  { %524 = vmatpush.msrb.mxu2 %v3238_v52  ;;  %544 = vmatpush.msrb.mxu3 %v3243_v53  ;;  %v3474_v53 = vld [vmem:[%s4887_s3 + $0x50] sm:$0xff]  ;;  %v3479_v52 = vld [vmem:[%s4887_s3 + $0x58] sm:$0xff]  ;;  %5016 = vst [vmem:[#allocation26_spill] sm:$0xff] %v3491_v48 }
  0x2d   :  { %2538 = vmatmul.msk.f32.gmra.mxu2 %vm77_vm0, %v3248_v54  ;;  %2546 = vmatmul.msk.f32.gmra.mxu3 %vm77_vm0, %v3248_v54  ;;  %5013 = vst [vmem:[#allocation23_spill] sm:$0xff] %v3474_v53 }
  0x2e   :  { %549 = vmatpush.msra.mxu2 %v3255_v55  ;;  %569 = vmatpush.msra.mxu3 %v3260_v56  ;;  %5014 = vst [vmem:[#allocation24_spill] sm:$0xff] %v3479_v52 }
  0x2f   :  { %2527 = vmatmul.msk.f32.gmra.mxu1 %vm77_vm0, %v3059_v21  ;;  %v3458_v21 = vld [vmem:[%s4887_s3 + $0x70] sm:$0xff]  ;;  %5018 = vst [vmem:[#allocation28_spill] sm:$0xff] %v3507_v42 }
  0x30   :  { %550 = vmatpush.msra.mxu2 %v3277_v59  ;;  %570 = vmatpush.msra.mxu3 %v3282_v60  ;;  %5011 = vst [vmem:[#allocation21_spill] sm:$0xff] %v3458_v21 }
  0x32   :  { %551 = vmatpush.msra.mxu2 %v3295_v63  ;;  %571 = vmatpush.msra.mxu3 %v3300_v0 }
  0x33   :  { %2520 = vmatmul.msk.f32.gmra.mxu0 %vm77_vm0, %v3116_v30 }
  0x34   :  { %552 = vmatpush.msra.mxu2 %v3313_v3  ;;  %572 = vmatpush.msra.mxu3 %v3318_v4 }
  0x35   :  { %2539 = vmatmul.msk.f32.gmra.mxu2 %vm77_vm0, %v3323_v5  ;;  %2547 = vmatmul.msk.f32.gmra.mxu3 %vm77_vm0, %v3323_v5 }
  0x36   :  { %553 = vmatpush.msra.mxu2 %v3330_v6  ;;  %573 = vmatpush.msra.mxu3 %v3335_v7 }
  0x37   :  { %2528 = vmatmul.msk.f32.gmra.mxu1 %vm77_vm0, %v3116_v30  ;;  %v306_v30 = vld [vmem:[%s4888_s5] sm:$0xff] }
  0x38   :  { %554 = vmatpush.msra.mxu2 %v3346_v8  ;;  %574 = vmatpush.msra.mxu3 %v3351_v9 }
  0x39   :  { %356 = vmatpush.msrb.mxu0 %v306_v30  ;;  %v5021_v30 = vld [vmem:[#allocation11_spill] sm:$0xff] }
  0x3a   :  { %555 = vmatpush.msra.mxu2 %v3364_v44  ;;  %575 = vmatpush.msra.mxu3 %v3369_v45 }
  0x3b   :  { %2521 = vmatmul.msk.f32.gmra.mxu0 %vm77_vm0, %v3173_v39 }
  0x3c   :  { %556 = vmatpush.msra.mxu2 %v3380_v46  ;;  %576 = vmatpush.msra.mxu3 %v3385_v47 }
  0x3d   :  { %2540 = vmatmul.msk.f32.gmra.mxu2 %vm77_vm0, %v3390_v12  ;;  %2548 = vmatmul.msk.f32.gmra.mxu3 %vm77_vm0, %v3390_v12 }
  0x3e   :  { %557 = vmatpush.msra.mxu2 %v3397_v50  ;;  %577 = vmatpush.msra.mxu3 %v3402_v51 }
  0x3f   :  { %2529 = vmatmul.msk.f32.gmra.mxu1 %vm77_vm0, %v3173_v39  ;;  %v307_v39 = vld [vmem:[%s4888_s5 + $0x8] sm:$0xff]  ;;  %656 = vmatpush.msra.mxu0 %v3011_v13 }
  0x40   :  { %558 = vmatpush.msra.mxu2 %v3413_v57  ;;  %578 = vmatpush.msra.mxu3 %v3418_v58 }
  0x41   :  { %397 = vmatpush.msrb.mxu1 %v307_v39  ;;  %657 = vmatpush.msra.mxu0 %v3025_v15 }
  0x42   :  { %559 = vmatpush.msra.mxu2 %v3425_v61  ;;  %579 = vmatpush.msra.mxu3 %v3430_v62 }
  0x43   :  { %2522 = vmatmul.msk.f32.gmra.mxu0 %vm77_vm0, %v3248_v54  ;;  %676 = vmatpush.msra.mxu1 %v3016_v14 }
  0x44   :  { %560 = vmatpush.msra.mxu2 %v3441_v1  ;;  %580 = vmatpush.msra.mxu3 %v3446_v2 }
  0x45   :  { %2541 = vmatmul.msk.f32.gmra.mxu2 %vm77_vm0, %v3451_v10  ;;  %2549 = vmatmul.msk.f32.gmra.mxu3 %vm77_vm0, %v3451_v10 }
  0x46   :  { %561 = vmatpush.msra.mxu2 %v3458_v21  ;;  %581 = vmatpush.msra.mxu3 %v3463_v11 }
  0x47   :  { %2530 = vmatmul.msk.f32.gmra.mxu1 %vm77_vm0, %v3248_v54  ;;  %658 = vmatpush.msra.mxu0 %v3037_v17 }
  0x48   :  { %562 = vmatpush.msra.mxu2 %v3474_v53  ;;  %582 = vmatpush.msra.mxu3 %v3479_v52 }
  0x49   :  { %677 = vmatpush.msra.mxu1 %v3030_v16  ;;  %659 = vmatpush.msra.mxu0 %v3049_v19 }
  0x4a   :  { %563 = vmatpush.msra.mxu2 %v3486_v49  ;;  %583 = vmatpush.msra.mxu3 %v3491_v48 }
  0x4b   :  { %2523 = vmatmul.msk.f32.gmra.mxu0 %vm77_vm0, %v3323_v5  ;;  %678 = vmatpush.msra.mxu1 %v3042_v18 }
  0x4c   :  { %564 = vmatpush.msra.mxu2 %v3502_v43  ;;  %584 = vmatpush.msra.mxu3 %v3507_v42 }
  0x4d   :  { %525 = vmatmul.f32.vlgmr.msrb.gmra.mxu2 %v439_v41  ;;  %545 = vmatmul.f32.vlgmr.msrb.gmra.mxu3 %v439_v41 }
  0x4e   :  { %696 = vmatpush.msrb.mxu2 %v3255_v55  ;;  %716 = vmatpush.msrb.mxu3 %v3260_v56 }
  0x4f   :  { %2531 = vmatmul.msk.f32.gmra.mxu1 %vm77_vm0, %v3323_v5  ;;  %660 = vmatpush.msra.mxu0 %v3066_v22  ;;  %v5019_v5 = vld [vmem:[#allocation9_spill] sm:$0xff] }
  0x50   :  { %697 = vmatpush.msrb.mxu2 %v3277_v59  ;;  %717 = vmatpush.msrb.mxu3 %v3282_v60 }
  0x51   :  { %679 = vmatpush.msra.mxu1 %v3054_v20  ;;  %661 = vmatpush.msra.mxu0 %v3082_v24 }
  0x52   :  { %698 = vmatpush.msrb.mxu2 %v3295_v63  ;;  %718 = vmatpush.msrb.mxu3 %v3300_v0 }
  0x53   :  { %2524 = vmatmul.msk.f32.gmra.mxu0 %vm77_vm0, %v3390_v12  ;;  %680 = vmatpush.msra.mxu1 %v3071_v23 }
  0x54   :  { %699 = vmatpush.msrb.mxu2 %v3313_v3  ;;  %719 = vmatpush.msrb.mxu3 %v3318_v4 }
  0x55   :  { %565 = vmatmul.f32.vlgmr.msra.gmra.mxu2 %v439_v41  ;;  %585 = vmatmul.f32.vlgmr.msra.gmra.mxu3 %v439_v41 }
  0x56   :  { %700 = vmatpush.msrb.mxu2 %v3330_v6  ;;  %720 = vmatpush.msrb.mxu3 %v3335_v7 }
  0x57   :  { %2532 = vmatmul.msk.f32.gmra.mxu1 %vm77_vm0, %v3390_v12  ;;  %662 = vmatpush.msra.mxu0 %v3094_v26  ;;  %v3639_v12 = vld [vmem:[%s4890_s4] sm:$0xf] }
  0x58   :  { %701 = vmatpush.msrb.mxu2 %v3346_v8  ;;  %721 = vmatpush.msrb.mxu3 %v3351_v9  ;;  %v3644_v39 = vperm.slane %v3639_v12, 2 }
  0x59   :  { %681 = vmatpush.msra.mxu1 %v3087_v25  ;;  %663 = vmatpush.msra.mxu0 %v3106_v28 }
  0x5a   :  { %702 = vmatpush.msrb.mxu2 %v3364_v44  ;;  %722 = vmatpush.msrb.mxu3 %v3369_v45 }
  0x5b   :  { %2525 = vmatmul.msk.f32.gmra.mxu0 %vm77_vm0, %v3451_v10  ;;  %682 = vmatpush.msra.mxu1 %v3099_v27 }
  0x5c   :  { %703 = vmatpush.msrb.mxu2 %v3380_v46  ;;  %723 = vmatpush.msrb.mxu3 %v3385_v47 }
  0x5d   :  { %683 = vmatpush.msra.mxu1 %v3111_v29  ;;  %664 = vmatpush.msra.mxu0 %v3123_v31 }
  0x5e   :  { %704 = vmatpush.msrb.mxu2 %v3397_v50  ;;  %724 = vmatpush.msrb.mxu3 %v3402_v51 }
  0x5f   :  { %2533 = vmatmul.msk.f32.gmra.mxu1 %vm77_vm0, %v3451_v10  ;;  %665 = vmatpush.msra.mxu0 %v3139_v33  ;;  %v5020_v10 = vld [vmem:[#allocation10_spill] sm:$0xff] }
  0x60   :  { %705 = vmatpush.msrb.mxu2 %v3413_v57  ;;  %725 = vmatpush.msrb.mxu3 %v3418_v58 }
  0x61   :  { %684 = vmatpush.msra.mxu1 %v3128_v32  ;;  %666 = vmatpush.msra.mxu0 %v3151_v35 }
  0x62   :  { %706 = vmatpush.msrb.mxu2 %v3425_v61  ;;  %726 = vmatpush.msrb.mxu3 %v3430_v62 }
  0x63   :  { %685 = vmatpush.msra.mxu1 %v3144_v34  ;;  %667 = vmatpush.msra.mxu0 %v3163_v37 }
  0x64   :  { %707 = vmatpush.msrb.mxu2 %v3441_v1  ;;  %727 = vmatpush.msrb.mxu3 %v3446_v2 }
  0x65   :  { %686 = vmatpush.msra.mxu1 %v3156_v36  ;;  %668 = vmatpush.msra.mxu0 %v3180_v40 }
  0x66   :  { %708 = vmatpush.msrb.mxu2 %v3458_v21  ;;  %728 = vmatpush.msrb.mxu3 %v3463_v11 }
  0x67   :  { %687 = vmatpush.msra.mxu1 %v3168_v38  ;;  %669 = vmatpush.msra.mxu0 %v5020_v10 }
  0x68   :  { %709 = vmatpush.msrb.mxu2 %v3474_v53  ;;  %729 = vmatpush.msrb.mxu3 %v3479_v52 }
  0x69   :  { %688 = vmatpush.msra.mxu1 %v5019_v5 }
  0x6a   :  { %710 = vmatpush.msrb.mxu2 %v3486_v49  ;;  %730 = vmatpush.msrb.mxu3 %v3491_v48 }
  0x6b   :  { %689 = vmatpush.msra.mxu1 %v5021_v30 }
  0x6c   :  { %711 = vmatpush.msrb.mxu2 %v3502_v43  ;;  %731 = vmatpush.msrb.mxu3 %v3507_v42 }
  0x6e   :  { %843 = vmatpush.msra.mxu2 %v3255_v55  ;;  %863 = vmatpush.msra.mxu3 %v3260_v56 }
  0x70   :  { %844 = vmatpush.msra.mxu2 %v3277_v59  ;;  %864 = vmatpush.msra.mxu3 %v3282_v60 }
  0x72   :  { %845 = vmatpush.msra.mxu2 %v3295_v63  ;;  %865 = vmatpush.msra.mxu3 %v3300_v0 }
  0x74   :  { %846 = vmatpush.msra.mxu2 %v3313_v3  ;;  %866 = vmatpush.msra.mxu3 %v3318_v4 }
  0x76   :  { %847 = vmatpush.msra.mxu2 %v3330_v6  ;;  %867 = vmatpush.msra.mxu3 %v3335_v7 }
  0x78   :  { %848 = vmatpush.msra.mxu2 %v3346_v8  ;;  %868 = vmatpush.msra.mxu3 %v3351_v9 }
  0x7a   :  { %849 = vmatpush.msra.mxu2 %v3364_v44  ;;  %869 = vmatpush.msra.mxu3 %v3369_v45 }
  0x7c   :  { %850 = vmatpush.msra.mxu2 %v3380_v46  ;;  %870 = vmatpush.msra.mxu3 %v3385_v47 }
  0x7e   :  { %851 = vmatpush.msra.mxu2 %v3397_v50  ;;  %871 = vmatpush.msra.mxu3 %v3402_v51 }
  0x80   :  { %852 = vmatpush.msra.mxu2 %v3413_v57  ;;  %872 = vmatpush.msra.mxu3 %v3418_v58 }
  0x82   :  { %853 = vmatpush.msra.mxu2 %v3425_v61  ;;  %873 = vmatpush.msra.mxu3 %v3430_v62 }
  0x84   :  { %854 = vmatpush.msra.mxu2 %v3441_v1  ;;  %874 = vmatpush.msra.mxu3 %v3446_v2  ;;  %v5026_v2 = vld [vmem:[#allocation14_spill] sm:$0xff]  ;;  %v5027_v1 = vld [vmem:[#allocation15_spill] sm:$0xff] }
  0x86   :  { %855 = vmatpush.msra.mxu2 %v3458_v21  ;;  %875 = vmatpush.msra.mxu3 %v3463_v11  ;;  %v298_v21 = vld [vmem:[%s4891_s1] sm:$0xff] }
  0x87   :  { %2550 = vmatmul.msk.f32.vlgmr.msrb.gmra.mxu0 %vm316_vm1, %v298_v21  ;;  %2558 = vmatmul.msk.f32.vlgmr.msrb.gmra.mxu1 %vm316_vm1, %v298_v21  ;;  %v299_v21 = vld [vmem:[%s4891_s1 + $0x8] sm:$0xff] }
  0x88   :  { %856 = vmatpush.msra.mxu2 %v3474_v53  ;;  %876 = vmatpush.msra.mxu3 %v3479_v52 }
  0x8a   :  { %857 = vmatpush.msra.mxu2 %v3486_v49  ;;  %877 = vmatpush.msra.mxu3 %v3491_v48  ;;  %v5023_v48 = vld [vmem:[#allocation13_spill] sm:$0xff] }
  0x8b   :  { %690 = vmatpush.msra.mxu1 %v5023_v48 }
  0x8c   :  { %858 = vmatpush.msra.mxu2 %v3502_v43  ;;  %878 = vmatpush.msra.mxu3 %v3507_v42  ;;  %v3647_v42 = vperm.slane %v3639_v12, 3  ;;  %v5022_v43 = vld [vmem:[#allocation12_spill] sm:$0xff] }
  0x8d   :  { %670 = vmatpush.msra.mxu0 %v5022_v43  ;;  %691 = vmatpush.msra.mxu1 %v5027_v1 }
  0x8f   :  { %671 = vmatpush.msra.mxu0 %v5026_v2  ;;  %823 = vmatpush.msrb.mxu1 %v3016_v14 }
  0x90   :  { %v3628_v41 = vpop.f32.mrf.mxu2  ;;  %v3630_v54 = vpop.f32.mrf.mxu3  ;;  %2551 = vmatmul.msk.f32.gmra.mxu0 %vm316_vm1, %v299_v21  ;;  %2559 = vmatmul.msk.f32.gmra.mxu1 %vm316_vm1, %v299_v21  ;;  %v300_v21 = vld [vmem:[%s4891_s1 + $0x10] sm:$0xff] }
  0x91   :  { %803 = vmatpush.msrb.mxu0 %v3011_v13  ;;  %824 = vmatpush.msrb.mxu1 %v3030_v16 }
  0x93   :  { %804 = vmatpush.msrb.mxu0 %v3025_v15  ;;  %825 = vmatpush.msrb.mxu1 %v3042_v18 }
  0x95   :  { %805 = vmatpush.msrb.mxu0 %v3037_v17  ;;  %826 = vmatpush.msrb.mxu1 %v3054_v20 }
  0x97   :  { %806 = vmatpush.msrb.mxu0 %v3049_v19  ;;  %827 = vmatpush.msrb.mxu1 %v3071_v23 }
  0x98   :  { %v204_v49 = vpop.f32.mrf.mxu2  ;;  %v245_v52 = vpop.f32.mrf.mxu3  ;;  %2552 = vmatmul.msk.f32.gmra.mxu0 %vm316_vm1, %v300_v21  ;;  %2560 = vmatmul.msk.f32.gmra.mxu1 %vm316_vm1, %v300_v21  ;;  %v301_v21 = vld [vmem:[%s4891_s1 + $0x18] sm:$0xff] }
  0x99   :  { %v3652_v53 = vadd.f32 %v204_v49, %v3644_v39  ;;  %v3655_v11 = vadd.f32 %v245_v52, %v3647_v42  ;;  %807 = vmatpush.msrb.mxu0 %v3066_v22  ;;  %828 = vmatpush.msrb.mxu1 %v3087_v25 }
  0x9b   :  { %5024 = vst [vmem:[#allocation29_spill] sm:$0xff] %v3652_v53  ;;  %808 = vmatpush.msrb.mxu0 %v3082_v24  ;;  %829 = vmatpush.msrb.mxu1 %v3099_v27 }
  0x9c   :  { %5025 = vst [vmem:[#allocation30_spill] sm:$0xff] %v3655_v11 }
  0x9d   :  { %809 = vmatpush.msrb.mxu0 %v3094_v26  ;;  %830 = vmatpush.msrb.mxu1 %v3111_v29 }
  0x9f   :  { %810 = vmatpush.msrb.mxu0 %v3106_v28  ;;  %831 = vmatpush.msrb.mxu1 %v3128_v32 }
  0xa0   :  { %v207_v49 = vpop.f32.mrf.mxu2  ;;  %v248_v52 = vpop.f32.mrf.mxu3  ;;  %2553 = vmatmul.msk.f32.gmra.mxu0 %vm316_vm1, %v301_v21  ;;  %2561 = vmatmul.msk.f32.gmra.mxu1 %vm316_vm1, %v301_v21  ;;  %v302_v21 = vld [vmem:[%s4891_s1 + $0x20] sm:$0xff] }
  0xa1   :  { %v3671_v11 = vadd.f32 %v207_v49, %v3644_v39  ;;  %v3674_v53 = vadd.f32 %v248_v52, %v3647_v42  ;;  %811 = vmatpush.msrb.mxu0 %v3123_v31  ;;  %832 = vmatpush.msrb.mxu1 %v3144_v34 }
  0xa3   :  { %5028 = vst [vmem:[#allocation31_spill] sm:$0xff] %v3671_v11  ;;  %812 = vmatpush.msrb.mxu0 %v3139_v33  ;;  %833 = vmatpush.msrb.mxu1 %v3156_v36 }
  0xa4   :  { %5029 = vst [vmem:[#allocation32_spill] sm:$0xff] %v3674_v53 }
  0xa5   :  { %813 = vmatpush.msrb.mxu0 %v3151_v35  ;;  %834 = vmatpush.msrb.mxu1 %v3168_v38 }
  0xa7   :  { %814 = vmatpush.msrb.mxu0 %v3163_v37  ;;  %835 = vmatpush.msrb.mxu1 %v5019_v5 }
  0xa8   :  { %v210_v49 = vpop.f32.mrf.mxu2  ;;  %v251_v52 = vpop.f32.mrf.mxu3  ;;  %2554 = vmatmul.msk.f32.gmra.mxu0 %vm316_vm1, %v302_v21  ;;  %2562 = vmatmul.msk.f32.gmra.mxu1 %vm316_vm1, %v302_v21 }
  0xa9   :  { %v3690_v53 = vadd.f32 %v210_v49, %v3644_v39  ;;  %v3693_v11 = vadd.f32 %v251_v52, %v3647_v42  ;;  %815 = vmatpush.msrb.mxu0 %v3180_v40  ;;  %836 = vmatpush.msrb.mxu1 %v5021_v30  ;;  %v305_v40 = vld [vmem:[%s4891_s1 + $0x38] sm:$0xff] }
  0xab   :  { %5030 = vst [vmem:[#allocation33_spill] sm:$0xff] %v3690_v53  ;;  %816 = vmatpush.msrb.mxu0 %v5020_v10  ;;  %837 = vmatpush.msrb.mxu1 %v5023_v48 }
  0xac   :  { %5031 = vst [vmem:[#allocation34_spill] sm:$0xff] %v3693_v11 }
  0xad   :  { %817 = vmatpush.msrb.mxu0 %v5022_v43  ;;  %838 = vmatpush.msrb.mxu1 %v5027_v1 }
  0xaf   :  { %818 = vmatpush.msrb.mxu0 %v5026_v2 }
  0xb0   :  { %v213_v49 = vpop.f32.mrf.mxu2  ;;  %v254_v52 = vpop.f32.mrf.mxu3 }
  0xb1   :  { %v3709_v11 = vadd.f32 %v213_v49, %v3644_v39  ;;  %v3712_v53 = vadd.f32 %v254_v52, %v3647_v42 }
  0xb3   :  { %5032 = vst [vmem:[#allocation35_spill] sm:$0xff] %v3709_v11 }
  0xb4   :  { %5033 = vst [vmem:[#allocation36_spill] sm:$0xff] %v3712_v53 }
  0xb8   :  { %v216_v49 = vpop.f32.mrf.mxu2  ;;  %v257_v52 = vpop.f32.mrf.mxu3 }
  0xb9   :  { %v3728_v53 = vadd.f32 %v216_v49, %v3644_v39  ;;  %v3731_v11 = vadd.f32 %v257_v52, %v3647_v42 }
  0xbb   :  { %5034 = vst [vmem:[#allocation37_spill] sm:$0xff] %v3728_v53 }
  0xbc   :  { %5035 = vst [vmem:[#allocation38_spill] sm:$0xff] %v3731_v11  ;;  %v303_v11 = vld [vmem:[%s4891_s1 + $0x28] sm:$0xff] }
  0xbd   :  { %2555 = vmatmul.msk.f32.gmra.mxu0 %vm316_vm1, %v303_v11  ;;  %2563 = vmatmul.msk.f32.gmra.mxu1 %vm316_vm1, %v303_v11  ;;  %v304_v11 = vld [vmem:[%s4891_s1 + $0x30] sm:$0xff] }
  0xc0   :  { %v219_v43 = vpop.f32.mrf.mxu2  ;;  %v260_v48 = vpop.f32.mrf.mxu3 }
  0xc1   :  { %v3741_v49 = vadd.f32 %v219_v43, %v3644_v39  ;;  %v3744_v52 = vadd.f32 %v260_v48, %v3647_v42  ;;  %v3758_v43 = vperm.slane %v3639_v12, 0  ;;  %v3761_v48 = vperm.slane %v3639_v12, 1 }
  0xc3   :  { %5036 = vst [vmem:[#allocation39_spill] sm:$0xff] %v3741_v49  ;;  %v160_v49 = vpop.f32.mrf.mxu1 }
  0xc4   :  { %5037 = vst [vmem:[#allocation40_spill] sm:$0xff] %v3744_v52  ;;  %v119_v52 = vpop.f32.mrf.mxu0 }
  0xc5   :  { %5040 = vst [vmem:[#allocation43_spill] sm:$0xff] %v3758_v43  ;;  %v120_v30 = vadd.f32 %v119_v52, %v3758_v43  ;;  %2556 = vmatmul.msk.f32.gmra.mxu0 %vm316_vm1, %v304_v11  ;;  %2564 = vmatmul.msk.f32.gmra.mxu1 %vm316_vm1, %v304_v11 }
  0xc6   :  { %5041 = vst [vmem:[#allocation44_spill] sm:$0xff] %v3761_v48 }
  0xc8   :  { %v222_v53 = vpop.f32.mrf.mxu2  ;;  %v263_v1 = vpop.f32.mrf.mxu3 }
  0xc9   :  { %v3752_v21 = vadd.f32 %v222_v53, %v3644_v39  ;;  %v3755_v2 = vadd.f32 %v263_v1, %v3647_v42  ;;  %v161_v53 = vadd.f32 %v160_v49, %v3761_v48  ;;  %v202_v49 = vadd.f32 %v3628_v41, %v3644_v39 }
  0xcb   :  { %5038 = vst [vmem:[#allocation41_spill] sm:$0xff] %v3752_v21 }
  0xcc   :  { %5039 = vst [vmem:[#allocation42_spill] sm:$0xff] %v3755_v2 }
  0xcd   :  { %2557 = vmatmul.msk.f32.gmra.mxu0 %vm316_vm1, %v305_v40  ;;  %2565 = vmatmul.msk.f32.gmra.mxu1 %vm316_vm1, %v305_v40  ;;  %v243_v40 = vadd.f32 %v3630_v54, %v3647_v42 }
  0xd0   :  { %v526_v1 = vpop.f32.mrf.mxu2  ;;  %v546_v2 = vpop.f32.mrf.mxu3 }
  0xd1   :  { %v527_v21 = vadd.f32 %v526_v1, %v120_v30  ;;  %v547_v10 = vadd.f32 %v546_v2, %v161_v53  ;;  %v3777_v53 = vpop.f32.mrf.mxu0  ;;  %v3779_v1 = vpop.f32.mrf.mxu1 }
  0xd2   :  { %5042 = vst [vmem:[#allocation45_spill] sm:$0xff] %v3777_v53 }
  0xd3   :  { %v2566_v12 = vmul.f32 -1.442695, %v527_v21  ;;  %v2567_v5 = vmul.f32 -1.442695, %v547_v10  ;;  %5043 = vst [vmem:[#allocation46_spill] sm:$0xff] %v3779_v1 }
  0xd5   :  { %2623 = vpow2.f32 %v2566_v12 }
  0xd6   :  { %2625 = vpow2.f32 %v2567_v5 }
  0xd8   :  { %v566_v52 = vpop.f32.mrf.mxu2  ;;  %v586_v12 = vpop.f32.mrf.mxu3 }
  0xd9   :  { %v567_v11 = vadd.f32 %v566_v52, %v202_v49  ;;  %v587_v49 = vadd.f32 %v586_v12, %v243_v40 }
  0xdb   :  { %v2624_v48 = vpop.eup %2623  ;;  %v2568_v30 = vmul.f32 -1.442695, %v567_v11 }
  0xdc   :  { %v2626_v2 = vpop.eup %2625  ;;  %v598_v21 = vadd.f32 1.0, %v2624_v48  ;;  %v3783_v48 = vpop.f32.mrf.mxu0 }
  0xdd   :  { %v599_v10 = vadd.f32 1.0, %v2626_v2  ;;  %2627 = vpow2.f32 %v2568_v30  ;;  %5044 = vst [vmem:[#allocation47_spill] sm:$0xff] %v3783_v48  ;;  %v3785_v30 = vpop.f32.mrf.mxu1 }
  0xde   :  { %2629 = vrcp.f32 %v598_v21  ;;  %5045 = vst [vmem:[#allocation48_spill] sm:$0xff] %v3785_v30  ;;  %v612_v1 = vand.u32 2147483648, %v598_v21  ;;  %v610_v42 = vand.u32 2147483647, %v598_v21  ;;  %vm606_vm4 = vweird.f32 %v598_v21 }
  0xdf   :  { %2631 = vrcp.f32 %v599_v10  ;;  %v627_v38 = vand.u32 2147483648, %v599_v10  ;;  %vm621_vm5 = vweird.f32 %v599_v10 }
  0xe0   :  { %v613_v62 = vor.u32 1.1754944e-38, %v612_v1  ;;  %vm611_vm8 = vcmp.eq.f32.partialorder %v610_v42, 8.507059e+37 }
  0xe1   :  { %v628_v30 = vor.u32 1.1754944e-38, %v627_v38 }
  0xe3   :  { %v2628_v5 = vpop.eup %2627 }
  0xe4   :  { %v2630_v41 = vpop.eup %2629  ;;  %v600_v39 = vadd.f32 1.0, %v2628_v5  ;;  %v625_v5 = vand.u32 2147483647, %v599_v10 }
  0xe5   :  { %v2632_v52 = vpop.eup %2631  ;;  %v602_v11 = vmul.f32 %v2630_v41, %v598_v21  ;;  %vm607_vm2 = vweird.f32 %v2630_v41  ;;  %v3792_v21 = vpop.f32.mrf.mxu1 }
  0xe6   :  { %v617_v43 = vmul.f32 %v2632_v52, %v599_v10  ;;  %2633 = vrcp.f32 %v600_v39  ;;  %vm622_vm3 = vweird.f32 %v2632_v52  ;;  %vm608_vm6 = vmor %vm606_vm4, %vm607_vm2  ;;  %vm626_vm9 = vcmp.eq.f32.partialorder %v625_v5, 8.507059e+37  ;;  %5047 = vst [vmem:[#allocation50_spill] sm:$0xff] %v3792_v21  ;;  %v4288_v21 = vld [vmem:[%s4887_s3 + $0x38] sm:$0xff] }
  0xe7   :  { %v603_v2 = vsub.f32 1.0, %v602_v11  ;;  %2635 = vtanh.f32 %v587_v49  ;;  %vm623_vm7 = vmor %vm621_vm5, %vm622_vm3  ;;  %vm636_vm11 = vweird.f32 %v600_v39  ;;  %5125 = vst [vmem:[#allocation68_spill] sm:$0xff] %v4288_v21 }
  0xe8   :  { %v618_v53 = vsub.f32 1.0, %v617_v43  ;;  %v440_v43 = vld [vmem:[%s4892_s9] sm:$0xff] }
  0xe9   :  { %v604_v37 = vmul.f32 %v2630_v41, %v603_v2 }
  0xea   :  { %v619_v54 = vmul.f32 %v2632_v52, %v618_v53 }
  0xeb   :  { %v605_v12 = vadd.f32 %v2630_v41, %v604_v37  ;;  %v3790_v37 = vpop.f32.mrf.mxu0 }
  0xec   :  { %v2634_v40 = vpop.eup %2633  ;;  %v620_v48 = vadd.f32 %v2632_v52, %v619_v54  ;;  %5046 = vst [vmem:[#allocation49_spill] sm:$0xff] %v3790_v37  ;;  %v4294_v37 = vld [vmem:[%s4887_s3] sm:$0xff] }
  0xed   :  { %v632_v11 = vmul.f32 %v2634_v40, %v600_v39  ;;  %v609_v49 = vsel %vm608_vm6, %v2630_v41, %v605_v12  ;;  %v2636_v2 = vpop.eup %2635  ;;  %vm637_vm10 = vweird.f32 %v2634_v40  ;;  %v642_v41 = vand.u32 2147483648, %v600_v39  ;;  %5126 = vst [vmem:[#allocation69_spill] sm:$0xff] %v4294_v37 }
  0xee   :  { %v614_v53 = vsel %vm611_vm8, %v613_v62, %v609_v49  ;;  %v624_v61 = vsel %vm623_vm7, %v2632_v52, %v620_v48  ;;  %v640_v62 = vand.u32 2147483647, %v600_v39  ;;  %vm638_vm12 = vmor %vm636_vm11, %vm637_vm10  ;;  %v3799_v48 = vpop.f32.mrf.mxu1 }
  0xef   :  { %v633_v10 = vsub.f32 1.0, %v632_v11  ;;  %v629_v1 = vsel %vm626_vm9, %v628_v30, %v624_v61  ;;  %v648_v54 = vmul.f32 %v2636_v2, %v614_v53  ;;  %5049 = vst [vmem:[#allocation52_spill] sm:$0xff] %v3799_v48  ;;  %v643_v5 = vor.u32 1.1754944e-38, %v642_v41  ;;  %v4276_v48 = vld [vmem:[%s4887_s3 + $0x28] sm:$0xff] }
  0xf0   :  { %v647_v36 = vmul.f32 %v629_v1, %v440_v43  ;;  %vm641_vm13 = vcmp.eq.f32.partialorder %v640_v62, 8.507059e+37  ;;  %5123 = vst [vmem:[#allocation66_spill] sm:$0xff] %v4276_v48 }
  0xf1   :  { %v634_v38 = vmul.f32 %v2634_v40, %v633_v10 }
  0xf2   :  { %v3794_v35 = vadd.f32 %v648_v54, %v647_v36 }
  0xf3   :  { %v635_v58 = vadd.f32 %v2634_v40, %v634_v38  ;;  %v3797_v52 = vpop.f32.mrf.mxu0 }
  0xf4   :  { %2637 = vtanh.f32 %v3794_v35  ;;  %5048 = vst [vmem:[#allocation51_spill] sm:$0xff] %v3797_v52  ;;  %v4282_v52 = vld [vmem:[%s4887_s3 + $0x30] sm:$0xff] }
  0xf5   :  { %v639_v42 = vsel %vm638_vm12, %v2634_v40, %v635_v58  ;;  %5124 = vst [vmem:[#allocation67_spill] sm:$0xff] %v4282_v52 }
  0xf6   :  { %v644_v30 = vsel %vm641_vm13, %v643_v5, %v639_v42  ;;  %v3803_v11 = vpop.f32.mrf.mxu1 }
  0xf7   :  { %5051 = vst [vmem:[#allocation54_spill] sm:$0xff] %v3803_v11  ;;  %v4264_v11 = vld [vmem:[%s4887_s3 + $0x58] sm:$0xff] }
  0xf8   :  { %5121 = vst [vmem:[#allocation64_spill] sm:$0xff] %v4264_v11 }
  0xfa   :  { %v2638_v61 = vpop.eup %2637 }
  0xfb   :  { %v651_v12 = vmul.f32 %v2638_v61, %v644_v30  ;;  %v3801_v36 = vpop.f32.mrf.mxu0 }
  0xfc   :  { %5050 = vst [vmem:[#allocation53_spill] sm:$0xff] %v3801_v36  ;;  %v4270_v36 = vld [vmem:[%s4887_s3 + $0x20] sm:$0xff] }
  0xfd   :  { %672 = vmatmul.f32.vlgmr.msra.gmra.mxu0 %v651_v12  ;;  %692 = vmatmul.f32.vlgmr.msra.gmra.mxu1 %v651_v12  ;;  %5122 = vst [vmem:[#allocation65_spill] sm:$0xff] %v4270_v36 }
  0xfe   :  { %712 = vmatmul.f32.vlgmr.msrb.gmra.mxu2 %v651_v12  ;;  %732 = vmatmul.f32.vlgmr.msrb.gmra.mxu3 %v651_v12 }
  0xff   :  { %950 = vmatpush.msra.mxu0 %v3011_v13  ;;  %970 = vmatpush.msra.mxu1 %v3016_v14  ;;  %v3821_v14 = vpop.f32.mrf.mxu1 }
 0x100   :  { %990 = vmatpush.msrb.mxu2 %v3255_v55  ;;  %1010 = vmatpush.msrb.mxu3 %v3260_v56  ;;  %5053 = vst [vmem:[#allocation56_spill] sm:$0xff] %v3821_v14  ;;  %v5069_v55 = vld [vmem:[#allocation21_spill] sm:$0xff]  ;;  %v5070_v56 = vld [vmem:[#allocation22_spill] sm:$0xff] }
 0x101   :  { %951 = vmatpush.msra.mxu0 %v3025_v15  ;;  %971 = vmatpush.msra.mxu1 %v3030_v16  ;;  %v4252_v14 = vld [vmem:[%s4887_s3 + $0x48] sm:$0xff] }
 0x102   :  { %991 = vmatpush.msrb.mxu2 %v3277_v59  ;;  %1011 = vmatpush.msrb.mxu3 %v3282_v60  ;;  %v5071_v59 = vld [vmem:[#allocation10_spill] sm:$0xff]  ;;  %v5072_v60 = vld [vmem:[#allocation11_spill] sm:$0xff]  ;;  %5119 = vst [vmem:[#allocation62_spill] sm:$0xff] %v4252_v14 }
 0x103   :  { %952 = vmatpush.msra.mxu0 %v3037_v17  ;;  %972 = vmatpush.msra.mxu1 %v3042_v18  ;;  %v3819_v13 = vpop.f32.mrf.mxu0  ;;  %v310_v17 = vld [vmem:[%s4893_s7] sm:$0x3] }
 0x104   :  { %992 = vmatpush.msrb.mxu2 %v3295_v63  ;;  %1012 = vmatpush.msrb.mxu3 %v3300_v0  ;;  %5052 = vst [vmem:[#allocation55_spill] sm:$0xff] %v3819_v13  ;;  %v5056_v18 = vld [vmem:[#allocation16_spill] sm:$0xff]  ;;  %v5073_v63 = vld [vmem:[#allocation23_spill] sm:$0xff]  ;;  %v4258_v13 = vld [vmem:[%s4887_s3 + $0x50] sm:$0xff] }
 0x105   :  { %953 = vmatpush.msra.mxu0 %v3049_v19  ;;  %973 = vmatpush.msra.mxu1 %v3054_v20  ;;  %v5057_v19 = vld [vmem:[#allocation4_spill] sm:$0xff]  ;;  %v5058_v20 = vld [vmem:[#allocation5_spill] sm:$0xff]  ;;  %5120 = vst [vmem:[#allocation63_spill] sm:$0xff] %v4258_v13 }
 0x106   :  { %993 = vmatpush.msrb.mxu2 %v3313_v3  ;;  %1013 = vmatpush.msrb.mxu3 %v3318_v4  ;;  %v5074_v0 = vld [vmem:[#allocation24_spill] sm:$0xff]  ;;  %v5076_v4 = vld [vmem:[#allocation13_spill] sm:$0xff] }
 0x107   :  { %954 = vmatpush.msra.mxu0 %v3066_v22  ;;  %974 = vmatpush.msra.mxu1 %v3071_v23  ;;  %v3841_v16 = vpop.f32.mrf.mxu1  ;;  %v312_v22 = vperm.slane %v310_v17, 0  ;;  %v5059_v23 = vld [vmem:[#allocation17_spill] sm:$0xff]  ;;  %v5075_v3 = vld [vmem:[#allocation12_spill] sm:$0xff] }
 0x108   :  { %994 = vmatpush.msrb.mxu2 %v3330_v6  ;;  %1014 = vmatpush.msrb.mxu3 %v3335_v7  ;;  %5055 = vst [vmem:[#allocation58_spill] sm:$0xff] %v3841_v16  ;;  %v5077_v6 = vld [vmem:[#allocation25_spill] sm:$0xff]  ;;  %v5078_v7 = vld [vmem:[#allocation26_spill] sm:$0xff]  ;;  %v4240_v16 = vld [vmem:[%s4887_s3 + $0x78] sm:$0xff] }
 0x109   :  { %955 = vmatpush.msra.mxu0 %v3082_v24  ;;  %975 = vmatpush.msra.mxu1 %v3087_v25  ;;  %v5060_v24 = vld [vmem:[#allocation18_spill] sm:$0xff]  ;;  %5117 = vst [vmem:[#allocation60_spill] sm:$0xff] %v4240_v16 }
 0x10a   :  { %995 = vmatpush.msrb.mxu2 %v3346_v8  ;;  %1015 = vmatpush.msrb.mxu3 %v3351_v9  ;;  %v5061_v25 = vld [vmem:[#allocation6_spill] sm:$0xff]  ;;  %v5080_v9 = vld [vmem:[#allocation15_spill] sm:$0xff] }
 0x10b   :  { %956 = vmatpush.msra.mxu0 %v3094_v26  ;;  %976 = vmatpush.msra.mxu1 %v3099_v27  ;;  %v3839_v15 = vpop.f32.mrf.mxu0  ;;  %v5062_v26 = vld [vmem:[#allocation7_spill] sm:$0xff]  ;;  %v5079_v8 = vld [vmem:[#allocation14_spill] sm:$0xff] }
 0x10c   :  { %996 = vmatpush.msrb.mxu2 %v3364_v44  ;;  %1016 = vmatpush.msrb.mxu3 %v3369_v45  ;;  %5054 = vst [vmem:[#allocation57_spill] sm:$0xff] %v3839_v15  ;;  %v5063_v27 = vld [vmem:[#allocation19_spill] sm:$0xff]  ;;  %v3882_v44 = vperm.slane %v310_v17, 1  ;;  %v4246_v15 = vld [vmem:[%s4887_s3 + $0x40] sm:$0xff] }
 0x10d   :  { %957 = vmatpush.msra.mxu0 %v3106_v28  ;;  %977 = vmatpush.msra.mxu1 %v3111_v29  ;;  %v5064_v28 = vld [vmem:[#allocation20_spill] sm:$0xff]  ;;  %v5082_v45 = vld [vmem:[#allocation27_spill] sm:$0xff]  ;;  %5118 = vst [vmem:[#allocation61_spill] sm:$0xff] %v4246_v15 }
 0x10e   :  { %997 = vmatpush.msrb.mxu2 %v3380_v46  ;;  %1017 = vmatpush.msrb.mxu3 %v3385_v47  ;;  %5081 = vst [vmem:[#allocation5_spill] sm:$0xff] %v3882_v44  ;;  %v5083_v46 = vld [vmem:[#allocation28_spill] sm:$0xff] }
 0x10f   :  { %958 = vmatpush.msra.mxu0 %v3123_v31  ;;  %978 = vmatpush.msra.mxu1 %v3128_v32  ;;  %v3864_v31 = vpop.f32.mrf.mxu1  ;;  %v5066_v32 = vld [vmem:[#allocation8_spill] sm:$0xff] }
 0x110   :  { %998 = vmatpush.msrb.mxu2 %v3397_v50  ;;  %1018 = vmatpush.msrb.mxu3 %v3402_v51  ;;  %5065 = vst [vmem:[#allocation16_spill] sm:$0xff] %v3864_v31  ;;  %v4228_v31 = vld [vmem:[%s4887_s3 + $0x68] sm:$0xff] }
 0x111   :  { %959 = vmatpush.msra.mxu0 %v3139_v33  ;;  %979 = vmatpush.msra.mxu1 %v3144_v34  ;;  %v5067_v33 = vld [vmem:[#allocation9_spill] sm:$0xff] }
 0x112   :  { %999 = vmatpush.msrb.mxu2 %v3413_v57  ;;  %1019 = vmatpush.msrb.mxu3 %v5056_v18 }
 0x113   :  { %960 = vmatpush.msra.mxu0 %v5057_v19  ;;  %980 = vmatpush.msra.mxu1 %v5058_v20  ;;  %v358_v29 = vpop.f32.mrf.mxu0 }
 0x114   :  { %1000 = vmatpush.msrb.mxu2 %v5059_v23  ;;  %1020 = vmatpush.msrb.mxu3 %v5060_v24  ;;  %v3868_v34 = vadd.f32 %v358_v29, %v312_v22  ;;  %v5101_v29 = vld [vmem:[#allocation46_spill] sm:$0xff] }
 0x115   :  { %961 = vmatpush.msra.mxu0 %v5061_v25  ;;  %981 = vmatpush.msra.mxu1 %v5062_v26  ;;  %v5098_v25 = vld [vmem:[#allocation43_spill] sm:$0xff]  ;;  %v5099_v26 = vld [vmem:[#allocation45_spill] sm:$0xff] }
 0x116   :  { %1001 = vmatpush.msrb.mxu2 %v5063_v27  ;;  %1021 = vmatpush.msrb.mxu3 %v5064_v28  ;;  %5068 = vst [vmem:[#allocation4_spill] sm:$0xff] %v3868_v34  ;;  %v123_v27 = vadd.f32 %v5099_v26, %v5098_v25  ;;  %v5100_v28 = vld [vmem:[#allocation44_spill] sm:$0xff] }
 0x117   :  { %962 = vmatpush.msra.mxu0 %v5066_v32  ;;  %982 = vmatpush.msra.mxu1 %v5067_v33  ;;  %v402_v50 = vpop.f32.mrf.mxu1  ;;  %v164_v32 = vadd.f32 %v5101_v29, %v5100_v28  ;;  %v4222_v34 = vld [vmem:[%s4887_s3 + $0x60] sm:$0xff] }
 0x118   :  { %1002 = vmatpush.msrb.mxu2 %v5069_v55  ;;  %1022 = vmatpush.msrb.mxu3 %v5070_v56  ;;  %v3889_v57 = vadd.f32 %v402_v50, %v3882_v44 }
 0x119   :  { %963 = vmatpush.msra.mxu0 %v5071_v59  ;;  %983 = vmatpush.msra.mxu1 %v5072_v60 }
 0x11a   :  { %1003 = vmatpush.msrb.mxu2 %v5073_v63  ;;  %1023 = vmatpush.msrb.mxu3 %v5074_v0  ;;  %5085 = vst [vmem:[#allocation18_spill] sm:$0xff] %v3889_v57  ;;  %v4216_v57 = vld [vmem:[%s4887_s3 + $0x98] sm:$0xff] }
 0x11b   :  { %964 = vmatpush.msra.mxu0 %v5075_v3  ;;  %984 = vmatpush.msra.mxu1 %v5076_v4  ;;  %v361_v47 = vpop.f32.mrf.mxu0  ;;  %5113 = vst [vmem:[#allocation46_spill] sm:$0xff] %v4216_v57 }
 0x11c   :  { %1004 = vmatpush.msrb.mxu2 %v5077_v6  ;;  %1024 = vmatpush.msrb.mxu3 %v5078_v7  ;;  %v3886_v51 = vadd.f32 %v361_v47, %v312_v22 }
 0x11d   :  { %965 = vmatpush.msra.mxu0 %v5079_v8  ;;  %985 = vmatpush.msra.mxu1 %v5080_v9 }
 0x11e   :  { %1005 = vmatpush.msrb.mxu2 %v5082_v45  ;;  %1025 = vmatpush.msrb.mxu3 %v5083_v46  ;;  %5084 = vst [vmem:[#allocation17_spill] sm:$0xff] %v3886_v51  ;;  %v4210_v51 = vld [vmem:[%s4887_s3 + $0x90] sm:$0xff] }
 0x11f   :  { %v405_v39 = vpop.f32.mrf.mxu1  ;;  %5112 = vst [vmem:[#allocation45_spill] sm:$0xff] %v4210_v51 }
 0x120   :  { %v3894_v43 = vadd.f32 %v405_v39, %v3882_v44 }
 0x122   :  { %5087 = vst [vmem:[#allocation7_spill] sm:$0xff] %v3894_v43  ;;  %v4204_v43 = vld [vmem:[%s4887_s3 + $0x88] sm:$0xff] }
 0x123   :  { %v364_v58 = vpop.f32.mrf.mxu0  ;;  %5111 = vst [vmem:[#allocation28_spill] sm:$0xff] %v4204_v43 }
 0x124   :  { %v3891_v40 = vadd.f32 %v364_v58, %v312_v22  ;;  %v5103_v58 = vld [vmem:[#allocation30_spill] sm:$0xff] }
 0x125   :  { %5115 = vst [vmem:[#allocation30_spill] sm:$0xff] %v4228_v31 }
 0x126   :  { %5086 = vst [vmem:[#allocation6_spill] sm:$0xff] %v3891_v40  ;;  %v4198_v40 = vld [vmem:[%s4887_s3 + $0x80] sm:$0xff] }
 0x127   :  { %v408_v2 = vpop.f32.mrf.mxu1  ;;  %5110 = vst [vmem:[#allocation27_spill] sm:$0xff] %v4198_v40 }
 0x128   :  { %v3899_v10 = vadd.f32 %v408_v2, %v3882_v44 }
 0x12a   :  { %5089 = vst [vmem:[#allocation20_spill] sm:$0xff] %v3899_v10  ;;  %v4192_v10 = vld [vmem:[%s4887_s3 + $0xb8] sm:$0xff] }
 0x12b   :  { %v367_v49 = vpop.f32.mrf.mxu0  ;;  %5109 = vst [vmem:[#allocation15_spill] sm:$0xff] %v4192_v10 }
 0x12c   :  { %v3896_v53 = vadd.f32 %v367_v49, %v312_v22 }
 0x12e   :  { %5088 = vst [vmem:[#allocation19_spill] sm:$0xff] %v3896_v53  ;;  %v4186_v53 = vld [vmem:[%s4887_s3 + $0xb0] sm:$0xff] }
 0x12f   :  { %v411_v54 = vpop.f32.mrf.mxu1  ;;  %5108 = vst [vmem:[#allocation14_spill] sm:$0xff] %v4186_v53 }
 0x130   :  { %v3904_v41 = vadd.f32 %v411_v54, %v3882_v44 }
 0x132   :  { %5091 = vst [vmem:[#allocation9_spill] sm:$0xff] %v3904_v41  ;;  %v4180_v41 = vld [vmem:[%s4887_s3 + $0xa8] sm:$0xff] }
 0x133   :  { %v370_v1 = vpop.f32.mrf.mxu0  ;;  %5107 = vst [vmem:[#allocation26_spill] sm:$0xff] %v4180_v41 }
 0x134   :  { %v3901_v38 = vadd.f32 %v370_v1, %v312_v22 }
 0x136   :  { %5090 = vst [vmem:[#allocation8_spill] sm:$0xff] %v3901_v38  ;;  %v4174_v38 = vld [vmem:[%s4887_s3 + $0xa0] sm:$0xff] }
 0x137   :  { %5106 = vst [vmem:[#allocation25_spill] sm:$0xff] %v4174_v38 }
 0x13a   :  { %v414_v42 = vpop.f32.mrf.mxu1 }
 0x13b   :  { %v373_v62 = vpop.f32.mrf.mxu0  ;;  %v3909_v61 = vadd.f32 %v414_v42, %v3882_v44 }
 0x13c   :  { %v3906_v5 = vadd.f32 %v373_v62, %v312_v22 }
 0x13d   :  { %5093 = vst [vmem:[#allocation22_spill] sm:$0xff] %v3909_v61  ;;  %v4168_v61 = vld [vmem:[%s4887_s3 + $0xd8] sm:$0xff] }
 0x13e   :  { %5092 = vst [vmem:[#allocation21_spill] sm:$0xff] %v3906_v5  ;;  %v4162_v5 = vld [vmem:[%s4887_s3 + $0xd0] sm:$0xff] }
 0x13f   :  { %5104 = vst [vmem:[#allocation12_spill] sm:$0xff] %v4162_v5 }
 0x140   :  { %5105 = vst [vmem:[#allocation13_spill] sm:$0xff] %v4168_v61 }
 0x142   :  { %v417_v12 = vpop.f32.mrf.mxu1 }
 0x143   :  { %v376_v30 = vpop.f32.mrf.mxu0  ;;  %v3914_v18 = vadd.f32 %v417_v12, %v3882_v44 }
 0x144   :  { %v3911_v17 = vadd.f32 %v376_v30, %v312_v22 }
 0x145   :  { %5095 = vst [vmem:[#allocation11_spill] sm:$0xff] %v3914_v18  ;;  %v4156_v18 = vld [vmem:[%s4887_s3 + $0xc8] sm:$0xff] }
 0x146   :  { %5094 = vst [vmem:[#allocation10_spill] sm:$0xff] %v3911_v17  ;;  %v4150_v17 = vld [vmem:[%s4887_s3 + $0xc0] sm:$0xff] }
 0x14a   :  { %v420_v20 = vpop.f32.mrf.mxu1 }
 0x14b   :  { %v379_v19 = vpop.f32.mrf.mxu0  ;;  %v3919_v24 = vadd.f32 %v420_v20, %v3882_v44  ;;  %v4234_v44 = vld [vmem:[%s4887_s3 + $0x70] sm:$0xff] }
 0x14c   :  { %v3916_v23 = vadd.f32 %v379_v19, %v312_v22  ;;  %v5102_v22 = vld [vmem:[#allocation29_spill] sm:$0xff]  ;;  %5116 = vst [vmem:[#allocation59_spill] sm:$0xff] %v4234_v44 }
 0x14d   :  { %5097 = vst [vmem:[#allocation24_spill] sm:$0xff] %v3919_v24  ;;  %v4144_v24 = vld [vmem:[%s4887_s3 + $0xf8] sm:$0xff] }
 0x14e   :  { %5096 = vst [vmem:[#allocation23_spill] sm:$0xff] %v3916_v23  ;;  %v4138_v23 = vld [vmem:[%s4887_s3 + $0xf0] sm:$0xff] }
 0x14f   :  { %5114 = vst [vmem:[#allocation29_spill] sm:$0xff] %v4222_v34 }
 0x17a   :  { %v673_v33 = vpop.f32.mrf.mxu0  ;;  %v693_v55 = vpop.f32.mrf.mxu1 }
 0x17b   :  { %v674_v56 = vadd.f32 %v673_v33, %v123_v27  ;;  %v694_v59 = vadd.f32 %v693_v55, %v164_v32 }
 0x17d   :  { %v2569_v60 = vmul.f32 -1.442695, %v674_v56  ;;  %v2570_v63 = vmul.f32 -1.442695, %v694_v59 }
 0x17f   :  { %2639 = vpow2.f32 %v2569_v60 }
 0x180   :  { %2641 = vpow2.f32 %v2570_v63 }
 0x181   :  { %v713_v0 = vpop.f32.mrf.mxu2  ;;  %v733_v45 = vpop.f32.mrf.mxu3 }
 0x182   :  { %v714_v3 = vadd.f32 %v713_v0, %v5102_v22  ;;  %v734_v39 = vadd.f32 %v733_v45, %v5103_v58 }
 0x184   :  { %v2571_v4 = vmul.f32 -1.442695, %v714_v3 }
 0x185   :  { %v2640_v6 = vpop.eup %2639 }
 0x186   :  { %v2642_v7 = vpop.eup %2641  ;;  %v745_v8 = vadd.f32 1.0, %v2640_v6  ;;  %2643 = vpow2.f32 %v2571_v4 }
 0x187   :  { %v746_v9 = vadd.f32 1.0, %v2642_v7 }
 0x188   :  { %2645 = vrcp.f32 %v745_v8  ;;  %v759_v42 = vand.u32 2147483648, %v745_v8  ;;  %v757_v19 = vand.u32 2147483647, %v745_v8  ;;  %vm753_vm0 = vweird.f32 %v745_v8 }
 0x189   :  { %2647 = vrcp.f32 %v746_v9  ;;  %v774_v30 = vand.u32 2147483648, %v746_v9  ;;  %v772_v26 = vand.u32 2147483647, %v746_v9  ;;  %vm768_vm1 = vweird.f32 %v746_v9 }
 0x18a   :  { %v760_v33 = vor.u32 1.1754944e-38, %v759_v42  ;;  %vm758_vm4 = vcmp.eq.f32.partialorder %v757_v19, 8.507059e+37  ;;  %v3964_v42 = vld [vmem:[%s4887_s3 + $0x1c8] sm:$0xff]  ;;  %v3982_v19 = vld [vmem:[%s4887_s3 + $0x1a0] sm:$0xff] }
 0x18b   :  { %v775_v56 = vor.u32 1.1754944e-38, %v774_v30  ;;  %vm773_vm5 = vcmp.eq.f32.partialorder %v772_v26, 8.507059e+37  ;;  %v3970_v30 = vld [vmem:[%s4887_s3 + $0x1d0] sm:$0xff] }
 0x18c   :  { %v2644_v46 = vpop.eup %2643  ;;  %v3994_v26 = vld [vmem:[%s4887_s3 + $0x1b0] sm:$0xff] }
 0x18d   :  { %v747_v47 = vadd.f32 1.0, %v2644_v46 }
 0x18e   :  { %v2646_v50 = vpop.eup %2645 }
 0x18f   :  { %v2648_v49 = vpop.eup %2647  ;;  %v749_v2 = vmul.f32 %v2646_v50, %v745_v8  ;;  %2649 = vrcp.f32 %v747_v47  ;;  %vm754_vm14 = vweird.f32 %v2646_v50  ;;  %v789_v45 = vand.u32 2147483648, %v747_v47 }
 0x190   :  { %v764_v1 = vmul.f32 %v2648_v49, %v746_v9  ;;  %2651 = vtanh.f32 %v734_v39  ;;  %vm769_vm15 = vweird.f32 %v2648_v49  ;;  %vm755_vm2 = vmor %vm753_vm0, %vm754_vm14  ;;  %vm783_vm7 = vweird.f32 %v747_v47 }
 0x191   :  { %v750_v54 = vsub.f32 1.0, %v749_v2  ;;  %vm770_vm3 = vmor %vm768_vm1, %vm769_vm15  ;;  %v787_v46 = vand.u32 2147483647, %v747_v47  ;;  %v790_v58 = vor.u32 1.1754944e-38, %v789_v45  ;;  %v4096_v45 = vld [vmem:[%s4887_s3 + $0x138] sm:$0xff] }
 0x192   :  { %v765_v62 = vsub.f32 1.0, %v764_v1  ;;  %v3946_v1 = vld [vmem:[%s4887_s3 + $0x1f0] sm:$0xff] }
 0x193   :  { %v751_v12 = vmul.f32 %v2646_v50, %v750_v54  ;;  %vm788_vm9 = vcmp.eq.f32.partialorder %v787_v46, 8.507059e+37  ;;  %v3952_v54 = vld [vmem:[%s4887_s3 + $0x1f8] sm:$0xff]  ;;  %v4102_v46 = vld [vmem:[%s4887_s3 + $0x100] sm:$0xff] }
 0x194   :  { %v766_v20 = vmul.f32 %v2648_v49, %v765_v62  ;;  %v3958_v62 = vld [vmem:[%s4887_s3 + $0x1c0] sm:$0xff] }
 0x195   :  { %v2650_v27 = vpop.eup %2649  ;;  %v752_v29 = vadd.f32 %v2646_v50, %v751_v12  ;;  %v3976_v12 = vld [vmem:[%s4887_s3 + $0x1d8] sm:$0xff] }
 0x196   :  { %v779_v32 = vmul.f32 %v2650_v27, %v747_v47  ;;  %v767_v55 = vadd.f32 %v2648_v49, %v766_v20  ;;  %v2652_v60 = vpop.eup %2651  ;;  %vm784_vm6 = vweird.f32 %v2650_v27  ;;  %v3940_v47 = vld [vmem:[%s4887_s3 + $0x1e8] sm:$0xff] }
 0x197   :  { %v756_v59 = vsel %vm755_vm2, %v2646_v50, %v752_v29  ;;  %vm785_vm8 = vmor %vm783_vm7, %vm784_vm6  ;;  %v3988_v20 = vld [vmem:[%s4887_s3 + $0x1a8] sm:$0xff]  ;;  %v4006_v29 = vld [vmem:[%s4887_s3 + $0x180] sm:$0xff] }
 0x198   :  { %v780_v63 = vsub.f32 1.0, %v779_v32  ;;  %v761_v0 = vsel %vm758_vm4, %v760_v33, %v756_v59  ;;  %v771_v22 = vsel %vm770_vm3, %v2648_v49, %v767_v55  ;;  %v4012_v32 = vld [vmem:[%s4887_s3 + $0x188] sm:$0xff]  ;;  %v4018_v33 = vld [vmem:[%s4887_s3 + $0x190] sm:$0xff]  ;;  %v4024_v55 = vld [vmem:[%s4887_s3 + $0x198] sm:$0xff] }
 0x199   :  { %v776_v3 = vsel %vm773_vm5, %v775_v56, %v771_v22  ;;  %v795_v4 = vmul.f32 %v2652_v60, %v761_v0  ;;  %v4030_v56 = vld [vmem:[%s4887_s3 + $0x160] sm:$0xff]  ;;  %v4036_v59 = vld [vmem:[%s4887_s3 + $0x168] sm:$0xff]  ;;  %v4042_v60 = vld [vmem:[%s4887_s3 + $0x170] sm:$0xff] }
 0x19a   :  { %v794_v6 = vmul.f32 %v776_v3, %v3794_v35  ;;  %v781_v7 = vmul.f32 %v2650_v27, %v780_v63  ;;  %v3934_v35 = vld [vmem:[%s4887_s3 + $0x1e0] sm:$0xff]  ;;  %v4048_v63 = vld [vmem:[%s4887_s3 + $0x178] sm:$0xff]  ;;  %v4060_v22 = vld [vmem:[%s4887_s3 + $0x148] sm:$0xff] }
 0x19b   :  { %v4054_v0 = vld [vmem:[%s4887_s3 + $0x140] sm:$0xff]  ;;  %v4066_v3 = vld [vmem:[%s4887_s3 + $0x150] sm:$0xff] }
 0x19c   :  { %v3928_v8 = vadd.f32 %v795_v4, %v794_v6  ;;  %v782_v9 = vadd.f32 %v2650_v27, %v781_v7  ;;  %v4072_v4 = vld [vmem:[%s4887_s3 + $0x158] sm:$0xff]  ;;  %v4078_v6 = vld [vmem:[%s4887_s3 + $0x120] sm:$0xff]  ;;  %v4084_v7 = vld [vmem:[%s4887_s3 + $0x128] sm:$0xff] }
 0x19e   :  { %2653 = vtanh.f32 %v3928_v8  ;;  %v786_v50 = vsel %vm785_vm8, %v2650_v27, %v782_v9  ;;  %v4000_v27 = vld [vmem:[%s4887_s3 + $0x1b8] sm:$0xff]  ;;  %v4090_v9 = vld [vmem:[%s4887_s3 + $0x130] sm:$0xff] }
 0x19f   :  { %v791_v49 = vsel %vm788_vm9, %v790_v58, %v786_v50  ;;  %v4108_v50 = vld [vmem:[%s4887_s3 + $0x108] sm:$0xff]  ;;  %v4114_v58 = vld [vmem:[%s4887_s3 + $0x110] sm:$0xff] }
 0x1a4   :  { %v2654_v39 = vpop.eup %2653 }
 0x1a5   :  { %v798_v2 = vmul.f32 %v2654_v39, %v791_v49  ;;  %v4120_v39 = vld [vmem:[%s4887_s3 + $0x118] sm:$0xff]  ;;  %v4126_v49 = vld [vmem:[%s4887_s3 + $0xe0] sm:$0xff] }
 0x1a7   :  { %819 = vmatmul.f32.vlgmr.msrb.gmra.mxu0 %v798_v2  ;;  %839 = vmatmul.f32.vlgmr.msrb.gmra.mxu1 %v798_v2 }
 0x1a8   :  { %859 = vmatmul.f32.vlgmr.msra.gmra.mxu2 %v798_v2  ;;  %879 = vmatmul.f32.vlgmr.msra.gmra.mxu3 %v798_v2  ;;  %v4132_v2 = vld [vmem:[%s4887_s3 + $0xe8] sm:$0xff] }
 0x1a9   :  { %1097 = vmatpush.msrb.mxu0 %v3934_v35  ;;  %1117 = vmatpush.msrb.mxu1 %v3940_v47 }
 0x1aa   :  { %1137 = vmatpush.msra.mxu2 %v3946_v1  ;;  %1157 = vmatpush.msra.mxu3 %v3952_v54 }
 0x1ab   :  { %1098 = vmatpush.msrb.mxu0 %v3958_v62  ;;  %1118 = vmatpush.msrb.mxu1 %v3964_v42 }
 0x1ac   :  { %1138 = vmatpush.msra.mxu2 %v3970_v30  ;;  %1158 = vmatpush.msra.mxu3 %v3976_v12 }
 0x1ad   :  { %1099 = vmatpush.msrb.mxu0 %v3982_v19  ;;  %1119 = vmatpush.msrb.mxu1 %v3988_v20 }
 0x1ae   :  { %1139 = vmatpush.msra.mxu2 %v3994_v26  ;;  %1159 = vmatpush.msra.mxu3 %v4000_v27 }
 0x1af   :  { %1100 = vmatpush.msrb.mxu0 %v4006_v29  ;;  %1120 = vmatpush.msrb.mxu1 %v4012_v32 }
 0x1b0   :  { %1140 = vmatpush.msra.mxu2 %v4018_v33  ;;  %1160 = vmatpush.msra.mxu3 %v4024_v55 }
 0x1b1   :  { %1101 = vmatpush.msrb.mxu0 %v4030_v56  ;;  %1121 = vmatpush.msrb.mxu1 %v4036_v59 }
 0x1b2   :  { %1141 = vmatpush.msra.mxu2 %v4042_v60  ;;  %1161 = vmatpush.msra.mxu3 %v4048_v63 }
 0x1b3   :  { %1102 = vmatpush.msrb.mxu0 %v4054_v0  ;;  %1122 = vmatpush.msrb.mxu1 %v4060_v22 }
 0x1b4   :  { %1142 = vmatpush.msra.mxu2 %v4066_v3  ;;  %1162 = vmatpush.msra.mxu3 %v4072_v4 }
 0x1b5   :  { %1103 = vmatpush.msrb.mxu0 %v4078_v6  ;;  %1123 = vmatpush.msrb.mxu1 %v4084_v7 }
 0x1b6   :  { %1143 = vmatpush.msra.mxu2 %v4090_v9  ;;  %1163 = vmatpush.msra.mxu3 %v4096_v45 }
 0x1b7   :  { %1104 = vmatpush.msrb.mxu0 %v4102_v46  ;;  %1124 = vmatpush.msrb.mxu1 %v4108_v50 }
 0x1b8   :  { %1144 = vmatpush.msra.mxu2 %v4114_v58  ;;  %1164 = vmatpush.msra.mxu3 %v4120_v39 }
 0x1b9   :  { %1105 = vmatpush.msrb.mxu0 %v4126_v49  ;;  %1125 = vmatpush.msrb.mxu1 %v4132_v2 }
 0x1ba   :  { %1145 = vmatpush.msra.mxu2 %v4138_v23  ;;  %1165 = vmatpush.msra.mxu3 %v4144_v24 }
 0x1bb   :  { %1106 = vmatpush.msrb.mxu0 %v4150_v17  ;;  %1126 = vmatpush.msrb.mxu1 %v4156_v18 }
 0x1bc   :  { %1146 = vmatpush.msra.mxu2 %v4162_v5  ;;  %1166 = vmatpush.msra.mxu3 %v4168_v61 }
 0x1bd   :  { %1107 = vmatpush.msrb.mxu0 %v4174_v38  ;;  %1127 = vmatpush.msrb.mxu1 %v4180_v41 }
 0x1be   :  { %1147 = vmatpush.msra.mxu2 %v4186_v53  ;;  %1167 = vmatpush.msra.mxu3 %v4192_v10 }
 0x1bf   :  { %1108 = vmatpush.msrb.mxu0 %v4198_v40  ;;  %1128 = vmatpush.msrb.mxu1 %v4204_v43 }
 0x1c0   :  { %1148 = vmatpush.msra.mxu2 %v4210_v51  ;;  %1168 = vmatpush.msra.mxu3 %v4216_v57 }
 0x1c1   :  { %1109 = vmatpush.msrb.mxu0 %v4222_v34  ;;  %1129 = vmatpush.msrb.mxu1 %v4228_v31  ;;  %v5132_v34 = vld [vmem:[#allocation31_spill] sm:$0xff] }
 0x1c2   :  { %1149 = vmatpush.msra.mxu2 %v4234_v44  ;;  %1169 = vmatpush.msra.mxu3 %v4240_v16 }
 0x1c3   :  { %1110 = vmatpush.msrb.mxu0 %v4246_v15  ;;  %1130 = vmatpush.msrb.mxu1 %v4252_v14 }
 0x1c4   :  { %1150 = vmatpush.msra.mxu2 %v4258_v13  ;;  %1170 = vmatpush.msra.mxu3 %v4264_v11  ;;  %v5131_v11 = vld [vmem:[#allocation48_spill] sm:$0xff] }
 0x1c5   :  { %1111 = vmatpush.msrb.mxu0 %v4270_v36  ;;  %1131 = vmatpush.msrb.mxu1 %v4276_v48  ;;  %v4300_v48 = vld [vmem:[%s4887_s3 + $0x8] sm:$0xff] }
 0x1c6   :  { %1151 = vmatpush.msra.mxu2 %v4282_v52  ;;  %1171 = vmatpush.msra.mxu3 %v4288_v21  ;;  %5127 = vst [vmem:[#allocation70_spill] sm:$0xff] %v4300_v48  ;;  %v4306_v52 = vld [vmem:[%s4887_s3 + $0x10] sm:$0xff]  ;;  %v4312_v21 = vld [vmem:[%s4887_s3 + $0x18] sm:$0xff] }
 0x1c7   :  { %1112 = vmatpush.msrb.mxu0 %v4294_v37  ;;  %1132 = vmatpush.msrb.mxu1 %v4300_v48  ;;  %5128 = vst [vmem:[#allocation71_spill] sm:$0xff] %v4306_v52  ;;  %v5130_v37 = vld [vmem:[#allocation47_spill] sm:$0xff]  ;;  %v167_v48 = vadd.f32 %v5131_v11, %v5100_v28 }
 0x1c8   :  { %1152 = vmatpush.msra.mxu2 %v4306_v52  ;;  %5129 = vst [vmem:[#allocation72_spill] sm:$0xff] %v4312_v21  ;;  %1172 = vmatpush.msra.mxu3 %v4312_v21  ;;  %v126_v36 = vadd.f32 %v5130_v37, %v5098_v25 }
 0x224   :  { %v820_v13 = vpop.f32.mrf.mxu0  ;;  %v840_v14 = vpop.f32.mrf.mxu1 }
 0x225   :  { %v821_v15 = vadd.f32 %v820_v13, %v126_v36  ;;  %v841_v16 = vadd.f32 %v840_v14, %v167_v48  ;;  %v5133_v48 = vld [vmem:[#allocation32_spill] sm:$0xff] }
 0x227   :  { %v2572_v44 = vmul.f32 -1.442695, %v821_v15  ;;  %v2573_v31 = vmul.f32 -1.442695, %v841_v16 }
 0x229   :  { %2655 = vpow2.f32 %v2572_v44 }
 0x22a   :  { %2657 = vpow2.f32 %v2573_v31 }
 0x22b   :  { %v860_v52 = vpop.f32.mrf.mxu2  ;;  %v880_v11 = vpop.f32.mrf.mxu3 }
 0x22c   :  { %v861_v57 = vadd.f32 %v860_v52, %v5132_v34  ;;  %v881_v13 = vadd.f32 %v880_v11, %v5133_v48 }
 0x22e   :  { %v2574_v51 = vmul.f32 -1.442695, %v861_v57 }
 0x22f   :  { %v2656_v43 = vpop.eup %2655 }
 0x230   :  { %v2658_v21 = vpop.eup %2657  ;;  %v892_v40 = vadd.f32 1.0, %v2656_v43  ;;  %2659 = vpow2.f32 %v2574_v51 }
 0x231   :  { %v893_v37 = vadd.f32 1.0, %v2658_v21 }
 0x232   :  { %2661 = vrcp.f32 %v892_v40  ;;  %v906_v34 = vand.u32 2147483648, %v892_v40  ;;  %v904_v21 = vand.u32 2147483647, %v892_v40  ;;  %vm900_vm12 = vweird.f32 %v892_v40 }
 0x233   :  { %2663 = vrcp.f32 %v893_v37  ;;  %v921_v44 = vand.u32 2147483648, %v893_v37  ;;  %v919_v43 = vand.u32 2147483647, %v893_v37  ;;  %vm915_vm13 = vweird.f32 %v893_v37 }
 0x234   :  { %v907_v48 = vor.u32 1.1754944e-38, %v906_v34  ;;  %vm905_vm0 = vcmp.eq.f32.partialorder %v904_v21, 8.507059e+37 }
 0x235   :  { %vm920_vm1 = vcmp.eq.f32.partialorder %v919_v43, 8.507059e+37  ;;  %v5141_v43 = vld [vmem:[#allocation28_spill] sm:$0xff] }
 0x236   :  { %v2660_v28 = vpop.eup %2659 }
 0x237   :  { %v894_v25 = vadd.f32 1.0, %v2660_v28 }
 0x238   :  { %v2662_v36 = vpop.eup %2661 }
 0x239   :  { %v2664_v14 = vpop.eup %2663  ;;  %v896_v15 = vmul.f32 %v2662_v36, %v892_v40  ;;  %2665 = vrcp.f32 %v894_v25  ;;  %vm901_vm10 = vweird.f32 %v2662_v36  ;;  %v936_v34 = vand.u32 2147483648, %v894_v25 }
 0x23a   :  { %v911_v16 = vmul.f32 %v2664_v14, %v893_v37  ;;  %2667 = vtanh.f32 %v881_v13  ;;  %vm916_vm11 = vweird.f32 %v2664_v14  ;;  %vm902_vm14 = vmor %vm900_vm12, %vm901_vm10  ;;  %vm930_vm3 = vweird.f32 %v894_v25 }
 0x23b   :  { %v897_v31 = vsub.f32 1.0, %v896_v15  ;;  %vm917_vm15 = vmor %vm915_vm13, %vm916_vm11  ;;  %v922_v15 = vor.u32 1.1754944e-38, %v921_v44  ;;  %v937_v21 = vor.u32 1.1754944e-38, %v936_v34  ;;  %v5152_v34 = vld [vmem:[#allocation65_spill] sm:$0xff] }
 0x23c   :  { %v912_v52 = vsub.f32 1.0, %v911_v16 }
 0x23d   :  { %v898_v57 = vmul.f32 %v2662_v36, %v897_v31 }
 0x23e   :  { %v913_v51 = vmul.f32 %v2664_v14, %v912_v52 }
 0x23f   :  { %v2666_v10 = vpop.eup %2665  ;;  %v899_v28 = vadd.f32 %v2662_v36, %v898_v57 }
 0x240   :  { %v926_v11 = vmul.f32 %v2666_v10, %v894_v25  ;;  %v914_v53 = vadd.f32 %v2664_v14, %v913_v51  ;;  %v2668_v13 = vpop.eup %2667  ;;  %vm931_vm2 = vweird.f32 %v2666_v10  ;;  %v5140_v51 = vld [vmem:[#allocation27_spill] sm:$0xff] }
 0x241   :  { %v903_v16 = vsel %vm902_vm14, %v2662_v36, %v899_v28  ;;  %v934_v36 = vand.u32 2147483647, %v894_v25  ;;  %vm932_vm4 = vmor %vm930_vm3, %vm931_vm2  ;;  %v5138_v25 = vld [vmem:[#allocation14_spill] sm:$0xff]  ;;  %v5142_v28 = vld [vmem:[#allocation45_spill] sm:$0xff] }
 0x242   :  { %v927_v41 = vsub.f32 1.0, %v926_v11  ;;  %v908_v31 = vsel %vm905_vm0, %v907_v48, %v903_v16  ;;  %v918_v38 = vsel %vm917_vm15, %v2664_v14, %v914_v53  ;;  %v5143_v11 = vld [vmem:[#allocation46_spill] sm:$0xff]  ;;  %v5144_v48 = vld [vmem:[#allocation29_spill] sm:$0xff]  ;;  %v5146_v16 = vld [vmem:[#allocation59_spill] sm:$0xff] }
 0x243   :  { %v923_v52 = vsel %vm920_vm1, %v922_v15, %v918_v38  ;;  %v942_v61 = vmul.f32 %v2668_v13, %v908_v31  ;;  %vm935_vm5 = vcmp.eq.f32.partialorder %v934_v36, 8.507059e+37  ;;  %v5145_v15 = vld [vmem:[#allocation30_spill] sm:$0xff]  ;;  %v5147_v13 = vld [vmem:[#allocation60_spill] sm:$0xff]  ;;  %v5148_v31 = vld [vmem:[#allocation61_spill] sm:$0xff] }
 0x244   :  { %v941_v5 = vmul.f32 %v923_v52, %v3928_v8  ;;  %v928_v57 = vmul.f32 %v2666_v10, %v927_v41  ;;  %v5135_v41 = vld [vmem:[#allocation13_spill] sm:$0xff]  ;;  %v5139_v8 = vld [vmem:[#allocation15_spill] sm:$0xff]  ;;  %v5149_v52 = vld [vmem:[#allocation62_spill] sm:$0xff] }
 0x245   :  { %v5153_v36 = vld [vmem:[#allocation66_spill] sm:$0xff] }
 0x246   :  { %v4322_v40 = vadd.f32 %v942_v61, %v941_v5  ;;  %v929_v37 = vadd.f32 %v2666_v10, %v928_v57  ;;  %v5136_v5 = vld [vmem:[#allocation25_spill] sm:$0xff]  ;;  %v5137_v61 = vld [vmem:[#allocation26_spill] sm:$0xff]  ;;  %v5150_v57 = vld [vmem:[#allocation63_spill] sm:$0xff] }
 0x248   :  { %2669 = vtanh.f32 %v4322_v40  ;;  %v933_v44 = vsel %vm932_vm4, %v2666_v10, %v929_v37  ;;  %v5134_v10 = vld [vmem:[#allocation12_spill] sm:$0xff] }
 0x249   :  { %v938_v14 = vsel %vm935_vm5, %v937_v21, %v933_v44  ;;  %v5151_v37 = vld [vmem:[#allocation64_spill] sm:$0xff]  ;;  %v5154_v44 = vld [vmem:[#allocation67_spill] sm:$0xff] }
 0x24a   :  { %v5155_v21 = vld [vmem:[#allocation68_spill] sm:$0xff] }
 0x24e   :  { %v2670_v53 = vpop.eup %2669 }
 0x24f   :  { %v945_v38 = vmul.f32 %v2670_v53, %v938_v14  ;;  %v5156_v53 = vld [vmem:[#allocation69_spill] sm:$0xff]  ;;  %v5157_v14 = vld [vmem:[#allocation70_spill] sm:$0xff] }
 0x251   :  { %966 = vmatmul.f32.vlgmr.msra.gmra.mxu0 %v945_v38  ;;  %986 = vmatmul.f32.vlgmr.msra.gmra.mxu1 %v945_v38 }
 0x252   :  { %1006 = vmatmul.f32.vlgmr.msrb.gmra.mxu2 %v945_v38  ;;  %1026 = vmatmul.f32.vlgmr.msrb.gmra.mxu3 %v945_v38  ;;  %v5158_v38 = vld [vmem:[#allocation71_spill] sm:$0xff] }
 0x253   :  { %1244 = vmatpush.msra.mxu0 %v3934_v35  ;;  %1264 = vmatpush.msra.mxu1 %v3940_v47 }
 0x254   :  { %1284 = vmatpush.msrb.mxu2 %v3946_v1  ;;  %1304 = vmatpush.msrb.mxu3 %v3952_v54 }
 0x255   :  { %1245 = vmatpush.msra.mxu0 %v3958_v62  ;;  %1265 = vmatpush.msra.mxu1 %v3964_v42 }
 0x256   :  { %1285 = vmatpush.msrb.mxu2 %v3970_v30  ;;  %1305 = vmatpush.msrb.mxu3 %v3976_v12 }
 0x257   :  { %1246 = vmatpush.msra.mxu0 %v3982_v19  ;;  %1266 = vmatpush.msra.mxu1 %v3988_v20 }
 0x258   :  { %1286 = vmatpush.msrb.mxu2 %v3994_v26  ;;  %1306 = vmatpush.msrb.mxu3 %v4000_v27 }
 0x259   :  { %1247 = vmatpush.msra.mxu0 %v4006_v29  ;;  %1267 = vmatpush.msra.mxu1 %v4012_v32 }
 0x25a   :  { %1287 = vmatpush.msrb.mxu2 %v4018_v33  ;;  %1307 = vmatpush.msrb.mxu3 %v4024_v55 }
 0x25b   :  { %1248 = vmatpush.msra.mxu0 %v4030_v56  ;;  %1268 = vmatpush.msra.mxu1 %v4036_v59 }
 0x25c   :  { %1288 = vmatpush.msrb.mxu2 %v4042_v60  ;;  %1308 = vmatpush.msrb.mxu3 %v4048_v63 }
 0x25d   :  { %1249 = vmatpush.msra.mxu0 %v4054_v0  ;;  %1269 = vmatpush.msra.mxu1 %v4060_v22 }
 0x25e   :  { %1289 = vmatpush.msrb.mxu2 %v4066_v3  ;;  %1309 = vmatpush.msrb.mxu3 %v4072_v4 }
 0x25f   :  { %1250 = vmatpush.msra.mxu0 %v4078_v6  ;;  %1270 = vmatpush.msra.mxu1 %v4084_v7 }
 0x260   :  { %1290 = vmatpush.msrb.mxu2 %v4090_v9  ;;  %1310 = vmatpush.msrb.mxu3 %v4096_v45 }
 0x261   :  { %1251 = vmatpush.msra.mxu0 %v4102_v46  ;;  %1271 = vmatpush.msra.mxu1 %v4108_v50 }
 0x262   :  { %1291 = vmatpush.msrb.mxu2 %v4114_v58  ;;  %1311 = vmatpush.msrb.mxu3 %v4120_v39 }
 0x263   :  { %1252 = vmatpush.msra.mxu0 %v4126_v49  ;;  %1272 = vmatpush.msra.mxu1 %v4132_v2 }
 0x264   :  { %1292 = vmatpush.msrb.mxu2 %v4138_v23  ;;  %1312 = vmatpush.msrb.mxu3 %v4144_v24 }
 0x265   :  { %1253 = vmatpush.msra.mxu0 %v4150_v17  ;;  %1273 = vmatpush.msra.mxu1 %v4156_v18 }
 0x266   :  { %1293 = vmatpush.msrb.mxu2 %v5134_v10  ;;  %1313 = vmatpush.msrb.mxu3 %v5135_v41 }
 0x267   :  { %1254 = vmatpush.msra.mxu0 %v5136_v5  ;;  %1274 = vmatpush.msra.mxu1 %v5137_v61 }
 0x268   :  { %1294 = vmatpush.msrb.mxu2 %v5138_v25  ;;  %1314 = vmatpush.msrb.mxu3 %v5139_v8 }
 0x269   :  { %1255 = vmatpush.msra.mxu0 %v5140_v51  ;;  %1275 = vmatpush.msra.mxu1 %v5141_v43 }
 0x26a   :  { %1295 = vmatpush.msrb.mxu2 %v5142_v28  ;;  %1315 = vmatpush.msrb.mxu3 %v5143_v11 }
 0x26b   :  { %1256 = vmatpush.msra.mxu0 %v5144_v48  ;;  %1276 = vmatpush.msra.mxu1 %v5145_v15 }
 0x26c   :  { %1296 = vmatpush.msrb.mxu2 %v5146_v16  ;;  %1316 = vmatpush.msrb.mxu3 %v5147_v13  ;;  %v5163_v16 = vld [vmem:[#allocation50_spill] sm:$0xff] }
 0x26d   :  { %1257 = vmatpush.msra.mxu0 %v5148_v31  ;;  %1277 = vmatpush.msra.mxu1 %v5149_v52  ;;  %v5159_v31 = vld [vmem:[#allocation72_spill] sm:$0xff]  ;;  %v5160_v52 = vld [vmem:[#allocation43_spill] sm:$0xff] }
 0x26e   :  { %1297 = vmatpush.msrb.mxu2 %v5150_v57  ;;  %1317 = vmatpush.msrb.mxu3 %v5151_v37  ;;  %v5161_v57 = vld [vmem:[#allocation49_spill] sm:$0xff]  ;;  %v5162_v37 = vld [vmem:[#allocation44_spill] sm:$0xff] }
 0x26f   :  { %1258 = vmatpush.msra.mxu0 %v5152_v34  ;;  %1278 = vmatpush.msra.mxu1 %v5153_v36  ;;  %v129_v13 = vadd.f32 %v5161_v57, %v5160_v52  ;;  %v170_v34 = vadd.f32 %v5163_v16, %v5162_v37 }
 0x270   :  { %1298 = vmatpush.msrb.mxu2 %v5154_v44  ;;  %1318 = vmatpush.msrb.mxu3 %v5155_v21 }
 0x271   :  { %1259 = vmatpush.msra.mxu0 %v5156_v53  ;;  %1279 = vmatpush.msra.mxu1 %v5157_v14  ;;  %v5164_v14 = vld [vmem:[#allocation33_spill] sm:$0xff] }
 0x272   :  { %1299 = vmatpush.msrb.mxu2 %v5158_v38  ;;  %1319 = vmatpush.msrb.mxu3 %v5159_v31 }
 0x2ce   :  { %v967_v15 = vpop.f32.mrf.mxu0  ;;  %v987_v36 = vpop.f32.mrf.mxu1 }
 0x2cf   :  { %v968_v48 = vadd.f32 %v967_v15, %v129_v13  ;;  %v988_v44 = vadd.f32 %v987_v36, %v170_v34  ;;  %v5165_v13 = vld [vmem:[#allocation34_spill] sm:$0xff] }
 0x2d1   :  { %v2575_v11 = vmul.f32 -1.442695, %v968_v48  ;;  %v2576_v21 = vmul.f32 -1.442695, %v988_v44 }
 0x2d3   :  { %2671 = vpow2.f32 %v2575_v11 }
 0x2d4   :  { %2673 = vpow2.f32 %v2576_v21 }
 0x2d5   :  { %v1007_v53 = vpop.f32.mrf.mxu2  ;;  %v1027_v16 = vpop.f32.mrf.mxu3 }
 0x2d6   :  { %v1008_v28 = vadd.f32 %v1007_v53, %v5164_v14  ;;  %v1028_v48 = vadd.f32 %v1027_v16, %v5165_v13 }
 0x2d8   :  { %v2577_v38 = vmul.f32 -1.442695, %v1008_v28 }
 0x2d9   :  { %v2672_v43 = vpop.eup %2671 }
 0x2da   :  { %v2674_v31 = vpop.eup %2673  ;;  %v1039_v51 = vadd.f32 1.0, %v2672_v43  ;;  %2675 = vpow2.f32 %v2577_v38 }
 0x2db   :  { %v1040_v57 = vadd.f32 1.0, %v2674_v31 }
 0x2dc   :  { %2677 = vrcp.f32 %v1039_v51  ;;  %v1053_v28 = vand.u32 2147483648, %v1039_v51  ;;  %v1051_v31 = vand.u32 2147483647, %v1039_v51  ;;  %vm1047_vm8 = vweird.f32 %v1039_v51 }
 0x2dd   :  { %2679 = vrcp.f32 %v1040_v57  ;;  %v1068_v53 = vand.u32 2147483648, %v1040_v57  ;;  %v1066_v38 = vand.u32 2147483647, %v1040_v57  ;;  %vm1062_vm9 = vweird.f32 %v1040_v57 }
 0x2de   :  { %v1054_v13 = vor.u32 1.1754944e-38, %v1053_v28  ;;  %vm1052_vm12 = vcmp.eq.f32.partialorder %v1051_v31, 8.507059e+37 }
 0x2df   :  { %vm1067_vm13 = vcmp.eq.f32.partialorder %v1066_v38, 8.507059e+37  ;;  %v5173_v38 = vld [vmem:[#allocation28_spill] sm:$0xff] }
 0x2e0   :  { %v2676_v37 = vpop.eup %2675 }
 0x2e1   :  { %v1041_v52 = vadd.f32 1.0, %v2676_v37 }
 0x2e2   :  { %v2678_v15 = vpop.eup %2677 }
 0x2e3   :  { %v2680_v34 = vpop.eup %2679  ;;  %v1043_v11 = vmul.f32 %v2678_v15, %v1039_v51  ;;  %2681 = vrcp.f32 %v1041_v52  ;;  %vm1048_vm6 = vweird.f32 %v2678_v15  ;;  %v1083_v28 = vand.u32 2147483648, %v1041_v52 }
 0x2e4   :  { %v1058_v36 = vmul.f32 %v2680_v34, %v1040_v57  ;;  %2683 = vtanh.f32 %v1028_v48  ;;  %vm1063_vm7 = vweird.f32 %v2680_v34  ;;  %vm1049_vm10 = vmor %vm1047_vm8, %vm1048_vm6  ;;  %vm1077_vm15 = vweird.f32 %v1041_v52 }
 0x2e5   :  { %v1044_v44 = vsub.f32 1.0, %v1043_v11  ;;  %vm1064_vm11 = vmor %vm1062_vm9, %vm1063_vm7  ;;  %v1069_v11 = vor.u32 1.1754944e-38, %v1068_v53  ;;  %v1084_v31 = vor.u32 1.1754944e-38, %v1083_v28  ;;  %v5184_v28 = vld [vmem:[#allocation65_spill] sm:$0xff] }
 0x2e6   :  { %v1059_v21 = vsub.f32 1.0, %v1058_v36 }
 0x2e7   :  { %v1045_v43 = vmul.f32 %v2678_v15, %v1044_v44 }
 0x2e8   :  { %v1060_v14 = vmul.f32 %v2680_v34, %v1059_v21 }
 0x2e9   :  { %v2682_v8 = vpop.eup %2681  ;;  %v1046_v37 = vadd.f32 %v2678_v15, %v1045_v43 }
 0x2ea   :  { %v1073_v16 = vmul.f32 %v2682_v8, %v1041_v52  ;;  %v1061_v25 = vadd.f32 %v2680_v34, %v1060_v14  ;;  %v2684_v48 = vpop.eup %2683  ;;  %vm1078_vm14 = vweird.f32 %v2682_v8  ;;  %v5172_v14 = vld [vmem:[#allocation27_spill] sm:$0xff] }
 0x2eb   :  { %v1050_v36 = vsel %vm1049_vm10, %v2678_v15, %v1046_v37  ;;  %v1081_v15 = vand.u32 2147483647, %v1041_v52  ;;  %vm1079_vm0 = vmor %vm1077_vm15, %vm1078_vm14  ;;  %v5171_v52 = vld [vmem:[#allocation15_spill] sm:$0xff]  ;;  %v5174_v37 = vld [vmem:[#allocation45_spill] sm:$0xff] }
 0x2ec   :  { %v1074_v61 = vsub.f32 1.0, %v1073_v16  ;;  %v1055_v44 = vsel %vm1052_vm12, %v1054_v13, %v1050_v36  ;;  %v1065_v5 = vsel %vm1064_vm11, %v2680_v34, %v1061_v25  ;;  %v5175_v16 = vld [vmem:[#allocation46_spill] sm:$0xff]  ;;  %v5176_v13 = vld [vmem:[#allocation29_spill] sm:$0xff]  ;;  %v5178_v36 = vld [vmem:[#allocation59_spill] sm:$0xff] }
 0x2ed   :  { %v1070_v21 = vsel %vm1067_vm13, %v1069_v11, %v1065_v5  ;;  %v1089_v41 = vmul.f32 %v2684_v48, %v1055_v44  ;;  %vm1082_vm1 = vcmp.eq.f32.partialorder %v1081_v15, 8.507059e+37  ;;  %v5177_v11 = vld [vmem:[#allocation30_spill] sm:$0xff]  ;;  %v5179_v48 = vld [vmem:[#allocation60_spill] sm:$0xff]  ;;  %v5180_v44 = vld [vmem:[#allocation61_spill] sm:$0xff] }
 0x2ee   :  { %v1088_v10 = vmul.f32 %v1070_v21, %v4322_v40  ;;  %v1075_v43 = vmul.f32 %v2682_v8, %v1074_v61  ;;  %v5166_v40 = vld [vmem:[#allocation12_spill] sm:$0xff]  ;;  %v5169_v61 = vld [vmem:[#allocation26_spill] sm:$0xff] }
 0x2ef   :  { %v5181_v21 = vld [vmem:[#allocation62_spill] sm:$0xff] }
 0x2f0   :  { %v4396_v51 = vadd.f32 %v1089_v41, %v1088_v10  ;;  %v1076_v57 = vadd.f32 %v2682_v8, %v1075_v43  ;;  %v5167_v10 = vld [vmem:[#allocation13_spill] sm:$0xff]  ;;  %v5182_v43 = vld [vmem:[#allocation63_spill] sm:$0xff]  ;;  %v5185_v15 = vld [vmem:[#allocation66_spill] sm:$0xff] }
 0x2f1   :  { %v5168_v41 = vld [vmem:[#allocation25_spill] sm:$0xff] }
 0x2f2   :  { %2685 = vtanh.f32 %v4396_v51  ;;  %v1080_v53 = vsel %vm1079_vm0, %v2682_v8, %v1076_v57  ;;  %v5170_v8 = vld [vmem:[#allocation14_spill] sm:$0xff]  ;;  %v5183_v57 = vld [vmem:[#allocation64_spill] sm:$0xff] }
 0x2f3   :  { %v1085_v34 = vsel %vm1082_vm1, %v1084_v31, %v1080_v53  ;;  %v5186_v53 = vld [vmem:[#allocation67_spill] sm:$0xff]  ;;  %v5187_v31 = vld [vmem:[#allocation68_spill] sm:$0xff] }
 0x2f8   :  { %v2686_v25 = vpop.eup %2685 }
 0x2f9   :  { %v1092_v5 = vmul.f32 %v2686_v25, %v1085_v34  ;;  %v5188_v25 = vld [vmem:[#allocation69_spill] sm:$0xff]  ;;  %v5189_v34 = vld [vmem:[#allocation70_spill] sm:$0xff] }
 0x2fb   :  { %1113 = vmatmul.f32.vlgmr.msrb.gmra.mxu0 %v1092_v5  ;;  %1133 = vmatmul.f32.vlgmr.msrb.gmra.mxu1 %v1092_v5 }
 0x2fc   :  { %1153 = vmatmul.f32.vlgmr.msra.gmra.mxu2 %v1092_v5  ;;  %1173 = vmatmul.f32.vlgmr.msra.gmra.mxu3 %v1092_v5  ;;  %v5190_v5 = vld [vmem:[#allocation71_spill] sm:$0xff] }
 0x2fd   :  { %1391 = vmatpush.msrb.mxu0 %v3934_v35  ;;  %1411 = vmatpush.msrb.mxu1 %v3940_v47 }
 0x2fe   :  { %1431 = vmatpush.msra.mxu2 %v3946_v1  ;;  %1451 = vmatpush.msra.mxu3 %v3952_v54 }
 0x2ff   :  { %1392 = vmatpush.msrb.mxu0 %v3958_v62  ;;  %1412 = vmatpush.msrb.mxu1 %v3964_v42 }
 0x300   :  { %1432 = vmatpush.msra.mxu2 %v3970_v30  ;;  %1452 = vmatpush.msra.mxu3 %v3976_v12 }
 0x301   :  { %1393 = vmatpush.msrb.mxu0 %v3982_v19  ;;  %1413 = vmatpush.msrb.mxu1 %v3988_v20 }
 0x302   :  { %1433 = vmatpush.msra.mxu2 %v3994_v26  ;;  %1453 = vmatpush.msra.mxu3 %v4000_v27 }
 0x303   :  { %1394 = vmatpush.msrb.mxu0 %v4006_v29  ;;  %1414 = vmatpush.msrb.mxu1 %v4012_v32 }
 0x304   :  { %1434 = vmatpush.msra.mxu2 %v4018_v33  ;;  %1454 = vmatpush.msra.mxu3 %v4024_v55 }
 0x305   :  { %1395 = vmatpush.msrb.mxu0 %v4030_v56  ;;  %1415 = vmatpush.msrb.mxu1 %v4036_v59 }
 0x306   :  { %1435 = vmatpush.msra.mxu2 %v4042_v60  ;;  %1455 = vmatpush.msra.mxu3 %v4048_v63 }
 0x307   :  { %1396 = vmatpush.msrb.mxu0 %v4054_v0  ;;  %1416 = vmatpush.msrb.mxu1 %v4060_v22 }
 0x308   :  { %1436 = vmatpush.msra.mxu2 %v4066_v3  ;;  %1456 = vmatpush.msra.mxu3 %v4072_v4 }
 0x309   :  { %1397 = vmatpush.msrb.mxu0 %v4078_v6  ;;  %1417 = vmatpush.msrb.mxu1 %v4084_v7 }
 0x30a   :  { %1437 = vmatpush.msra.mxu2 %v4090_v9  ;;  %1457 = vmatpush.msra.mxu3 %v4096_v45 }
 0x30b   :  { %1398 = vmatpush.msrb.mxu0 %v4102_v46  ;;  %1418 = vmatpush.msrb.mxu1 %v4108_v50 }
 0x30c   :  { %1438 = vmatpush.msra.mxu2 %v4114_v58  ;;  %1458 = vmatpush.msra.mxu3 %v4120_v39 }
 0x30d   :  { %1399 = vmatpush.msrb.mxu0 %v4126_v49  ;;  %1419 = vmatpush.msrb.mxu1 %v4132_v2 }
 0x30e   :  { %1439 = vmatpush.msra.mxu2 %v4138_v23  ;;  %1459 = vmatpush.msra.mxu3 %v4144_v24 }
 0x30f   :  { %1400 = vmatpush.msrb.mxu0 %v4150_v17  ;;  %1420 = vmatpush.msrb.mxu1 %v4156_v18 }
 0x310   :  { %1440 = vmatpush.msra.mxu2 %v5166_v40  ;;  %1460 = vmatpush.msra.mxu3 %v5167_v10 }
 0x311   :  { %1401 = vmatpush.msrb.mxu0 %v5168_v41  ;;  %1421 = vmatpush.msrb.mxu1 %v5169_v61 }
 0x312   :  { %1441 = vmatpush.msra.mxu2 %v5170_v8  ;;  %1461 = vmatpush.msra.mxu3 %v5171_v52 }
 0x313   :  { %1402 = vmatpush.msrb.mxu0 %v5172_v14  ;;  %1422 = vmatpush.msrb.mxu1 %v5173_v38 }
 0x314   :  { %1442 = vmatpush.msra.mxu2 %v5174_v37  ;;  %1462 = vmatpush.msra.mxu3 %v5175_v16 }
 0x315   :  { %1403 = vmatpush.msrb.mxu0 %v5176_v13  ;;  %1423 = vmatpush.msrb.mxu1 %v5177_v11 }
 0x316   :  { %1443 = vmatpush.msra.mxu2 %v5178_v36  ;;  %1463 = vmatpush.msra.mxu3 %v5179_v48  ;;  %v5195_v36 = vld [vmem:[#allocation52_spill] sm:$0xff] }
 0x317   :  { %1404 = vmatpush.msrb.mxu0 %v5180_v44  ;;  %1424 = vmatpush.msrb.mxu1 %v5181_v21  ;;  %v5191_v44 = vld [vmem:[#allocation72_spill] sm:$0xff]  ;;  %v5192_v21 = vld [vmem:[#allocation43_spill] sm:$0xff] }
 0x318   :  { %1444 = vmatpush.msra.mxu2 %v5182_v43  ;;  %1464 = vmatpush.msra.mxu3 %v5183_v57  ;;  %v5193_v43 = vld [vmem:[#allocation51_spill] sm:$0xff]  ;;  %v5194_v57 = vld [vmem:[#allocation44_spill] sm:$0xff] }
 0x319   :  { %1405 = vmatpush.msrb.mxu0 %v5184_v28  ;;  %1425 = vmatpush.msrb.mxu1 %v5185_v15  ;;  %v132_v48 = vadd.f32 %v5193_v43, %v5192_v21  ;;  %v173_v28 = vadd.f32 %v5195_v36, %v5194_v57 }
 0x31a   :  { %1445 = vmatpush.msra.mxu2 %v5186_v53  ;;  %1465 = vmatpush.msra.mxu3 %v5187_v31 }
 0x31b   :  { %1406 = vmatpush.msrb.mxu0 %v5188_v25  ;;  %1426 = vmatpush.msrb.mxu1 %v5189_v34  ;;  %v5196_v34 = vld [vmem:[#allocation35_spill] sm:$0xff] }
 0x31c   :  { %1446 = vmatpush.msra.mxu2 %v5190_v5  ;;  %1466 = vmatpush.msra.mxu3 %v5191_v44 }
 0x378   :  { %v1114_v11 = vpop.f32.mrf.mxu0  ;;  %v1134_v15 = vpop.f32.mrf.mxu1 }
 0x379   :  { %v1115_v13 = vadd.f32 %v1114_v11, %v132_v48  ;;  %v1135_v53 = vadd.f32 %v1134_v15, %v173_v28  ;;  %v5197_v48 = vld [vmem:[#allocation36_spill] sm:$0xff] }
 0x37b   :  { %v2578_v16 = vmul.f32 -1.442695, %v1115_v13  ;;  %v2579_v31 = vmul.f32 -1.442695, %v1135_v53 }
 0x37d   :  { %2687 = vpow2.f32 %v2578_v16 }
 0x37e   :  { %2689 = vpow2.f32 %v2579_v31 }
 0x37f   :  { %v1154_v25 = vpop.f32.mrf.mxu2  ;;  %v1174_v36 = vpop.f32.mrf.mxu3 }
 0x380   :  { %v1155_v37 = vadd.f32 %v1154_v25, %v5196_v34  ;;  %v1175_v13 = vadd.f32 %v1174_v36, %v5197_v48 }
 0x382   :  { %v2580_v5 = vmul.f32 -1.442695, %v1155_v37 }
 0x383   :  { %v2688_v38 = vpop.eup %2687 }
 0x384   :  { %v2690_v44 = vpop.eup %2689  ;;  %v1186_v14 = vadd.f32 1.0, %v2688_v38  ;;  %2691 = vpow2.f32 %v2580_v5 }
 0x385   :  { %v1187_v43 = vadd.f32 1.0, %v2690_v44 }
 0x386   :  { %2693 = vrcp.f32 %v1186_v14  ;;  %v1200_v37 = vand.u32 2147483648, %v1186_v14  ;;  %v1198_v44 = vand.u32 2147483647, %v1186_v14  ;;  %vm1194_vm4 = vweird.f32 %v1186_v14 }
 0x387   :  { %2695 = vrcp.f32 %v1187_v43  ;;  %v1215_v25 = vand.u32 2147483648, %v1187_v43  ;;  %v1213_v5 = vand.u32 2147483647, %v1187_v43  ;;  %vm1209_vm5 = vweird.f32 %v1187_v43 }
 0x388   :  { %v1201_v48 = vor.u32 1.1754944e-38, %v1200_v37  ;;  %vm1199_vm8 = vcmp.eq.f32.partialorder %v1198_v44, 8.507059e+37 }
 0x389   :  { %vm1214_vm9 = vcmp.eq.f32.partialorder %v1213_v5, 8.507059e+37 }
 0x38a   :  { %v2692_v57 = vpop.eup %2691 }
 0x38b   :  { %v1188_v21 = vadd.f32 1.0, %v2692_v57 }
 0x38c   :  { %v2694_v11 = vpop.eup %2693 }
 0x38d   :  { %v2696_v28 = vpop.eup %2695  ;;  %v1190_v16 = vmul.f32 %v2694_v11, %v1186_v14  ;;  %2697 = vrcp.f32 %v1188_v21  ;;  %vm1195_vm2 = vweird.f32 %v2694_v11  ;;  %v1230_v37 = vand.u32 2147483648, %v1188_v21 }
 0x38e   :  { %v1205_v15 = vmul.f32 %v2696_v28, %v1187_v43  ;;  %2699 = vtanh.f32 %v1175_v13  ;;  %vm1210_vm3 = vweird.f32 %v2696_v28  ;;  %vm1196_vm6 = vmor %vm1194_vm4, %vm1195_vm2  ;;  %vm1224_vm11 = vweird.f32 %v1188_v21 }
 0x38f   :  { %v1191_v53 = vsub.f32 1.0, %v1190_v16  ;;  %vm1211_vm7 = vmor %vm1209_vm5, %vm1210_vm3  ;;  %v1216_v16 = vor.u32 1.1754944e-38, %v1215_v25  ;;  %v1231_v44 = vor.u32 1.1754944e-38, %v1230_v37 }
 0x390   :  { %v1206_v31 = vsub.f32 1.0, %v1205_v15 }
 0x391   :  { %v1192_v38 = vmul.f32 %v2694_v11, %v1191_v53 }
 0x392   :  { %v1207_v34 = vmul.f32 %v2696_v28, %v1206_v31 }
 0x393   :  { %v2698_v52 = vpop.eup %2697  ;;  %v1193_v57 = vadd.f32 %v2694_v11, %v1192_v38 }
 0x394   :  { %v1220_v36 = vmul.f32 %v2698_v52, %v1188_v21  ;;  %v1208_v8 = vadd.f32 %v2696_v28, %v1207_v34  ;;  %v2700_v13 = vpop.eup %2699  ;;  %vm1225_vm10 = vweird.f32 %v2698_v52 }
 0x395   :  { %v1197_v15 = vsel %vm1196_vm6, %v2694_v11, %v1193_v57  ;;  %v1228_v11 = vand.u32 2147483647, %v1188_v21  ;;  %vm1226_vm12 = vmor %vm1224_vm11, %vm1225_vm10 }
 0x396   :  { %v1221_v61 = vsub.f32 1.0, %v1220_v36  ;;  %v1202_v53 = vsel %vm1199_vm8, %v1201_v48, %v1197_v15  ;;  %v1212_v41 = vsel %vm1211_vm7, %v2696_v28, %v1208_v8  ;;  %v5229_v15 = vld [vmem:[#allocation38_spill] sm:$0xff] }
 0x397   :  { %v1217_v31 = vsel %vm1214_vm9, %v1216_v16, %v1212_v41  ;;  %v1236_v10 = vmul.f32 %v2700_v13, %v1202_v53  ;;  %vm1229_vm13 = vcmp.eq.f32.partialorder %v1228_v11, 8.507059e+37 }
 0x398   :  { %v1235_v40 = vmul.f32 %v1217_v31, %v4396_v51  ;;  %v1222_v38 = vmul.f32 %v2698_v52, %v1221_v61 }
 0x39a   :  { %v4470_v14 = vadd.f32 %v1236_v10, %v1235_v40  ;;  %v1223_v43 = vadd.f32 %v2698_v52, %v1222_v38  ;;  %v5228_v40 = vld [vmem:[#allocation37_spill] sm:$0xff] }
 0x39c   :  { %2701 = vtanh.f32 %v4470_v14  ;;  %v1227_v25 = vsel %vm1226_vm12, %v2698_v52, %v1223_v43 }
 0x39d   :  { %v1232_v28 = vsel %vm1229_vm13, %v1231_v44, %v1227_v25 }
 0x3a2   :  { %v2702_v8 = vpop.eup %2701 }
 0x3a3   :  { %v1239_v41 = vmul.f32 %v2702_v8, %v1232_v28 }
 0x3a5   :  { %1260 = vmatmul.f32.vlgmr.msra.gmra.mxu0 %v1239_v41  ;;  %1280 = vmatmul.f32.vlgmr.msra.gmra.mxu1 %v1239_v41 }
 0x3a6   :  { %1300 = vmatmul.f32.vlgmr.msrb.gmra.mxu2 %v1239_v41  ;;  %1320 = vmatmul.f32.vlgmr.msrb.gmra.mxu3 %v1239_v41 }
 0x3a7   :  { %1538 = vmatpush.msra.mxu0 %v3934_v35  ;;  %1558 = vmatpush.msra.mxu1 %v3940_v47  ;;  %v5198_v35 = vld [vmem:[#allocation12_spill] sm:$0xff]  ;;  %v5199_v47 = vld [vmem:[#allocation13_spill] sm:$0xff] }
 0x3a8   :  { %1578 = vmatpush.msrb.mxu2 %v3946_v1  ;;  %1598 = vmatpush.msrb.mxu3 %v3952_v54  ;;  %v5200_v1 = vld [vmem:[#allocation25_spill] sm:$0xff]  ;;  %v5201_v54 = vld [vmem:[#allocation26_spill] sm:$0xff] }
 0x3a9   :  { %1539 = vmatpush.msra.mxu0 %v3958_v62  ;;  %1559 = vmatpush.msra.mxu1 %v3964_v42  ;;  %v5202_v62 = vld [vmem:[#allocation14_spill] sm:$0xff]  ;;  %v5203_v42 = vld [vmem:[#allocation15_spill] sm:$0xff] }
 0x3aa   :  { %1579 = vmatpush.msrb.mxu2 %v3970_v30  ;;  %1599 = vmatpush.msrb.mxu3 %v3976_v12  ;;  %v5204_v30 = vld [vmem:[#allocation27_spill] sm:$0xff]  ;;  %v5209_v12 = vld [vmem:[#allocation30_spill] sm:$0xff] }
 0x3ab   :  { %1540 = vmatpush.msra.mxu0 %v3982_v19  ;;  %1560 = vmatpush.msra.mxu1 %v3988_v20  ;;  %v5210_v19 = vld [vmem:[#allocation59_spill] sm:$0xff]  ;;  %v5211_v20 = vld [vmem:[#allocation60_spill] sm:$0xff] }
 0x3ac   :  { %1580 = vmatpush.msrb.mxu2 %v3994_v26  ;;  %1600 = vmatpush.msrb.mxu3 %v4000_v27  ;;  %v5212_v26 = vld [vmem:[#allocation61_spill] sm:$0xff]  ;;  %v5213_v27 = vld [vmem:[#allocation62_spill] sm:$0xff] }
 0x3ad   :  { %1541 = vmatpush.msra.mxu0 %v4006_v29  ;;  %1561 = vmatpush.msra.mxu1 %v4012_v32  ;;  %v5214_v29 = vld [vmem:[#allocation63_spill] sm:$0xff]  ;;  %v5215_v32 = vld [vmem:[#allocation64_spill] sm:$0xff] }
 0x3ae   :  { %1581 = vmatpush.msrb.mxu2 %v4018_v33  ;;  %1601 = vmatpush.msrb.mxu3 %v4024_v55  ;;  %v5216_v33 = vld [vmem:[#allocation65_spill] sm:$0xff]  ;;  %v5217_v55 = vld [vmem:[#allocation66_spill] sm:$0xff] }
 0x3af   :  { %1542 = vmatpush.msra.mxu0 %v4030_v56  ;;  %1562 = vmatpush.msra.mxu1 %v4036_v59  ;;  %v5218_v56 = vld [vmem:[#allocation67_spill] sm:$0xff]  ;;  %v5219_v59 = vld [vmem:[#allocation68_spill] sm:$0xff] }
 0x3b0   :  { %1582 = vmatpush.msrb.mxu2 %v4042_v60  ;;  %1602 = vmatpush.msrb.mxu3 %v4048_v63  ;;  %v5220_v60 = vld [vmem:[#allocation69_spill] sm:$0xff]  ;;  %v5221_v63 = vld [vmem:[#allocation70_spill] sm:$0xff] }
 0x3b1   :  { %1543 = vmatpush.msra.mxu0 %v4054_v0  ;;  %1563 = vmatpush.msra.mxu1 %v4060_v22  ;;  %v5222_v0 = vld [vmem:[#allocation71_spill] sm:$0xff]  ;;  %v5223_v22 = vld [vmem:[#allocation72_spill] sm:$0xff] }
 0x3b2   :  { %1583 = vmatpush.msrb.mxu2 %v4066_v3  ;;  %1603 = vmatpush.msrb.mxu3 %v4072_v4  ;;  %v5224_v3 = vld [vmem:[#allocation43_spill] sm:$0xff]  ;;  %v5225_v4 = vld [vmem:[#allocation53_spill] sm:$0xff] }
 0x3b3   :  { %1544 = vmatpush.msra.mxu0 %v4078_v6  ;;  %1564 = vmatpush.msra.mxu1 %v4084_v7  ;;  %v135_v6 = vadd.f32 %v5225_v4, %v5224_v3  ;;  %v5226_v7 = vld [vmem:[#allocation44_spill] sm:$0xff] }
 0x3b4   :  { %1584 = vmatpush.msrb.mxu2 %v4090_v9  ;;  %1604 = vmatpush.msrb.mxu3 %v4096_v45  ;;  %v5227_v9 = vld [vmem:[#allocation54_spill] sm:$0xff] }
 0x3b5   :  { %1545 = vmatpush.msra.mxu0 %v4102_v46  ;;  %1565 = vmatpush.msra.mxu1 %v4108_v50  ;;  %v176_v45 = vadd.f32 %v5227_v9, %v5226_v7 }
 0x3b6   :  { %1585 = vmatpush.msrb.mxu2 %v4114_v58  ;;  %1605 = vmatpush.msrb.mxu3 %v4120_v39 }
 0x3b7   :  { %1546 = vmatpush.msra.mxu0 %v4126_v49  ;;  %1566 = vmatpush.msra.mxu1 %v4132_v2 }
 0x3b8   :  { %1586 = vmatpush.msrb.mxu2 %v4138_v23  ;;  %1606 = vmatpush.msrb.mxu3 %v4144_v24  ;;  %v5205_v23 = vld [vmem:[#allocation28_spill] sm:$0xff]  ;;  %v5206_v24 = vld [vmem:[#allocation45_spill] sm:$0xff] }
 0x3b9   :  { %1547 = vmatpush.msra.mxu0 %v4150_v17  ;;  %1567 = vmatpush.msra.mxu1 %v4156_v18  ;;  %v5207_v17 = vld [vmem:[#allocation46_spill] sm:$0xff]  ;;  %v5208_v18 = vld [vmem:[#allocation29_spill] sm:$0xff] }
 0x3ba   :  { %1587 = vmatpush.msrb.mxu2 %v5198_v35  ;;  %1607 = vmatpush.msrb.mxu3 %v5199_v47 }
 0x3bb   :  { %1548 = vmatpush.msra.mxu0 %v5200_v1  ;;  %1568 = vmatpush.msra.mxu1 %v5201_v54 }
 0x3bc   :  { %1588 = vmatpush.msrb.mxu2 %v5202_v62  ;;  %1608 = vmatpush.msrb.mxu3 %v5203_v42 }
 0x3bd   :  { %1549 = vmatpush.msra.mxu0 %v5204_v30  ;;  %1569 = vmatpush.msra.mxu1 %v5205_v23 }
 0x3be   :  { %1589 = vmatpush.msrb.mxu2 %v5206_v24  ;;  %1609 = vmatpush.msrb.mxu3 %v5207_v17 }
 0x3bf   :  { %1550 = vmatpush.msra.mxu0 %v5208_v18  ;;  %1570 = vmatpush.msra.mxu1 %v5209_v12 }
 0x3c0   :  { %1590 = vmatpush.msrb.mxu2 %v5210_v19  ;;  %1610 = vmatpush.msrb.mxu3 %v5211_v20 }
 0x3c1   :  { %1551 = vmatpush.msra.mxu0 %v5212_v26  ;;  %1571 = vmatpush.msra.mxu1 %v5213_v27 }
 0x3c2   :  { %1591 = vmatpush.msrb.mxu2 %v5214_v29  ;;  %1611 = vmatpush.msrb.mxu3 %v5215_v32 }
 0x3c3   :  { %1552 = vmatpush.msra.mxu0 %v5216_v33  ;;  %1572 = vmatpush.msra.mxu1 %v5217_v55 }
 0x3c4   :  { %1592 = vmatpush.msrb.mxu2 %v5218_v56  ;;  %1612 = vmatpush.msrb.mxu3 %v5219_v59 }
 0x3c5   :  { %1553 = vmatpush.msra.mxu0 %v5220_v60  ;;  %1573 = vmatpush.msra.mxu1 %v5221_v63 }
 0x3c6   :  { %1593 = vmatpush.msrb.mxu2 %v5222_v0  ;;  %1613 = vmatpush.msrb.mxu3 %v5223_v22  ;;  %v5231_v22 = vld [vmem:[#allocation56_spill] sm:$0xff] }
 0x3c7   :  { %v179_v4 = vadd.f32 %v5231_v22, %v5226_v7 }
 0x422   :  { %v1261_v46 = vpop.f32.mrf.mxu0  ;;  %v1281_v50 = vpop.f32.mrf.mxu1 }
 0x423   :  { %v1262_v58 = vadd.f32 %v1261_v46, %v135_v6  ;;  %v1282_v39 = vadd.f32 %v1281_v50, %v176_v45 }
 0x425   :  { %v2581_v49 = vmul.f32 -1.442695, %v1262_v58  ;;  %v2582_v2 = vmul.f32 -1.442695, %v1282_v39 }
 0x427   :  { %2703 = vpow2.f32 %v2581_v49  ;;  %v5232_v49 = vld [vmem:[#allocation39_spill] sm:$0xff] }
 0x428   :  { %2705 = vpow2.f32 %v2582_v2 }
 0x429   :  { %v1301_v51 = vpop.f32.mrf.mxu2  ;;  %v1321_v57 = vpop.f32.mrf.mxu3 }
 0x42a   :  { %v1302_v10 = vadd.f32 %v1301_v51, %v5228_v40  ;;  %v1322_v13 = vadd.f32 %v1321_v57, %v5229_v15 }
 0x42c   :  { %v2583_v61 = vmul.f32 -1.442695, %v1302_v10 }
 0x42d   :  { %v2704_v52 = vpop.eup %2703 }
 0x42e   :  { %v2706_v21 = vpop.eup %2705  ;;  %v1333_v34 = vadd.f32 1.0, %v2704_v52  ;;  %2707 = vpow2.f32 %v2583_v61 }
 0x42f   :  { %v1334_v5 = vadd.f32 1.0, %v2706_v21 }
 0x430   :  { %2709 = vrcp.f32 %v1333_v34  ;;  %v1347_v11 = vand.u32 2147483648, %v1333_v34  ;;  %v1345_v8 = vand.u32 2147483647, %v1333_v34  ;;  %vm1341_vm0 = vweird.f32 %v1333_v34 }
 0x431   :  { %2711 = vrcp.f32 %v1334_v5  ;;  %v1362_v25 = vand.u32 2147483648, %v1334_v5  ;;  %v1360_v41 = vand.u32 2147483647, %v1334_v5  ;;  %vm1356_vm1 = vweird.f32 %v1334_v5 }
 0x432   :  { %v1348_v54 = vor.u32 1.1754944e-38, %v1347_v11  ;;  %vm1346_vm4 = vcmp.eq.f32.partialorder %v1345_v8, 8.507059e+37 }
 0x433   :  { %v1363_v42 = vor.u32 1.1754944e-38, %v1362_v25  ;;  %vm1361_vm5 = vcmp.eq.f32.partialorder %v1360_v41, 8.507059e+37 }
 0x434   :  { %v2708_v36 = vpop.eup %2707 }
 0x435   :  { %v1335_v48 = vadd.f32 1.0, %v2708_v36  ;;  %v5233_v36 = vld [vmem:[#allocation40_spill] sm:$0xff] }
 0x436   :  { %v2710_v16 = vpop.eup %2709 }
 0x437   :  { %v2712_v53 = vpop.eup %2711  ;;  %v1337_v31 = vmul.f32 %v2710_v16, %v1333_v34  ;;  %2713 = vrcp.f32 %v1335_v48  ;;  %vm1342_vm14 = vweird.f32 %v2710_v16  ;;  %v1377_v32 = vand.u32 2147483648, %v1335_v48 }
 0x438   :  { %v1352_v38 = vmul.f32 %v2712_v53, %v1334_v5  ;;  %2715 = vtanh.f32 %v1322_v13  ;;  %vm1357_vm15 = vweird.f32 %v2712_v53  ;;  %vm1343_vm2 = vmor %vm1341_vm0, %vm1342_vm14  ;;  %vm1371_vm7 = vweird.f32 %v1335_v48 }
 0x439   :  { %v1338_v43 = vsub.f32 1.0, %v1337_v31  ;;  %vm1358_vm3 = vmor %vm1356_vm1, %vm1357_vm15  ;;  %v1375_v33 = vand.u32 2147483647, %v1335_v48  ;;  %v1378_v56 = vor.u32 1.1754944e-38, %v1377_v32 }
 0x43a   :  { %v1353_v37 = vsub.f32 1.0, %v1352_v38 }
 0x43b   :  { %v1339_v44 = vmul.f32 %v2710_v16, %v1338_v43  ;;  %vm1376_vm9 = vcmp.eq.f32.partialorder %v1375_v33, 8.507059e+37 }
 0x43c   :  { %v1354_v28 = vmul.f32 %v2712_v53, %v1353_v37 }
 0x43d   :  { %v2714_v35 = vpop.eup %2713  ;;  %v1340_v47 = vadd.f32 %v2710_v16, %v1339_v44 }
 0x43e   :  { %v1367_v1 = vmul.f32 %v2714_v35, %v1335_v48  ;;  %v1355_v62 = vadd.f32 %v2712_v53, %v1354_v28  ;;  %v2716_v23 = vpop.eup %2715  ;;  %vm1372_vm6 = vweird.f32 %v2714_v35 }
 0x43f   :  { %v1344_v30 = vsel %vm1343_vm2, %v2710_v16, %v1340_v47  ;;  %vm1373_vm8 = vmor %vm1371_vm7, %vm1372_vm6 }
 0x440   :  { %v1368_v24 = vsub.f32 1.0, %v1367_v1  ;;  %v1349_v17 = vsel %vm1346_vm4, %v1348_v54, %v1344_v30  ;;  %v1359_v18 = vsel %vm1358_vm3, %v2712_v53, %v1355_v62 }
 0x441   :  { %v1364_v12 = vsel %vm1361_vm5, %v1363_v42, %v1359_v18  ;;  %v1383_v19 = vmul.f32 %v2716_v23, %v1349_v17 }
 0x442   :  { %v1382_v20 = vmul.f32 %v1364_v12, %v4470_v14  ;;  %v1369_v26 = vmul.f32 %v2714_v35, %v1368_v24  ;;  %v5230_v14 = vld [vmem:[#allocation55_spill] sm:$0xff] }
 0x443   :  { %v138_v0 = vadd.f32 %v5230_v14, %v5224_v3 }
 0x444   :  { %v4544_v27 = vadd.f32 %v1383_v19, %v1382_v20  ;;  %v1370_v29 = vadd.f32 %v2714_v35, %v1369_v26 }
 0x446   :  { %2717 = vtanh.f32 %v4544_v27  ;;  %v1374_v55 = vsel %vm1373_vm8, %v2714_v35, %v1370_v29 }
 0x447   :  { %v1379_v60 = vsel %vm1376_vm9, %v1378_v56, %v1374_v55 }
 0x44c   :  { %v2718_v59 = vpop.eup %2717 }
 0x44d   :  { %v1386_v63 = vmul.f32 %v2718_v59, %v1379_v60 }
 0x44f   :  { %1407 = vmatmul.f32.vlgmr.msrb.gmra.mxu0 %v1386_v63  ;;  %1427 = vmatmul.f32.vlgmr.msrb.gmra.mxu1 %v1386_v63 }
 0x450   :  { %1447 = vmatmul.f32.vlgmr.msra.gmra.mxu2 %v1386_v63  ;;  %1467 = vmatmul.f32.vlgmr.msra.gmra.mxu3 %v1386_v63  ;;  %v5235_v63 = vld [vmem:[#allocation58_spill] sm:$0xff] }
 0x451   :  { %v182_v14 = vadd.f32 %v5235_v63, %v5226_v7  ;;  %v4569_v7 = vld [vmem:[%s4894_s6 + $0x70] sm:$0xff] }
 0x452   :  { %1713 = vmatpush.msrb.mxu0 %v4569_v7  ;;  %1814 = vmatpush.msra.mxu2 %v4569_v7 }
 0x4cc   :  { %v1408_v6 = vpop.f32.mrf.mxu0  ;;  %v1428_v9 = vpop.f32.mrf.mxu1 }
 0x4cd   :  { %v1409_v45 = vadd.f32 %v1408_v6, %v138_v0  ;;  %v1429_v46 = vadd.f32 %v1428_v9, %v179_v4 }
 0x4cf   :  { %v2584_v50 = vmul.f32 -1.442695, %v1409_v45  ;;  %v2585_v58 = vmul.f32 -1.442695, %v1429_v46 }
 0x4d1   :  { %2719 = vpow2.f32 %v2584_v50  ;;  %v5236_v50 = vld [vmem:[#allocation41_spill] sm:$0xff] }
 0x4d2   :  { %2721 = vpow2.f32 %v2585_v58 }
 0x4d3   :  { %v1448_v39 = vpop.f32.mrf.mxu2  ;;  %v1468_v21 = vpop.f32.mrf.mxu3 }
 0x4d4   :  { %v1449_v2 = vadd.f32 %v1448_v39, %v5232_v49  ;;  %v1469_v48 = vadd.f32 %v1468_v21, %v5233_v36  ;;  %v4598_v21 = vld [vmem:[%s4894_s6 + $0x58] sm:$0xff] }
 0x4d6   :  { %v2586_v51 = vmul.f32 -1.442695, %v1449_v2 }
 0x4d7   :  { %v2720_v40 = vpop.eup %2719 }
 0x4d8   :  { %v2722_v10 = vpop.eup %2721  ;;  %v1480_v61 = vadd.f32 1.0, %v2720_v40  ;;  %2723 = vpow2.f32 %v2586_v51  ;;  %v4574_v40 = vld [vmem:[%s4894_s6 + $0x78] sm:$0xff] }
 0x4d9   :  { %v1481_v52 = vadd.f32 1.0, %v2722_v10  ;;  %v4579_v10 = vld [vmem:[%s4894_s6 + $0x60] sm:$0xff]  ;;  %1733 = vmatpush.msrb.mxu1 %v4574_v40  ;;  %1834 = vmatpush.msra.mxu3 %v4574_v40 }
 0x4da   :  { %2725 = vrcp.f32 %v1480_v61  ;;  %v1494_v38 = vand.u32 2147483648, %v1480_v61  ;;  %v1492_v11 = vand.u32 2147483647, %v1480_v61  ;;  %vm1488_vm12 = vweird.f32 %v1480_v61  ;;  %1714 = vmatpush.msrb.mxu0 %v4579_v10  ;;  %1815 = vmatpush.msra.mxu2 %v4579_v10 }
 0x4db   :  { %2727 = vrcp.f32 %v1481_v52  ;;  %v1509_v43 = vand.u32 2147483648, %v1481_v52  ;;  %v1507_v44 = vand.u32 2147483647, %v1481_v52  ;;  %vm1503_vm13 = vweird.f32 %v1481_v52 }
 0x4dc   :  { %v1495_v35 = vor.u32 1.1754944e-38, %v1494_v38  ;;  %vm1493_vm0 = vcmp.eq.f32.partialorder %v1492_v11, 8.507059e+37  ;;  %v4645_v11 = vld [vmem:[%s4894_s6 + $0x28] sm:$0xff] }
 0x4dd   :  { %v1510_v1 = vor.u32 1.1754944e-38, %v1509_v43  ;;  %vm1508_vm1 = vcmp.eq.f32.partialorder %v1507_v44, 8.507059e+37 }
 0x4de   :  { %v2724_v34 = vpop.eup %2723 }
 0x4df   :  { %v1482_v5 = vadd.f32 1.0, %v2724_v34 }
 0x4e0   :  { %v2726_v57 = vpop.eup %2725 }
 0x4e1   :  { %v2728_v16 = vpop.eup %2727  ;;  %v1484_v15 = vmul.f32 %v2726_v57, %v1480_v61  ;;  %2729 = vrcp.f32 %v1482_v5  ;;  %vm1489_vm10 = vweird.f32 %v2726_v57  ;;  %v1524_v26 = vand.u32 2147483648, %v1482_v5  ;;  %v4587_v61 = vld [vmem:[%s4894_s6 + $0x68] sm:$0xff] }
 0x4e2   :  { %v1499_v13 = vmul.f32 %v2728_v16, %v1481_v52  ;;  %2731 = vtanh.f32 %v1469_v48  ;;  %vm1504_vm11 = vweird.f32 %v2728_v16  ;;  %vm1490_vm14 = vmor %vm1488_vm12, %vm1489_vm10  ;;  %vm1518_vm3 = vweird.f32 %v1482_v5  ;;  %v4593_v52 = vld [vmem:[%s4894_s6 + $0x50] sm:$0xff]  ;;  %1734 = vmatpush.msrb.mxu1 %v4587_v61  ;;  %1835 = vmatpush.msra.mxu3 %v4587_v61 }
 0x4e3   :  { %v1485_v53 = vsub.f32 1.0, %v1484_v15  ;;  %vm1505_vm15 = vmor %vm1503_vm13, %vm1504_vm11  ;;  %v1522_v29 = vand.u32 2147483647, %v1482_v5  ;;  %v1525_v33 = vor.u32 1.1754944e-38, %v1524_v26  ;;  %1715 = vmatpush.msrb.mxu0 %v4593_v52  ;;  %v4628_v15 = vld [vmem:[%s4894_s6 + $0x38] sm:$0xff]  ;;  %1816 = vmatpush.msra.mxu2 %v4593_v52 }
 0x4e4   :  { %v1500_v31 = vsub.f32 1.0, %v1499_v13  ;;  %1735 = vmatpush.msrb.mxu1 %v4598_v21  ;;  %1836 = vmatpush.msra.mxu3 %v4598_v21 }
 0x4e5   :  { %v1486_v37 = vmul.f32 %v2726_v57, %v1485_v53  ;;  %vm1523_vm5 = vcmp.eq.f32.partialorder %v1522_v29, 8.507059e+37  ;;  %v5237_v53 = vld [vmem:[#allocation42_spill] sm:$0xff] }
 0x4e6   :  { %v1501_v25 = vmul.f32 %v2728_v16, %v1500_v31 }
 0x4e7   :  { %v2730_v8 = vpop.eup %2729  ;;  %v1487_v28 = vadd.f32 %v2726_v57, %v1486_v37  ;;  %v4640_v37 = vld [vmem:[%s4894_s6 + $0x20] sm:$0xff] }
 0x4e8   :  { %v1514_v41 = vmul.f32 %v2730_v8, %v1482_v5  ;;  %v1502_v47 = vadd.f32 %v2728_v16, %v1501_v25  ;;  %v2732_v62 = vpop.eup %2731  ;;  %vm1519_vm2 = vweird.f32 %v2730_v8  ;;  %v4607_v5 = vld [vmem:[%s4894_s6 + $0x40] sm:$0xff] }
 0x4e9   :  { %v1491_v54 = vsel %vm1490_vm14, %v2726_v57, %v1487_v28  ;;  %vm1520_vm4 = vmor %vm1518_vm3, %vm1519_vm2  ;;  %v4612_v57 = vld [vmem:[%s4894_s6 + $0x48] sm:$0xff]  ;;  %1716 = vmatpush.msrb.mxu0 %v4607_v5  ;;  %1817 = vmatpush.msra.mxu2 %v4607_v5  ;;  %v4660_v28 = vld [vmem:[%s4894_s6 + $0x18] sm:$0xff]  ;;  %vm1702_vm2 = vcmask 523264  }
 0x4ea   :  { %v1515_v42 = vsub.f32 1.0, %v1514_v41  ;;  %v1496_v30 = vsel %vm1493_vm0, %v1495_v35, %v1491_v54  ;;  %v1506_v23 = vsel %vm1505_vm15, %v2728_v16, %v1502_v47  ;;  %v4623_v16 = vld [vmem:[%s4894_s6 + $0x30] sm:$0xff]  ;;  %1736 = vmatpush.msrb.mxu1 %v4612_v57  ;;  %1837 = vmatpush.msra.mxu3 %v4612_v57 }
 0x4eb   :  { %v1511_v24 = vsel %vm1508_vm1, %v1510_v1, %v1506_v23  ;;  %v1530_v17 = vmul.f32 %v2732_v62, %v1496_v30  ;;  %1717 = vmatpush.msrb.mxu0 %v4623_v16  ;;  %1818 = vmatpush.msra.mxu2 %v4623_v16  ;;  %v4672_v62 = vld [vmem:[%s4894_s6] sm:$0xff] }
 0x4ec   :  { %v1529_v18 = vmul.f32 %v1511_v24, %v4544_v27  ;;  %v1516_v12 = vmul.f32 %v2730_v8, %v1515_v42  ;;  %v5234_v27 = vld [vmem:[#allocation57_spill] sm:$0xff]  ;;  %1737 = vmatpush.msrb.mxu1 %v4628_v15  ;;  %1838 = vmatpush.msra.mxu3 %v4628_v15 }
 0x4ed   :  { %v141_v60 = vadd.f32 %v5234_v27, %v5224_v3  ;;  %1718 = vmatpush.msrb.mxu0 %v4640_v37  ;;  %v4677_v42 = vld [vmem:[%s4894_s6 + $0x8] sm:$0xff]  ;;  %1819 = vmatpush.msra.mxu2 %v4640_v37 }
 0x4ee   :  { %v4554_v19 = vadd.f32 %v1530_v17, %v1529_v18  ;;  %v1517_v20 = vadd.f32 %v2730_v8, %v1516_v12  ;;  %1738 = vmatpush.msrb.mxu1 %v4645_v11  ;;  %1839 = vmatpush.msra.mxu3 %v4645_v11 }
 0x4f0   :  { %2733 = vtanh.f32 %v4554_v19  ;;  %v1521_v32 = vsel %vm1520_vm4, %v2730_v8, %v1517_v20  ;;  %v4655_v8 = vld [vmem:[%s4894_s6 + $0x10] sm:$0xff]  ;;  %1739 = vmatpush.msrb.mxu1 %v4660_v28  ;;  %1840 = vmatpush.msra.mxu3 %v4660_v28  ;;  %s2911_s6 = smov 64  }
 0x4f1   :  { %v1526_v56 = vsel %vm1523_vm5, %v1525_v33, %v1521_v32  ;;  %1719 = vmatpush.msrb.mxu0 %v4655_v8  ;;  %1820 = vmatpush.msra.mxu2 %v4655_v8 }
 0x4f2   :  { %1740 = vmatpush.msrb.mxu1 %v4677_v42  ;;  %1841 = vmatpush.msra.mxu3 %v4677_v42 }
 0x4f3   :  { %1720 = vmatpush.msrb.mxu0 %v4672_v62  ;;  %1821 = vmatpush.msra.mxu2 %v4672_v62 }
 0x4f6   :  { %v2734_v55 = vpop.eup %2733 }
 0x4f7   :  { %v1533_v59 = vmul.f32 %v2734_v55, %v1526_v56 }
 0x4f9   :  { %1554 = vmatmul.f32.vlgmr.msra.gmra.mxu0 %v1533_v59  ;;  %1574 = vmatmul.f32.vlgmr.msra.gmra.mxu1 %v1533_v59 }
 0x4fa   :  { %1594 = vmatmul.f32.vlgmr.msrb.gmra.mxu2 %v1533_v59  ;;  %1614 = vmatmul.f32.vlgmr.msrb.gmra.mxu3 %v1533_v59 }
 0x4fb   :  { %1915 = vmatpush.msra.mxu0 %v4569_v7  ;;  %1935 = vmatpush.msra.mxu1 %v4574_v40 }
 0x4fc   :  { %2016 = vmatpush.msrb.mxu2 %v4569_v7  ;;  %2036 = vmatpush.msrb.mxu3 %v4574_v40 }
 0x4fd   :  { %1916 = vmatpush.msra.mxu0 %v4579_v10  ;;  %1936 = vmatpush.msra.mxu1 %v4587_v61 }
 0x4fe   :  { %2017 = vmatpush.msrb.mxu2 %v4579_v10  ;;  %2037 = vmatpush.msrb.mxu3 %v4587_v61 }
 0x4ff   :  { %1917 = vmatpush.msra.mxu0 %v4593_v52  ;;  %1937 = vmatpush.msra.mxu1 %v4598_v21 }
 0x500   :  { %2018 = vmatpush.msrb.mxu2 %v4593_v52  ;;  %2038 = vmatpush.msrb.mxu3 %v4598_v21 }
 0x501   :  { %1918 = vmatpush.msra.mxu0 %v4607_v5  ;;  %1938 = vmatpush.msra.mxu1 %v4612_v57 }
 0x502   :  { %2019 = vmatpush.msrb.mxu2 %v4607_v5  ;;  %2039 = vmatpush.msrb.mxu3 %v4612_v57 }
 0x503   :  { %1919 = vmatpush.msra.mxu0 %v4623_v16  ;;  %1939 = vmatpush.msra.mxu1 %v4628_v15 }
 0x504   :  { %2020 = vmatpush.msrb.mxu2 %v4623_v16  ;;  %2040 = vmatpush.msrb.mxu3 %v4628_v15 }
 0x505   :  { %1920 = vmatpush.msra.mxu0 %v4640_v37  ;;  %1940 = vmatpush.msra.mxu1 %v4645_v11 }
 0x506   :  { %2021 = vmatpush.msrb.mxu2 %v4640_v37  ;;  %2041 = vmatpush.msrb.mxu3 %v4645_v11 }
 0x507   :  { %1921 = vmatpush.msra.mxu0 %v4655_v8  ;;  %1941 = vmatpush.msra.mxu1 %v4660_v28 }
 0x508   :  { %2022 = vmatpush.msrb.mxu2 %v4655_v8  ;;  %2042 = vmatpush.msrb.mxu3 %v4660_v28 }
 0x509   :  { %1922 = vmatpush.msra.mxu0 %v4672_v62  ;;  %1942 = vmatpush.msra.mxu1 %v4677_v42 }
 0x50a   :  { %2023 = vmatpush.msrb.mxu2 %v4672_v62  ;;  %2043 = vmatpush.msrb.mxu3 %v4677_v42 }
 0x576   :  { %v1555_v0 = vpop.f32.mrf.mxu0  ;;  %v1575_v22 = vpop.f32.mrf.mxu1 }
 0x577   :  { %v1556_v4 = vadd.f32 %v1555_v0, %v141_v60  ;;  %v1576_v6 = vadd.f32 %v1575_v22, %v182_v14 }
 0x579   :  { %v2587_v9 = vmul.f32 -1.442695, %v1556_v4  ;;  %v2588_v45 = vmul.f32 -1.442695, %v1576_v6 }
 0x57b   :  { %2735 = vpow2.f32 %v2587_v9 }
 0x57c   :  { %2737 = vpow2.f32 %v2588_v45 }
 0x57d   :  { %v1595_v46 = vpop.f32.mrf.mxu2  ;;  %v1615_v34 = vpop.f32.mrf.mxu3 }
 0x57e   :  { %v1596_v58 = vadd.f32 %v1595_v46, %v5236_v50  ;;  %v1616_v31 = vadd.f32 %v1615_v34, %v5237_v53 }
 0x580   :  { %v2589_v39 = vmul.f32 -1.442695, %v1596_v58  ;;  %v5238_v58 = vld [vmem:[#allocation5_spill] sm:$0xff] }
 0x581   :  { %v2736_v49 = vpop.eup %2735 }
 0x582   :  { %v2738_v2 = vpop.eup %2737  ;;  %v4562_v51 = vadd.f32 1.0, %v2736_v49  ;;  %2739 = vpow2.f32 %v2589_v39  ;;  %v5239_v39 = vld [vmem:[#allocation16_spill] sm:$0xff] }
 0x583   :  { %v4564_v3 = vadd.f32 1.0, %v2738_v2  ;;  %v400_v49 = vadd.f32 %v5239_v39, %v5238_v58  ;;  %v5242_v39 = vld [vmem:[#allocation17_spill] sm:$0xff] }
 0x584   :  { %2741 = vrcp.f32 %v4562_v51  ;;  %v1641_v35 = vand.u32 2147483648, %v4562_v51  ;;  %v1639_v54 = vand.u32 2147483647, %v4562_v51  ;;  %vm1635_vm8 = vweird.f32 %v4562_v51 }
 0x585   :  { %2743 = vrcp.f32 %v4564_v3  ;;  %v1656_v47 = vand.u32 2147483648, %v4564_v3  ;;  %v1654_v23 = vand.u32 2147483647, %v4564_v3  ;;  %vm1650_vm9 = vweird.f32 %v4564_v3 }
 0x586   :  { %v1642_v18 = vor.u32 1.1754944e-38, %v1641_v35  ;;  %vm1640_vm12 = vcmp.eq.f32.partialorder %v1639_v54, 8.507059e+37 }
 0x587   :  { %v1657_v26 = vor.u32 1.1754944e-38, %v1656_v47  ;;  %vm1655_vm13 = vcmp.eq.f32.partialorder %v1654_v23, 8.507059e+37 }
 0x588   :  { %v2740_v36 = vpop.eup %2739 }
 0x589   :  { %v4618_v48 = vadd.f32 1.0, %v2740_v36  ;;  %v5240_v36 = vld [vmem:[#allocation4_spill] sm:$0xff] }
 0x58a   :  { %v2742_v13 = vpop.eup %2741 }
 0x58b   :  { %v2744_v38 = vpop.eup %2743  ;;  %v1631_v43 = vmul.f32 %v2742_v13, %v4562_v51  ;;  %2745 = vrcp.f32 %v4618_v48  ;;  %vm1636_vm6 = vweird.f32 %v2742_v13  ;;  %vm1665_vm15 = vweird.f32 %v4618_v48 }
 0x58c   :  { %v1646_v25 = vmul.f32 %v2744_v38, %v4564_v3  ;;  %2747 = vtanh.f32 %v1616_v31  ;;  %vm1651_vm7 = vweird.f32 %v2744_v38  ;;  %vm1637_vm10 = vmor %vm1635_vm8, %vm1636_vm6  ;;  %v1669_v22 = vand.u32 2147483647, %v4618_v48 }
 0x58d   :  { %v1632_v44 = vsub.f32 1.0, %v1631_v43  ;;  %vm1652_vm11 = vmor %vm1650_vm9, %vm1651_vm7 }
 0x58e   :  { %v1647_v41 = vsub.f32 1.0, %v1646_v25  ;;  %vm1670_vm1 = vcmp.eq.f32.partialorder %v1669_v22, 8.507059e+37 }
 0x58f   :  { %v1633_v1 = vmul.f32 %v2742_v13, %v1632_v44 }
 0x590   :  { %v1648_v30 = vmul.f32 %v2744_v38, %v1647_v41 }
 0x591   :  { %v4684_v24 = vpop.eup %2745  ;;  %v1634_v17 = vadd.f32 %v2742_v13, %v1633_v1 }
 0x592   :  { %v1649_v12 = vadd.f32 %v2744_v38, %v1648_v30  ;;  %v1661_v20 = vmul.f32 %v4684_v24, %v4618_v48  ;;  %v2748_v32 = vpop.eup %2747  ;;  %vm1666_vm14 = vweird.f32 %v4684_v24 }
 0x593   :  { %v1638_v29 = vsel %vm1637_vm10, %v2742_v13, %v1634_v17  ;;  %vm1667_vm0 = vmor %vm1665_vm15, %vm1666_vm14 }
 0x594   :  { %v1643_v33 = vsel %vm1640_vm12, %v1642_v18, %v1638_v29  ;;  %v1653_v55 = vsel %vm1652_vm11, %v2744_v38, %v1649_v12  ;;  %v1662_v56 = vsub.f32 1.0, %v1661_v20 }
 0x595   :  { %v1658_v59 = vsel %vm1655_vm13, %v1657_v26, %v1653_v55  ;;  %v1677_v27 = vmul.f32 %v2748_v32, %v1643_v33 }
 0x596   :  { %v1676_v60 = vmul.f32 %v1658_v59, %v4554_v19  ;;  %v1663_v63 = vmul.f32 %v4684_v24, %v1662_v56  ;;  %v1671_v19 = vand.u32 2147483648, %v4618_v48 }
 0x598   :  { %v4708_v14 = vadd.f32 %v1677_v27, %v1676_v60  ;;  %v1664_v0 = vadd.f32 %v4684_v24, %v1663_v63  ;;  %v1672_v6 = vor.u32 1.1754944e-38, %v1671_v19 }
 0x59a   :  { %2749 = vtanh.f32 %v4708_v14  ;;  %v1668_v4 = vsel %vm1667_vm0, %v4684_v24, %v1664_v0 }
 0x59b   :  { %v1673_v45 = vsel %vm1670_vm1, %v1672_v6, %v1668_v4 }
 0x5a0   :  { %v2750_v9 = vpop.eup %2749 }
 0x5a1   :  { %v4735_v46 = vmul.f32 %v2750_v9, %v1673_v45  ;;  %v5241_v9 = vld [vmem:[#allocation18_spill] sm:$0xff] }
 0x5a3   :  { %1700 = vrot.lane.b32.xlu0 %v4735_v46, %s2911_s6 }
 0x615   :  { %v1701_v50 = vpop.permute.xlu0 %1700 }
 0x616   :  { %2590 = vmatmul.msk.f32.vlgmr.msrb.gmra.mxu0 %vm1702_vm2, %v1701_v50  ;;  %2591 = vmatmul.msk.f32.vlgmr.msrb.gmra.mxu1 %vm1702_vm2, %v1701_v50 }
 0x617   :  { %2117 = vmatpush.msrb.mxu0 %v4569_v7  ;;  %2137 = vmatpush.msrb.mxu1 %v4574_v40 }
 0x619   :  { %2118 = vmatpush.msrb.mxu0 %v4579_v10  ;;  %2138 = vmatpush.msrb.mxu1 %v4587_v61 }
 0x61b   :  { %2119 = vmatpush.msrb.mxu0 %v4593_v52  ;;  %2139 = vmatpush.msrb.mxu1 %v4598_v21 }
 0x61d   :  { %2120 = vmatpush.msrb.mxu0 %v4607_v5  ;;  %2140 = vmatpush.msrb.mxu1 %v4612_v57 }
 0x61f   :  { %2121 = vmatpush.msrb.mxu0 %v4623_v16  ;;  %2141 = vmatpush.msrb.mxu1 %v4628_v15 }
 0x621   :  { %2122 = vmatpush.msrb.mxu0 %v4640_v37  ;;  %2142 = vmatpush.msrb.mxu1 %v4645_v11 }
 0x623   :  { %2123 = vmatpush.msrb.mxu0 %v4655_v8  ;;  %2143 = vmatpush.msrb.mxu1 %v4660_v28 }
 0x625   :  { %2124 = vmatpush.msrb.mxu0 %v4672_v62  ;;  %2144 = vmatpush.msrb.mxu1 %v4677_v42 }
 0x693   :  { %v1742_v2 = vpop.f32.mrf.mxu1  ;;  %v1722_v34 = vpop.f32.mrf.mxu0 }
 0x694   :  { %v1743_v51 = vadd.f32 %v1742_v2, %v400_v49  ;;  %v1723_v48 = vadd.f32 %v1722_v34, %v5240_v36 }
 0x696   :  { %2751 = vtanh.f32 %v1743_v51  ;;  %v2592_v13 = vmul.f32 -1.442695, %v1723_v48  ;;  %v2593_v26 = vmul.f32 -1.442695, %v1743_v51 }
 0x698   :  { %2753 = vpow2.f32 %v2592_v13 }
 0x69c   :  { %v2752_v3 = vpop.eup %2751 }
 0x69d   :  { %1786 = vrot.lane.b32.xlu0 %v2752_v3, %s2911_s6 }
 0x69e   :  { %v2754_v53 = vpop.eup %2753 }
 0x69f   :  { %v1751_v31 = vadd.f32 1.0, %v2754_v53 }
 0x6a1   :  { %2755 = vrcp.f32 %v1751_v31  ;;  %v1764_v35 = vand.u32 2147483648, %v1751_v31  ;;  %vm1758_vm4 = vweird.f32 %v1751_v31  ;;  %v1762_v47 = vand.u32 2147483647, %v1751_v31 }
 0x6a3   :  { %v1765_v54 = vor.u32 1.1754944e-38, %v1764_v35  ;;  %vm1763_vm6 = vcmp.eq.f32.partialorder %v1762_v47, 8.507059e+37 }
 0x6a7   :  { %v2756_v38 = vpop.eup %2755 }
 0x6a8   :  { %v1754_v43 = vmul.f32 %v2756_v38, %v1751_v31  ;;  %vm1759_vm3 = vweird.f32 %v2756_v38 }
 0x6a9   :  { %vm1760_vm5 = vmor %vm1758_vm4, %vm1759_vm3 }
 0x6aa   :  { %v1755_v25 = vsub.f32 1.0, %v1754_v43 }
 0x6ac   :  { %v1756_v44 = vmul.f32 %v2756_v38, %v1755_v25 }
 0x6ae   :  { %v1757_v41 = vadd.f32 %v2756_v38, %v1756_v44 }
 0x6b0   :  { %v1761_v1 = vsel %vm1760_vm5, %v2756_v38, %v1757_v41 }
 0x6b1   :  { %v1766_v23 = vsel %vm1763_vm6, %v1765_v54, %v1761_v1 }
 0x6b2   :  { %v1784_v17 = vmul.f32 %v1766_v23, %v4708_v14 }
 0x70f   :  { %v1787_v30 = vpop.permute.xlu0 %1786 }
 0x710   :  { %v1789_v24 = vmul.f32 %v1787_v30, %v1766_v23 }
 0x712   :  { %1791 = vrot.lane.b32.xlu1 %v1789_v24, %s2911_s6 }
 0x784   :  { %v1792_v18 = vpop.permute.xlu1 %1791 }
 0x785   :  { %v4769_v12 = vadd.f32 %v1792_v18, %v1784_v17 }
 0x787   :  { %2757 = vtanh.f32 %v4769_v12 }
 0x788   :  { %2759 = vpow2.f32 %v2593_v26 }
 0x78d   :  { %v2758_v20 = vpop.eup %2757 }
 0x78e   :  { %1797 = vrot.lane.b32.xlu1 %v2758_v20, %s2911_s6  ;;  %v2760_v29 = vpop.eup %2759 }
 0x78f   :  { %v1752_v32 = vadd.f32 1.0, %v2760_v29 }
 0x791   :  { %2761 = vrcp.f32 %v1752_v32  ;;  %v1779_v60 = vand.u32 2147483648, %v1752_v32  ;;  %vm1773_vm8 = vweird.f32 %v1752_v32  ;;  %v1777_v63 = vand.u32 2147483647, %v1752_v32 }
 0x793   :  { %v1780_v0 = vor.u32 1.1754944e-38, %v1779_v60  ;;  %vm1778_vm10 = vcmp.eq.f32.partialorder %v1777_v63, 8.507059e+37 }
 0x797   :  { %v2762_v33 = vpop.eup %2761 }
 0x798   :  { %v1769_v55 = vmul.f32 %v2762_v33, %v1752_v32  ;;  %vm1774_vm7 = vweird.f32 %v2762_v33 }
 0x799   :  { %vm1775_vm9 = vmor %vm1773_vm8, %vm1774_vm7 }
 0x79a   :  { %v1770_v56 = vsub.f32 1.0, %v1769_v55 }
 0x79c   :  { %v1771_v59 = vmul.f32 %v2762_v33, %v1770_v56 }
 0x79e   :  { %v1772_v27 = vadd.f32 %v2762_v33, %v1771_v59 }
 0x7a0   :  { %v1776_v14 = vsel %vm1775_vm9, %v2762_v33, %v1772_v27 }
 0x7a1   :  { %v1781_v19 = vsel %vm1778_vm10, %v1780_v0, %v1776_v14  ;;  %v5243_v14 = vld [vmem:[#allocation7_spill] sm:$0xff] }
 0x800   :  { %v1798_v22 = vpop.permute.xlu1 %1797 }
 0x801   :  { %v1800_v4 = vmul.f32 %v1798_v22, %v1781_v19 }
 0x803   :  { %2594 = vmatmul.msk.f32.vlgmr.msra.gmra.mxu2 %vm1702_vm2, %v1800_v4  ;;  %2595 = vmatmul.msk.f32.vlgmr.msra.gmra.mxu3 %vm1702_vm2, %v1800_v4  ;;  %v5244_v4 = vld [vmem:[#allocation6_spill] sm:$0xff] }
 0x804   :  { %2218 = vmatpush.msra.mxu2 %v4569_v7  ;;  %2238 = vmatpush.msra.mxu3 %v4574_v40 }
 0x806   :  { %2219 = vmatpush.msra.mxu2 %v4579_v10  ;;  %2239 = vmatpush.msra.mxu3 %v4587_v61 }
 0x808   :  { %2220 = vmatpush.msra.mxu2 %v4593_v52  ;;  %2240 = vmatpush.msra.mxu3 %v4598_v21 }
 0x80a   :  { %2221 = vmatpush.msra.mxu2 %v4607_v5  ;;  %2241 = vmatpush.msra.mxu3 %v4612_v57 }
 0x80c   :  { %2222 = vmatpush.msra.mxu2 %v4623_v16  ;;  %2242 = vmatpush.msra.mxu3 %v4628_v15 }
 0x80e   :  { %2223 = vmatpush.msra.mxu2 %v4640_v37  ;;  %2243 = vmatpush.msra.mxu3 %v4645_v11 }
 0x810   :  { %2224 = vmatpush.msra.mxu2 %v4655_v8  ;;  %2244 = vmatpush.msra.mxu3 %v4660_v28 }
 0x812   :  { %2225 = vmatpush.msra.mxu2 %v4672_v62  ;;  %2245 = vmatpush.msra.mxu3 %v4677_v42 }
 0x886   :  { %v1843_v6 = vpop.f32.mrf.mxu3  ;;  %v1823_v58 = vpop.f32.mrf.mxu2 }
 0x887   :  { %v1844_v45 = vadd.f32 %v1843_v6, %v5241_v9  ;;  %v1824_v49 = vadd.f32 %v1823_v58, %v5242_v39 }
 0x889   :  { %2763 = vtanh.f32 %v1844_v45  ;;  %v2596_v2 = vmul.f32 -1.442695, %v1824_v49  ;;  %v2597_v23 = vmul.f32 -1.442695, %v1844_v45 }
 0x88b   :  { %2765 = vpow2.f32 %v2596_v2 }
 0x88f   :  { %v2764_v50 = vpop.eup %2763 }
 0x890   :  { %1887 = vrot.lane.b32.xlu2 %v2764_v50, %s2911_s6 }
 0x891   :  { %v2766_v51 = vpop.eup %2765 }
 0x892   :  { %v1852_v3 = vadd.f32 1.0, %v2766_v51 }
 0x894   :  { %2767 = vrcp.f32 %v1852_v3  ;;  %v1865_v31 = vand.u32 2147483648, %v1852_v3  ;;  %vm1859_vm12 = vweird.f32 %v1852_v3  ;;  %v1863_v38 = vand.u32 2147483647, %v1852_v3 }
 0x896   :  { %v1866_v25 = vor.u32 1.1754944e-38, %v1865_v31  ;;  %vm1864_vm14 = vcmp.eq.f32.partialorder %v1863_v38, 8.507059e+37 }
 0x89a   :  { %v2768_v34 = vpop.eup %2767 }
 0x89b   :  { %v1855_v36 = vmul.f32 %v2768_v34, %v1852_v3  ;;  %vm1860_vm11 = vweird.f32 %v2768_v34 }
 0x89c   :  { %vm1861_vm13 = vmor %vm1859_vm12, %vm1860_vm11 }
 0x89d   :  { %v1856_v48 = vsub.f32 1.0, %v1855_v36 }
 0x89f   :  { %v1857_v13 = vmul.f32 %v2768_v34, %v1856_v48 }
 0x8a1   :  { %v1858_v53 = vadd.f32 %v2768_v34, %v1857_v13 }
 0x8a3   :  { %v1862_v43 = vsel %vm1861_vm13, %v2768_v34, %v1858_v53 }
 0x8a4   :  { %v1867_v41 = vsel %vm1864_vm14, %v1866_v25, %v1862_v43 }
 0x8a5   :  { %v1885_v47 = vmul.f32 %v1867_v41, %v4769_v12 }
 0x8ea   :  { %v1888_v44 = vpop.permute.xlu2 %1887 }
 0x8eb   :  { %v1890_v35 = vmul.f32 %v1888_v44, %v1867_v41 }
 0x8ed   :  { %1892 = vrot.lane.b32.xlu2 %v1890_v35, %s2911_s6 }
 0x947   :  { %v1893_v1 = vpop.permute.xlu2 %1892 }
 0x948   :  { %v4796_v54 = vadd.f32 %v1893_v1, %v1885_v47 }
 0x94a   :  { %2769 = vtanh.f32 %v4796_v54 }
 0x94b   :  { %2771 = vpow2.f32 %v2597_v23 }
 0x950   :  { %v2770_v30 = vpop.eup %2769 }
 0x951   :  { %1898 = vrot.lane.b32.xlu0 %v2770_v30, %s2911_s6  ;;  %v2772_v24 = vpop.eup %2771 }
 0x952   :  { %v1853_v17 = vadd.f32 1.0, %v2772_v24 }
 0x954   :  { %2773 = vrcp.f32 %v1853_v17  ;;  %v1880_v12 = vand.u32 2147483648, %v1853_v17  ;;  %vm1874_vm0 = vweird.f32 %v1853_v17  ;;  %v1878_v33 = vand.u32 2147483647, %v1853_v17 }
 0x956   :  { %v1881_v56 = vor.u32 1.1754944e-38, %v1880_v12  ;;  %vm1879_vm3 = vcmp.eq.f32.partialorder %v1878_v33, 8.507059e+37 }
 0x95a   :  { %v2774_v18 = vpop.eup %2773 }
 0x95b   :  { %v1870_v20 = vmul.f32 %v2774_v18, %v1853_v17  ;;  %vm1875_vm15 = vweird.f32 %v2774_v18 }
 0x95c   :  { %vm1876_vm1 = vmor %vm1874_vm0, %vm1875_vm15 }
 0x95d   :  { %v1871_v26 = vsub.f32 1.0, %v1870_v20 }
 0x95f   :  { %v1872_v29 = vmul.f32 %v2774_v18, %v1871_v26 }
 0x961   :  { %v1873_v32 = vadd.f32 %v2774_v18, %v1872_v29 }
 0x963   :  { %v1877_v55 = vsel %vm1876_vm1, %v2774_v18, %v1873_v32 }
 0x964   :  { %v1882_v59 = vsel %vm1879_vm3, %v1881_v56, %v1877_v55 }
 0x9c3   :  { %v1899_v27 = vpop.permute.xlu0 %1898 }
 0x9c4   :  { %v1901_v60 = vmul.f32 %v1899_v27, %v1882_v59 }
 0x9c6   :  { %2598 = vmatmul.msk.f32.vlgmr.msra.gmra.mxu0 %vm1702_vm2, %v1901_v60  ;;  %2599 = vmatmul.msk.f32.vlgmr.msra.gmra.mxu1 %vm1702_vm2, %v1901_v60 }
 0x9c7   :  { %2319 = vmatpush.msra.mxu0 %v4569_v7  ;;  %2339 = vmatpush.msra.mxu1 %v4574_v40 }
 0x9c9   :  { %2320 = vmatpush.msra.mxu0 %v4579_v10  ;;  %2340 = vmatpush.msra.mxu1 %v4587_v61 }
 0x9cb   :  { %2321 = vmatpush.msra.mxu0 %v4593_v52  ;;  %2341 = vmatpush.msra.mxu1 %v4598_v21 }
 0x9cd   :  { %2322 = vmatpush.msra.mxu0 %v4607_v5  ;;  %2342 = vmatpush.msra.mxu1 %v4612_v57 }
 0x9cf   :  { %2323 = vmatpush.msra.mxu0 %v4623_v16  ;;  %2343 = vmatpush.msra.mxu1 %v4628_v15 }
 0x9d1   :  { %2324 = vmatpush.msra.mxu0 %v4640_v37  ;;  %2344 = vmatpush.msra.mxu1 %v4645_v11 }
 0x9d3   :  { %2325 = vmatpush.msra.mxu0 %v4655_v8  ;;  %2345 = vmatpush.msra.mxu1 %v4660_v28 }
 0x9d5   :  { %2326 = vmatpush.msra.mxu0 %v4672_v62  ;;  %2346 = vmatpush.msra.mxu1 %v4677_v42 }
 0xa43   :  { %v1944_v63 = vpop.f32.mrf.mxu1  ;;  %v1924_v22 = vpop.f32.mrf.mxu0 }
 0xa44   :  { %v1945_v0 = vadd.f32 %v1944_v63, %v5243_v14  ;;  %v1925_v6 = vadd.f32 %v1924_v22, %v5244_v4 }
 0xa46   :  { %2775 = vtanh.f32 %v1945_v0  ;;  %v2600_v9 = vmul.f32 -1.442695, %v1925_v6  ;;  %v2601_v41 = vmul.f32 -1.442695, %v1945_v0 }
 0xa48   :  { %2777 = vpow2.f32 %v2600_v9 }
 0xa4c   :  { %v2776_v19 = vpop.eup %2775 }
 0xa4d   :  { %1988 = vrot.lane.b32.xlu1 %v2776_v19, %s2911_s6 }
 0xa4e   :  { %v2778_v45 = vpop.eup %2777 }
 0xa4f   :  { %v1953_v50 = vadd.f32 1.0, %v2778_v45 }
 0xa51   :  { %2779 = vrcp.f32 %v1953_v50  ;;  %v1966_v3 = vand.u32 2147483648, %v1953_v50  ;;  %vm1960_vm5 = vweird.f32 %v1953_v50  ;;  %v1964_v34 = vand.u32 2147483647, %v1953_v50 }
 0xa53   :  { %v1967_v48 = vor.u32 1.1754944e-38, %v1966_v3  ;;  %vm1965_vm7 = vcmp.eq.f32.partialorder %v1964_v34, 8.507059e+37 }
 0xa57   :  { %v2780_v58 = vpop.eup %2779 }
 0xa58   :  { %v1956_v39 = vmul.f32 %v2780_v58, %v1953_v50  ;;  %vm1961_vm4 = vweird.f32 %v2780_v58 }
 0xa59   :  { %vm1962_vm6 = vmor %vm1960_vm5, %vm1961_vm4 }
 0xa5a   :  { %v1957_v49 = vsub.f32 1.0, %v1956_v39 }
 0xa5c   :  { %v1958_v2 = vmul.f32 %v2780_v58, %v1957_v49 }
 0xa5e   :  { %v1959_v51 = vadd.f32 %v2780_v58, %v1958_v2 }
 0xa60   :  { %v1963_v36 = vsel %vm1962_vm6, %v2780_v58, %v1959_v51 }
 0xa61   :  { %v1968_v53 = vsel %vm1965_vm7, %v1967_v48, %v1963_v36 }
 0xa62   :  { %v1986_v38 = vmul.f32 %v1968_v53, %v4796_v54 }
 0xabf   :  { %v1989_v13 = vpop.permute.xlu1 %1988 }
 0xac0   :  { %v1991_v31 = vmul.f32 %v1989_v13, %v1968_v53  ;;  %v5247_v53 = vld [vmem:[#allocation9_spill] sm:$0xff] }
 0xac2   :  { %1993 = vrot.lane.b32.xlu2 %v1991_v31, %s2911_s6 }
 0xb1c   :  { %v1994_v43 = vpop.permute.xlu2 %1993 }
 0xb1d   :  { %v4823_v25 = vadd.f32 %v1994_v43, %v1986_v38 }
 0xb1f   :  { %2781 = vtanh.f32 %v4823_v25 }
 0xb20   :  { %2783 = vpow2.f32 %v2601_v41 }
 0xb25   :  { %v2782_v44 = vpop.eup %2781 }
 0xb26   :  { %1999 = vrot.lane.b32.xlu0 %v2782_v44, %s2911_s6  ;;  %v2784_v35 = vpop.eup %2783 }
 0xb27   :  { %v1954_v47 = vadd.f32 1.0, %v2784_v35 }
 0xb29   :  { %2785 = vrcp.f32 %v1954_v47  ;;  %v1981_v54 = vand.u32 2147483648, %v1954_v47  ;;  %vm1975_vm9 = vweird.f32 %v1954_v47  ;;  %v1979_v18 = vand.u32 2147483647, %v1954_v47 }
 0xb2b   :  { %v1982_v26 = vor.u32 1.1754944e-38, %v1981_v54  ;;  %vm1980_vm11 = vcmp.eq.f32.partialorder %v1979_v18, 8.507059e+37 }
 0xb2f   :  { %v2786_v1 = vpop.eup %2785 }
 0xb30   :  { %v1971_v30 = vmul.f32 %v2786_v1, %v1954_v47  ;;  %vm1976_vm8 = vweird.f32 %v2786_v1 }
 0xb31   :  { %vm1977_vm10 = vmor %vm1975_vm9, %vm1976_vm8 }
 0xb32   :  { %v1972_v23 = vsub.f32 1.0, %v1971_v30 }
 0xb34   :  { %v1973_v24 = vmul.f32 %v2786_v1, %v1972_v23 }
 0xb36   :  { %v1974_v17 = vadd.f32 %v2786_v1, %v1973_v24 }
 0xb38   :  { %v1978_v20 = vsel %vm1977_vm10, %v2786_v1, %v1974_v17 }
 0xb39   :  { %v1983_v29 = vsel %vm1980_vm11, %v1982_v26, %v1978_v20 }
 0xb98   :  { %v2000_v32 = vpop.permute.xlu0 %1999 }
 0xb99   :  { %v2002_v12 = vmul.f32 %v2000_v32, %v1983_v29 }
 0xb9b   :  { %2602 = vmatmul.msk.f32.vlgmr.msrb.gmra.mxu2 %vm1702_vm2, %v2002_v12  ;;  %2603 = vmatmul.msk.f32.vlgmr.msrb.gmra.mxu3 %vm1702_vm2, %v2002_v12 }
 0xb9c   :  { %2420 = vmatpush.msrb.mxu2 %v4569_v7  ;;  %2440 = vmatpush.msrb.mxu3 %v4574_v40  ;;  %v5245_v40 = vld [vmem:[#allocation20_spill] sm:$0xff] }
 0xb9e   :  { %2421 = vmatpush.msrb.mxu2 %v4579_v10  ;;  %2441 = vmatpush.msrb.mxu3 %v4587_v61 }
 0xba0   :  { %2422 = vmatpush.msrb.mxu2 %v4593_v52  ;;  %2442 = vmatpush.msrb.mxu3 %v4598_v21  ;;  %v5246_v21 = vld [vmem:[#allocation19_spill] sm:$0xff] }
 0xba2   :  { %2423 = vmatpush.msrb.mxu2 %v4607_v5  ;;  %2443 = vmatpush.msrb.mxu3 %v4612_v57 }
 0xba4   :  { %2424 = vmatpush.msrb.mxu2 %v4623_v16  ;;  %2444 = vmatpush.msrb.mxu3 %v4628_v15 }
 0xba6   :  { %2425 = vmatpush.msrb.mxu2 %v4640_v37  ;;  %2445 = vmatpush.msrb.mxu3 %v4645_v11 }
 0xba8   :  { %2426 = vmatpush.msrb.mxu2 %v4655_v8  ;;  %2446 = vmatpush.msrb.mxu3 %v4660_v28 }
 0xbaa   :  { %2427 = vmatpush.msrb.mxu2 %v4672_v62  ;;  %2447 = vmatpush.msrb.mxu3 %v4677_v42 }
 0xc1e   :  { %v2045_v7 = vpop.f32.mrf.mxu3  ;;  %v2025_v52 = vpop.f32.mrf.mxu2 }
 0xc1f   :  { %v2046_v10 = vadd.f32 %v2045_v7, %v5245_v40  ;;  %v2026_v5 = vadd.f32 %v2025_v52, %v5246_v21 }
 0xc21   :  { %2787 = vtanh.f32 %v2046_v10  ;;  %v2604_v57 = vmul.f32 -1.442695, %v2026_v5  ;;  %v2605_v22 = vmul.f32 -1.442695, %v2046_v10 }
 0xc23   :  { %2789 = vpow2.f32 %v2604_v57 }
 0xc27   :  { %v2788_v61 = vpop.eup %2787 }
 0xc28   :  { %2089 = vrot.lane.b32.xlu1 %v2788_v61, %s2911_s6 }
 0xc29   :  { %v2790_v16 = vpop.eup %2789 }
 0xc2a   :  { %v2054_v15 = vadd.f32 1.0, %v2790_v16 }
 0xc2c   :  { %2791 = vrcp.f32 %v2054_v15  ;;  %v2067_v42 = vand.u32 2147483648, %v2054_v15  ;;  %vm2061_vm13 = vweird.f32 %v2054_v15  ;;  %v2065_v33 = vand.u32 2147483647, %v2054_v15 }
 0xc2e   :  { %v2068_v56 = vor.u32 1.1754944e-38, %v2067_v42  ;;  %vm2066_vm15 = vcmp.eq.f32.partialorder %v2065_v33, 8.507059e+37 }
 0xc32   :  { %v2792_v37 = vpop.eup %2791 }
 0xc33   :  { %v2057_v11 = vmul.f32 %v2792_v37, %v2054_v15  ;;  %vm2062_vm12 = vweird.f32 %v2792_v37 }
 0xc34   :  { %vm2063_vm14 = vmor %vm2061_vm13, %vm2062_vm12 }
 0xc35   :  { %v2058_v8 = vsub.f32 1.0, %v2057_v11 }
 0xc37   :  { %v2059_v28 = vmul.f32 %v2792_v37, %v2058_v8 }
 0xc39   :  { %v2060_v62 = vadd.f32 %v2792_v37, %v2059_v28 }
 0xc3b   :  { %v2064_v55 = vsel %vm2063_vm14, %v2792_v37, %v2060_v62 }
 0xc3c   :  { %v2069_v27 = vsel %vm2066_vm15, %v2068_v56, %v2064_v55 }
 0xc3d   :  { %v2087_v63 = vmul.f32 %v2069_v27, %v4823_v25  ;;  %v5248_v25 = vld [vmem:[#allocation8_spill] sm:$0xff] }
 0xc9a   :  { %v2090_v59 = vpop.permute.xlu1 %2089 }
 0xc9b   :  { %v2092_v60 = vmul.f32 %v2090_v59, %v2069_v27  ;;  %v5249_v27 = vld [vmem:[#allocation22_spill] sm:$0xff] }
 0xc9d   :  { %2094 = vrot.lane.b32.xlu2 %v2092_v60, %s2911_s6 }
 0xcf7   :  { %v2095_v14 = vpop.permute.xlu2 %2094 }
 0xcf8   :  { %v2097_v0 = vadd.f32 %v2095_v14, %v2087_v63 }
 0xcfa   :  { %2793 = vtanh.f32 %v2097_v0 }
 0xcfb   :  { %2795 = vpow2.f32 %v2605_v22 }
 0xd00   :  { %v2794_v19 = vpop.eup %2793 }
 0xd01   :  { %2100 = vrot.lane.b32.xlu0 %v2794_v19, %s2911_s6  ;;  %v2796_v4 = vpop.eup %2795 }
 0xd02   :  { %v2055_v6 = vadd.f32 1.0, %v2796_v4 }
 0xd04   :  { %2797 = vrcp.f32 %v2055_v6  ;;  %v2082_v49 = vand.u32 2147483648, %v2055_v6  ;;  %vm2076_vm1 = vweird.f32 %v2055_v6  ;;  %v2080_v2 = vand.u32 2147483647, %v2055_v6 }
 0xd06   :  { %v2083_v3 = vor.u32 1.1754944e-38, %v2082_v49  ;;  %vm2081_vm4 = vcmp.eq.f32.partialorder %v2080_v2, 8.507059e+37 }
 0xd0a   :  { %v2798_v9 = vpop.eup %2797 }
 0xd0b   :  { %v2072_v45 = vmul.f32 %v2798_v9, %v2055_v6  ;;  %vm2077_vm0 = vweird.f32 %v2798_v9 }
 0xd0c   :  { %vm2078_vm3 = vmor %vm2076_vm1, %vm2077_vm0 }
 0xd0d   :  { %v2073_v50 = vsub.f32 1.0, %v2072_v45 }
 0xd0f   :  { %v2074_v58 = vmul.f32 %v2798_v9, %v2073_v50 }
 0xd11   :  { %v2075_v39 = vadd.f32 %v2798_v9, %v2074_v58 }
 0xd13   :  { %v2079_v51 = vsel %vm2078_vm3, %v2798_v9, %v2075_v39 }
 0xd14   :  { %v2084_v34 = vsel %vm2081_vm4, %v2083_v3, %v2079_v51 }
 0xd73   :  { %v2101_v36 = vpop.permute.xlu0 %2100 }
 0xd74   :  { %v2103_v48 = vmul.f32 %v2101_v36, %v2084_v34 }
 0xd76   :  { %2606 = vmatmul.msk.f32.vlgmr.msrb.gmra.mxu0 %vm1702_vm2, %v2103_v48  ;;  %2607 = vmatmul.msk.f32.vlgmr.msrb.gmra.mxu1 %vm1702_vm2, %v2103_v48 }
 0xdf3   :  { %v2146_v13 = vpop.f32.mrf.mxu1  ;;  %v2126_v43 = vpop.f32.mrf.mxu0 }
 0xdf4   :  { %v2147_v31 = vadd.f32 %v2146_v13, %v5247_v53  ;;  %v2127_v44 = vadd.f32 %v2126_v43, %v5248_v25 }
 0xdf6   :  { %2799 = vtanh.f32 %v2147_v31  ;;  %v2608_v41 = vmul.f32 -1.442695, %v2127_v44  ;;  %v2609_v52 = vmul.f32 -1.442695, %v2147_v31 }
 0xdf8   :  { %2801 = vpow2.f32 %v2608_v41 }
 0xdfc   :  { %v2800_v38 = vpop.eup %2799 }
 0xdfd   :  { %2190 = vrot.lane.b32.xlu1 %v2800_v38, %s2911_s6 }
 0xdfe   :  { %v2802_v35 = vpop.eup %2801 }
 0xdff   :  { %v2155_v47 = vadd.f32 1.0, %v2802_v35 }
 0xe01   :  { %2803 = vrcp.f32 %v2155_v47  ;;  %v2168_v54 = vand.u32 2147483648, %v2155_v47  ;;  %vm2162_vm6 = vweird.f32 %v2155_v47  ;;  %v2166_v18 = vand.u32 2147483647, %v2155_v47 }
 0xe03   :  { %v2169_v26 = vor.u32 1.1754944e-38, %v2168_v54  ;;  %vm2167_vm8 = vcmp.eq.f32.partialorder %v2166_v18, 8.507059e+37 }
 0xe07   :  { %v2804_v1 = vpop.eup %2803 }
 0xe08   :  { %v2158_v30 = vmul.f32 %v2804_v1, %v2155_v47  ;;  %vm2163_vm5 = vweird.f32 %v2804_v1 }
 0xe09   :  { %vm2164_vm7 = vmor %vm2162_vm6, %vm2163_vm5 }
 0xe0a   :  { %v2159_v23 = vsub.f32 1.0, %v2158_v30 }
 0xe0c   :  { %v2160_v24 = vmul.f32 %v2804_v1, %v2159_v23 }
 0xe0e   :  { %v2161_v17 = vadd.f32 %v2804_v1, %v2160_v24 }
 0xe10   :  { %v2165_v20 = vsel %vm2164_vm7, %v2804_v1, %v2161_v17 }
 0xe11   :  { %v2170_v32 = vsel %vm2167_vm8, %v2169_v26, %v2165_v20 }
 0xe12   :  { %v2188_v7 = vmul.f32 %v2170_v32, %v2097_v0  ;;  %v5250_v0 = vld [vmem:[#allocation21_spill] sm:$0xff] }
 0xe6f   :  { %v2191_v29 = vpop.permute.xlu1 %2190 }
 0xe70   :  { %v2193_v12 = vmul.f32 %v2191_v29, %v2170_v32  ;;  %v5251_v32 = vld [vmem:[#allocation11_spill] sm:$0xff] }
 0xe72   :  { %2195 = vrot.lane.b32.xlu2 %v2193_v12, %s2911_s6 }
 0xecc   :  { %v2196_v40 = vpop.permute.xlu2 %2195 }
 0xecd   :  { %v2198_v10 = vadd.f32 %v2196_v40, %v2188_v7 }
 0xecf   :  { %2805 = vtanh.f32 %v2198_v10 }
 0xed0   :  { %2807 = vpow2.f32 %v2609_v52 }
 0xed5   :  { %v2806_v61 = vpop.eup %2805 }
 0xed6   :  { %2201 = vrot.lane.b32.xlu0 %v2806_v61, %s2911_s6  ;;  %v2808_v21 = vpop.eup %2807 }
 0xed7   :  { %v2156_v5 = vadd.f32 1.0, %v2808_v21 }
 0xed9   :  { %2809 = vrcp.f32 %v2156_v5  ;;  %v2183_v8 = vand.u32 2147483648, %v2156_v5  ;;  %vm2177_vm10 = vweird.f32 %v2156_v5  ;;  %v2181_v28 = vand.u32 2147483647, %v2156_v5 }
 0xedb   :  { %v2184_v42 = vor.u32 1.1754944e-38, %v2183_v8  ;;  %vm2182_vm12 = vcmp.eq.f32.partialorder %v2181_v28, 8.507059e+37 }
 0xedf   :  { %v2810_v57 = vpop.eup %2809 }
 0xee0   :  { %v2173_v16 = vmul.f32 %v2810_v57, %v2156_v5  ;;  %vm2178_vm9 = vweird.f32 %v2810_v57 }
 0xee1   :  { %vm2179_vm11 = vmor %vm2177_vm10, %vm2178_vm9 }
 0xee2   :  { %v2174_v15 = vsub.f32 1.0, %v2173_v16 }
 0xee4   :  { %v2175_v37 = vmul.f32 %v2810_v57, %v2174_v15 }
 0xee6   :  { %v2176_v11 = vadd.f32 %v2810_v57, %v2175_v37 }
 0xee8   :  { %v2180_v62 = vsel %vm2179_vm11, %v2810_v57, %v2176_v11 }
 0xee9   :  { %v2185_v33 = vsel %vm2182_vm12, %v2184_v42, %v2180_v62 }
 0xf48   :  { %v2202_v55 = vpop.permute.xlu0 %2201 }
 0xf49   :  { %v2204_v56 = vmul.f32 %v2202_v55, %v2185_v33 }
 0xf4b   :  { %2610 = vmatmul.msk.f32.vlgmr.msra.gmra.mxu2 %vm1702_vm2, %v2204_v56  ;;  %2611 = vmatmul.msk.f32.vlgmr.msra.gmra.mxu3 %vm1702_vm2, %v2204_v56 }
 0xfce   :  { %v2247_v59 = vpop.f32.mrf.mxu3  ;;  %v2227_v14 = vpop.f32.mrf.mxu2 }
 0xfcf   :  { %v2248_v60 = vadd.f32 %v2247_v59, %v5249_v27  ;;  %v2228_v19 = vadd.f32 %v2227_v14, %v5250_v0 }
 0xfd1   :  { %2811 = vtanh.f32 %v2248_v60  ;;  %v2612_v22 = vmul.f32 -1.442695, %v2228_v19  ;;  %v2613_v43 = vmul.f32 -1.442695, %v2248_v60 }
 0xfd3   :  { %2813 = vpow2.f32 %v2612_v22 }
 0xfd7   :  { %v2812_v63 = vpop.eup %2811 }
 0xfd8   :  { %2291 = vrot.lane.b32.xlu1 %v2812_v63, %s2911_s6 }
 0xfd9   :  { %v2814_v4 = vpop.eup %2813 }
 0xfda   :  { %v2256_v6 = vadd.f32 1.0, %v2814_v4 }
 0xfdc   :  { %2815 = vrcp.f32 %v2256_v6  ;;  %v2269_v49 = vand.u32 2147483648, %v2256_v6  ;;  %vm2263_vm14 = vweird.f32 %v2256_v6  ;;  %v2267_v2 = vand.u32 2147483647, %v2256_v6 }
 0xfde   :  { %v2270_v3 = vor.u32 1.1754944e-38, %v2269_v49  ;;  %vm2268_vm0 = vcmp.eq.f32.partialorder %v2267_v2, 8.507059e+37 }
 0xfe2   :  { %v2816_v9 = vpop.eup %2815 }
 0xfe3   :  { %v2259_v45 = vmul.f32 %v2816_v9, %v2256_v6  ;;  %vm2264_vm13 = vweird.f32 %v2816_v9 }
 0xfe4   :  { %vm2265_vm15 = vmor %vm2263_vm14, %vm2264_vm13 }
 0xfe5   :  { %v2260_v50 = vsub.f32 1.0, %v2259_v45 }
 0xfe7   :  { %v2261_v58 = vmul.f32 %v2816_v9, %v2260_v50 }
 0xfe9   :  { %v2262_v39 = vadd.f32 %v2816_v9, %v2261_v58 }
 0xfeb   :  { %v2266_v51 = vsel %vm2265_vm15, %v2816_v9, %v2262_v39 }
 0xfec   :  { %v2271_v36 = vsel %vm2268_vm0, %v2270_v3, %v2266_v51 }
 0xfed   :  { %v2289_v13 = vmul.f32 %v2271_v36, %v2198_v10  ;;  %v5252_v10 = vld [vmem:[#allocation10_spill] sm:$0xff] }
0x104a   :  { %v2292_v34 = vpop.permute.xlu1 %2291 }
0x104b   :  { %v2294_v48 = vmul.f32 %v2292_v34, %v2271_v36  ;;  %v5253_v36 = vld [vmem:[#allocation24_spill] sm:$0xff] }
0x104d   :  { %2296 = vrot.lane.b32.xlu2 %v2294_v48, %s2911_s6 }
0x10a7   :  { %v2297_v53 = vpop.permute.xlu2 %2296 }
0x10a8   :  { %v2299_v31 = vadd.f32 %v2297_v53, %v2289_v13 }
0x10aa   :  { %2817 = vtanh.f32 %v2299_v31 }
0x10ab   :  { %2819 = vpow2.f32 %v2613_v43 }
0x10b0   :  { %v2818_v38 = vpop.eup %2817 }
0x10b1   :  { %2302 = vrot.lane.b32.xlu0 %v2818_v38, %s2911_s6  ;;  %v2820_v25 = vpop.eup %2819 }
0x10b2   :  { %v2257_v44 = vadd.f32 1.0, %v2820_v25 }
0x10b4   :  { %2821 = vrcp.f32 %v2257_v44  ;;  %v2284_v23 = vand.u32 2147483648, %v2257_v44  ;;  %vm2278_vm3 = vweird.f32 %v2257_v44  ;;  %v2282_v24 = vand.u32 2147483647, %v2257_v44 }
0x10b6   :  { %v2285_v54 = vor.u32 1.1754944e-38, %v2284_v23  ;;  %vm2283_vm5 = vcmp.eq.f32.partialorder %v2282_v24, 8.507059e+37 }
0x10ba   :  { %v2822_v41 = vpop.eup %2821 }
0x10bb   :  { %v2274_v35 = vmul.f32 %v2822_v41, %v2257_v44  ;;  %vm2279_vm1 = vweird.f32 %v2822_v41 }
0x10bc   :  { %vm2280_vm4 = vmor %vm2278_vm3, %vm2279_vm1 }
0x10bd   :  { %v2275_v47 = vsub.f32 1.0, %v2274_v35 }
0x10bf   :  { %v2276_v1 = vmul.f32 %v2822_v41, %v2275_v47 }
0x10c1   :  { %v2277_v30 = vadd.f32 %v2822_v41, %v2276_v1 }
0x10c3   :  { %v2281_v17 = vsel %vm2280_vm4, %v2822_v41, %v2277_v30 }
0x10c4   :  { %v2286_v18 = vsel %vm2283_vm5, %v2285_v54, %v2281_v17 }
0x1123   :  { %v2303_v20 = vpop.permute.xlu0 %2302 }
0x1124   :  { %v2305_v26 = vmul.f32 %v2303_v20, %v2286_v18 }
0x1126   :  { %2614 = vmatmul.msk.f32.vlgmr.msra.gmra.mxu0 %vm1702_vm2, %v2305_v26  ;;  %2615 = vmatmul.msk.f32.vlgmr.msra.gmra.mxu1 %vm1702_vm2, %v2305_v26 }
0x11a3   :  { %v2348_v29 = vpop.f32.mrf.mxu1  ;;  %v2328_v40 = vpop.f32.mrf.mxu0 }
0x11a4   :  { %v2349_v12 = vadd.f32 %v2348_v29, %v5251_v32  ;;  %v2329_v61 = vadd.f32 %v2328_v40, %v5252_v10 }
0x11a6   :  { %2823 = vtanh.f32 %v2349_v12  ;;  %v2616_v52 = vmul.f32 -1.442695, %v2329_v61  ;;  %v2617_v14 = vmul.f32 -1.442695, %v2349_v12 }
0x11a8   :  { %2825 = vpow2.f32 %v2616_v52 }
0x11ac   :  { %v2824_v7 = vpop.eup %2823 }
0x11ad   :  { %2392 = vrot.lane.b32.xlu1 %v2824_v7, %s2911_s6 }
0x11ae   :  { %v2826_v21 = vpop.eup %2825 }
0x11af   :  { %v2357_v5 = vadd.f32 1.0, %v2826_v21 }
0x11b1   :  { %2827 = vrcp.f32 %v2357_v5  ;;  %v2370_v8 = vand.u32 2147483648, %v2357_v5  ;;  %vm2364_vm7 = vweird.f32 %v2357_v5  ;;  %v2368_v28 = vand.u32 2147483647, %v2357_v5 }
0x11b3   :  { %v2371_v42 = vor.u32 1.1754944e-38, %v2370_v8  ;;  %vm2369_vm9 = vcmp.eq.f32.partialorder %v2368_v28, 8.507059e+37 }
0x11b7   :  { %v2828_v57 = vpop.eup %2827 }
0x11b8   :  { %v2360_v16 = vmul.f32 %v2828_v57, %v2357_v5  ;;  %vm2365_vm6 = vweird.f32 %v2828_v57 }
0x11b9   :  { %vm2366_vm8 = vmor %vm2364_vm7, %vm2365_vm6 }
0x11ba   :  { %v2361_v15 = vsub.f32 1.0, %v2360_v16 }
0x11bc   :  { %v2362_v37 = vmul.f32 %v2828_v57, %v2361_v15 }
0x11be   :  { %v2363_v11 = vadd.f32 %v2828_v57, %v2362_v37 }
0x11c0   :  { %v2367_v62 = vsel %vm2366_vm8, %v2828_v57, %v2363_v11 }
0x11c1   :  { %v2372_v55 = vsel %vm2369_vm9, %v2371_v42, %v2367_v62 }
0x11c2   :  { %v2390_v59 = vmul.f32 %v2372_v55, %v2299_v31  ;;  %v5254_v31 = vld [vmem:[#allocation23_spill] sm:$0xff] }
0x121f   :  { %v2393_v33 = vpop.permute.xlu1 %2392 }
0x1220   :  { %v2395_v56 = vmul.f32 %v2393_v33, %v2372_v55 }
0x1222   :  { %2397 = vrot.lane.b32.xlu2 %v2395_v56, %s2911_s6 }
0x127c   :  { %v2398_v27 = vpop.permute.xlu2 %2397 }
0x127d   :  { %v2400_v60 = vadd.f32 %v2398_v27, %v2390_v59 }
0x127f   :  { %2829 = vtanh.f32 %v2400_v60 }
0x1280   :  { %2831 = vpow2.f32 %v2617_v14 }
0x1285   :  { %v2830_v63 = vpop.eup %2829 }
0x1286   :  { %2403 = vrot.lane.b32.xlu0 %v2830_v63, %s2911_s6  ;;  %v2832_v0 = vpop.eup %2831 }
0x1287   :  { %v2358_v19 = vadd.f32 1.0, %v2832_v0 }
0x1289   :  { %2833 = vrcp.f32 %v2358_v19  ;;  %v2385_v50 = vand.u32 2147483648, %v2358_v19  ;;  %vm2379_vm11 = vweird.f32 %v2358_v19  ;;  %v2383_v58 = vand.u32 2147483647, %v2358_v19 }
0x128b   :  { %v2386_v49 = vor.u32 1.1754944e-38, %v2385_v50  ;;  %vm2384_vm13 = vcmp.eq.f32.partialorder %v2383_v58, 8.507059e+37 }
0x128f   :  { %v2834_v22 = vpop.eup %2833 }
0x1290   :  { %v2375_v4 = vmul.f32 %v2834_v22, %v2358_v19  ;;  %vm2380_vm10 = vweird.f32 %v2834_v22 }
0x1291   :  { %vm2381_vm12 = vmor %vm2379_vm11, %vm2380_vm10 }
0x1292   :  { %v2376_v6 = vsub.f32 1.0, %v2375_v4 }
0x1294   :  { %v2377_v9 = vmul.f32 %v2834_v22, %v2376_v6 }
0x1296   :  { %v2378_v45 = vadd.f32 %v2834_v22, %v2377_v9 }
0x1298   :  { %v2382_v39 = vsel %vm2381_vm12, %v2834_v22, %v2378_v45 }
0x1299   :  { %v2387_v2 = vsel %vm2384_vm13, %v2386_v49, %v2382_v39 }
0x12f8   :  { %v2404_v51 = vpop.permute.xlu0 %2403 }
0x12f9   :  { %v2406_v3 = vmul.f32 %v2404_v51, %v2387_v2 }
0x12fb   :  { %2618 = vmatmul.msk.f32.vlgmr.msrb.gmra.mxu2 %vm1702_vm2, %v2406_v3  ;;  %2619 = vmatmul.msk.f32.vlgmr.msrb.gmra.mxu3 %vm1702_vm2, %v2406_v3 }
0x137e   :  { %v2449_v34 = vpop.f32.mrf.mxu3  ;;  %v2429_v53 = vpop.f32.mrf.mxu2 }
0x137f   :  { %v2450_v48 = vadd.f32 %v2449_v34, %v5253_v36  ;;  %v2430_v38 = vadd.f32 %v2429_v53, %v5254_v31 }
0x1381   :  { %2835 = vtanh.f32 %v2450_v48  ;;  %v2620_v43 = vmul.f32 -1.442695, %v2430_v38  ;;  %v2621_v40 = vmul.f32 -1.442695, %v2450_v48 }
0x1383   :  { %2837 = vpow2.f32 %v2620_v43 }
0x1387   :  { %v2836_v13 = vpop.eup %2835 }
0x1388   :  { %2493 = vrot.lane.b32.xlu1 %v2836_v13, %s2911_s6 }
0x1389   :  { %v2838_v25 = vpop.eup %2837 }
0x138a   :  { %v2458_v44 = vadd.f32 1.0, %v2838_v25 }
0x138c   :  { %2839 = vrcp.f32 %v2458_v44  ;;  %v2471_v23 = vand.u32 2147483648, %v2458_v44  ;;  %vm2465_vm15 = vweird.f32 %v2458_v44  ;;  %v2469_v24 = vand.u32 2147483647, %v2458_v44 }
0x138e   :  { %v2472_v54 = vor.u32 1.1754944e-38, %v2471_v23  ;;  %vm2470_vm1 = vcmp.eq.f32.partialorder %v2469_v24, 8.507059e+37 }
0x1392   :  { %v2840_v41 = vpop.eup %2839 }
0x1393   :  { %v2461_v35 = vmul.f32 %v2840_v41, %v2458_v44  ;;  %vm2466_vm14 = vweird.f32 %v2840_v41 }
0x1394   :  { %vm2467_vm0 = vmor %vm2465_vm15, %vm2466_vm14 }
0x1395   :  { %v2462_v47 = vsub.f32 1.0, %v2461_v35 }
0x1397   :  { %v2463_v1 = vmul.f32 %v2840_v41, %v2462_v47 }
0x1399   :  { %v2464_v30 = vadd.f32 %v2840_v41, %v2463_v1 }
0x139b   :  { %v2468_v17 = vsel %vm2467_vm0, %v2840_v41, %v2464_v30 }
0x139c   :  { %v2473_v20 = vsel %vm2470_vm1, %v2472_v54, %v2468_v17 }
0x139d   :  { %v2491_v29 = vmul.f32 %v2473_v20, %v2400_v60 }
0x13fa   :  { %v2494_v18 = vpop.permute.xlu1 %2493 }
0x13fb   :  { %v2496_v26 = vmul.f32 %v2494_v18, %v2473_v20 }
0x13fd   :  { %2498 = vrot.lane.b32.xlu2 %v2496_v26, %s2911_s6 }
0x1457   :  { %v2499_v32 = vpop.permute.xlu2 %2498 }
0x1458   :  { %v2501_v12 = vadd.f32 %v2499_v32, %v2491_v29 }
0x145a   :  { %2841 = vtanh.f32 %v2501_v12 }
0x145b   :  { %2843 = vpow2.f32 %v2621_v40 }
0x1460   :  { %v2842_v7 = vpop.eup %2841 }
0x1461   :  { %2504 = vrot.lane.b32.xlu0 %v2842_v7, %s2911_s6  ;;  %v2844_v10 = vpop.eup %2843 }
0x1462   :  { %v2459_v61 = vadd.f32 1.0, %v2844_v10 }
0x1464   :  { %2845 = vrcp.f32 %v2459_v61  ;;  %v2486_v15 = vand.u32 2147483648, %v2459_v61  ;;  %vm2480_vm4 = vweird.f32 %v2459_v61  ;;  %v2484_v37 = vand.u32 2147483647, %v2459_v61 }
0x1466   :  { %v2487_v8 = vor.u32 1.1754944e-38, %v2486_v15  ;;  %vm2485_vm6 = vcmp.eq.f32.partialorder %v2484_v37, 8.507059e+37 }
0x146a   :  { %v2846_v52 = vpop.eup %2845 }
0x146b   :  { %v2476_v21 = vmul.f32 %v2846_v52, %v2459_v61  ;;  %vm2481_vm3 = vweird.f32 %v2846_v52 }
0x146c   :  { %vm2482_vm5 = vmor %vm2480_vm4, %vm2481_vm3 }
0x146d   :  { %v2477_v5 = vsub.f32 1.0, %v2476_v21 }
0x146f   :  { %v2478_v57 = vmul.f32 %v2846_v52, %v2477_v5 }
0x1471   :  { %v2479_v16 = vadd.f32 %v2846_v52, %v2478_v57 }
0x1473   :  { %v2483_v11 = vsel %vm2482_vm5, %v2846_v52, %v2479_v16 }
0x1474   :  { %v2488_v28 = vsel %vm2485_vm6, %v2487_v8, %v2483_v11 }
0x14d3   :  { %v2505_v62 = vpop.permute.xlu0 %2504 }
0x14d4   :  { %v2507_v42 = vmul.f32 %v2505_v62, %v2488_v28 }
0x14d6   :  { %2509 = vrot.lane.b32.xlu1 %v2507_v42, %s2911_s6 }
0x1548   :  { %v2510_v33 = vpop.permute.xlu1 %2509 }
0x1549   :  { %v2512_v55 = vsel %vm1702_vm2, %v4735_v46, %v2510_v33 }
0x154a   :  { %2513 = vst [vmem:[%s4895_s10] sm:$0xff] %v2512_v55 }

</bundles_post_ra>
